<compile_context>
chip_gen: v5e
topology: v5e:2x2
jax: 0.10.0
libtpu: 0.0.40
codegen_flags: <defaults>
</compile_context>

<pallas_src>
import functools

import jax
import jax.numpy as jnp
import numpy as np
from jax.experimental import pallas as pl
from jax.experimental.pallas import tpu as pltpu

PRELU_ALPHA = 0.25     # nn.PReLU() deterministic init value.
LANE = 128             # lane width: channel / contraction dims padded to this.
ROW_TILE = 512         # rows of (N*H*W) per grid step.


def _round_up(x, m):
    return (x + m - 1) // m * m


@functools.lru_cache(maxsize=None)
def _vmem_limit_bytes():
    # Generation-aware VMEM budget: ~3/4 of physical per-core VMEM, capped at 100 MiB
    # (v7x: ~48 MiB, v5e/v6e: ~96 MiB). Falls back to a safe 48 MiB if the query fails.
    try:
        cap = int(pltpu.get_tpu_info().vmem_capacity_bytes)
    except Exception:
        cap = 64 * 1024 * 1024
    return int(max(32 * 1024 * 1024, min(cap * 3 // 4, 100 * 1024 * 1024)))


def _compiler_params():
    return pltpu.CompilerParams(
        dimension_semantics=("parallel",),
        vmem_limit_bytes=_vmem_limit_bytes())


# ---------------------------------------------------------------------------
# Glue helpers (plain JAX): im2col patch extraction and pixel shuffle.
# ---------------------------------------------------------------------------
def im2col_same(x, kh, kw):
    """x: (N,H,W,Cin) -> (N*H*W, kh*kw*Cin) with 'same' padding, stride 1.

    Tap order (dy, dx, ci) matches w.reshape(kh*kw*Cin, Cout) for HWIO weights.
    """
    N, H, W, Cin = x.shape
    ph, pw = kh // 2, kw // 2
    xp = jnp.pad(x, ((0, 0), (ph, ph), (pw, pw), (0, 0)))
    taps = [xp[:, dy:dy + H, dx:dx + W, :] for dy in range(kh) for dx in range(kw)]
    return jnp.concatenate(taps, axis=-1).reshape(N * H * W, kh * kw * Cin)


def pixel_shuffle_nhwc(x, r):
    """PyTorch nn.PixelShuffle semantics, NHWC layout."""
    N, H, W, Crr = x.shape
    C = Crr // (r * r)
    x = x.reshape(N, H, W, C, r, r)
    x = jnp.transpose(x, (0, 1, 4, 2, 5, 3))
    return x.reshape(N, H * r, W * r, C)


# ---------------------------------------------------------------------------
# Pallas kernel bodies.
# ---------------------------------------------------------------------------
def _direct_kernel(has_bias, has_res, prelu, apply_tanh):
    """conv (+bias) (+PReLU) (+residual) (+tanh); no BatchNorm. One matmul per tile."""
    def kernel(*refs):
        it = iter(refs)
        cols_ref, w_ref = next(it), next(it)
        b_ref = next(it) if has_bias else None
        r_ref = next(it) if has_res else None
        o_ref = next(it)
        y = jnp.dot(cols_ref[...], w_ref[...], preferred_element_type=jnp.float32)
        if has_bias:
            y = y + b_ref[...]
        if prelu:
            y = jnp.where(y >= 0, y, PRELU_ALPHA * y)
        if has_res:
            y = y + r_ref[...]
        if apply_tanh:
            y = jnp.tanh(y)
        o_ref[...] = y
    return kernel


def _fused_bn_kernel(nhw_true, has_res, prelu, eps):
    """conv + training-mode BatchNorm (+PReLU) (+residual); whole NHW in one tile.

    Zero-padded rows/channels contribute nothing to the sums, so dividing by the
    true NHW reproduces PyTorch batch statistics exactly.
    """
    inv_n = 1.0 / float(nhw_true)

    def kernel(*refs):
        it = iter(refs)
        cols_ref, w_ref, g_ref, be_ref = next(it), next(it), next(it), next(it)
        r_ref = next(it) if has_res else None
        o_ref = next(it)
        y = jnp.dot(cols_ref[...], w_ref[...], preferred_element_type=jnp.float32)
        mean = jnp.sum(y, axis=0, keepdims=True) * inv_n
        var = jnp.maximum(jnp.sum(y * y, axis=0, keepdims=True) * inv_n - mean * mean, 0.0)
        y = (y - mean) * jax.lax.rsqrt(var + eps) * g_ref[...] + be_ref[...]
        if prelu:
            y = jnp.where(y >= 0, y, PRELU_ALPHA * y)
        if has_res:
            y = y + r_ref[...]
        o_ref[...] = y
    return kernel


def _conv_stats_kernel():
    """Pass 1 of tiled BN: conv output + per-tile per-channel (sum, sumsq)."""
    def kernel(cols_ref, w_ref, conv_ref, stat_ref):
        y = jnp.dot(cols_ref[...], w_ref[...], preferred_element_type=jnp.float32)
        conv_ref[...] = y
        s = jnp.sum(y, axis=0, keepdims=True)
        ss = jnp.sum(y * y, axis=0, keepdims=True)
        stat_ref[...] = jnp.concatenate([s, ss], axis=0).reshape(1, 2, y.shape[1])
    return kernel


def _bn_apply_kernel(has_res, prelu):
    """Pass 2 of tiled BN: y*scale + shift, then optional PReLU / residual."""
    def kernel(*refs):
        it = iter(refs)
        y_ref, sc_ref, sh_ref = next(it), next(it), next(it)
        r_ref = next(it) if has_res else None
        o_ref = next(it)
        y = y_ref[...] * sc_ref[...] + sh_ref[...]
        if prelu:
            y = jnp.where(y >= 0, y, PRELU_ALPHA * y)
        if has_res:
            y = y + r_ref[...]
        o_ref[...] = y
    return kernel


# ---------------------------------------------------------------------------
# Fused conv block: conv 'same' (+bias / train-mode BN) (+PReLU) (+residual) (+tanh).
# ---------------------------------------------------------------------------
def conv_block(x, w, *, b=None, bn=None, prelu=False, residual=None,
               apply_tanh=False, bn_eps=1e-5):
    """x: (N,H,W,Cin) f32, w: (kh,kw,Cin,Cout) HWIO f32. Returns (N,H,W,Cout) f32."""
    N, H, W, Cin = x.shape
    kh, kw, _, Cout = w.shape
    NHW = N * H * W
    K = kh * kw * Cin

    Kp = _round_up(K, LANE)            # lane-dense contraction dim
    Cp = _round_up(Cout, LANE)         # lane-dense output channels
    tile = min(ROW_TILE, _round_up(NHW, 16))
    Rp = _round_up(NHW, tile)
    ntiles = Rp // tile

    # im2col with taps folded into K; bf16 operands, f32 accumulation in-kernel.
    cols = im2col_same(x.astype(jnp.float32), kh, kw)
    cols = jnp.pad(cols, ((0, Rp - NHW), (0, Kp - K))).astype(jnp.bfloat16)
    wmat = jnp.pad(w.astype(jnp.float32).reshape(K, Cout),
                   ((0, Kp - K), (0, Cp - Cout))).astype(jnp.bfloat16)

    res_p = None
    if residual is not None:
        res_p = jnp.pad(residual.astype(jnp.float32).reshape(NHW, Cout),
                        ((0, Rp - NHW), (0, Cp - Cout)))
    has_res = res_p is not None
    has_bias = b is not None

    cols_spec = pl.BlockSpec((tile, Kp), lambda i: (i, 0))
    w_spec = pl.BlockSpec((Kp, Cp), lambda i: (0, 0))       # resident weights (1 DMA)
    row_spec = pl.BlockSpec((tile, Cp), lambda i: (i, 0))
    chan_spec = pl.BlockSpec((1, Cp), lambda i: (0, 0))
    cparams = _compiler_params()

    def pad_chan(v):
        return jnp.pad(jnp.asarray(v, jnp.float32), (0, Cp - Cout)).reshape(1, Cp)

    if bn is None:
        inputs, in_specs = [cols, wmat], [cols_spec, w_spec]
        if has_bias:
            inputs.append(pad_chan(b)); in_specs.append(chan_spec)
        if has_res:
            inputs.append(res_p); in_specs.append(row_spec)
        out = pl.pallas_call(
            _direct_kernel(has_bias, has_res, prelu, apply_tanh),
            out_shape=jax.ShapeDtypeStruct((Rp, Cp), jnp.float32),
            grid=(ntiles,), in_specs=in_specs, out_specs=row_spec,
            compiler_params=cparams,
        )(*inputs)
    else:
        gamma, beta = bn
        if ntiles == 1:
            # Whole NHW fits one tile -> fully fused conv + batch-stat BN.
            inputs = [cols, wmat, pad_chan(gamma), pad_chan(beta)]
            in_specs = [cols_spec, w_spec, chan_spec, chan_spec]
            if has_res:
                inputs.append(res_p); in_specs.append(row_spec)
            out = pl.pallas_call(
                _fused_bn_kernel(NHW, has_res, prelu, bn_eps),
                out_shape=jax.ShapeDtypeStruct((Rp, Cp), jnp.float32),
                grid=(1,), in_specs=in_specs, out_specs=row_spec,
                compiler_params=cparams,
            )(*inputs)
        else:
            # Pass 1: tiled conv + per-tile partial statistics.
            conv_out, stats = pl.pallas_call(
                _conv_stats_kernel(),
                out_shape=(jax.ShapeDtypeStruct((Rp, Cp), jnp.float32),
                           jax.ShapeDtypeStruct((ntiles, 2, Cp), jnp.float32)),
                grid=(ntiles,), in_specs=[cols_spec, w_spec],
                out_specs=(row_spec, pl.BlockSpec((1, 2, Cp), lambda i: (i, 0, 0))),
                compiler_params=cparams,
            )(cols, wmat)
            # Tiny per-channel finalize (glue). Padded rows/channels are exactly
            # zero, so dividing by the true NHW matches PyTorch batch statistics.
            tot = jnp.sum(stats, axis=0)                    # (2, Cp)
            mean = tot[0] / float(NHW)
            var = jnp.maximum(tot[1] / float(NHW) - mean * mean, 0.0)
            scale = pad_chan(gamma)[0] * jax.lax.rsqrt(var + bn_eps)
            shift = pad_chan(beta)[0] - mean * scale
            # Pass 2: tiled normalize (+PReLU) (+residual).
            inputs = [conv_out, scale.reshape(1, Cp), shift.reshape(1, Cp)]
            in_specs = [row_spec, chan_spec, chan_spec]
            if has_res:
                inputs.append(res_p); in_specs.append(row_spec)
            out = pl.pallas_call(
                _bn_apply_kernel(has_res, prelu),
                out_shape=jax.ShapeDtypeStruct((Rp, Cp), jnp.float32),
                grid=(ntiles,), in_specs=in_specs, out_specs=row_spec,
                compiler_params=cparams,
            )(*inputs)

    return out[:NHW, :Cout].reshape(N, H, W, Cout)


# ---------------------------------------------------------------------------
# SRGANGenerator forward.
# ---------------------------------------------------------------------------
def srgan_forward(x_nchw, params):
    x = jnp.transpose(x_nchw, (0, 2, 3, 1)).astype(jnp.float32)   # NCHW -> NHWC

    # first_res_conv: conv9x9 + bias + PReLU (no BN)
    x = conv_block(x, params['first_w'], b=params['first_b'], prelu=True)
    skip = x

    # 16 residual blocks: (conv3x3 + BN + PReLU) -> (conv3x3 + BN) -> +x
    for p in params['res']:
        y = conv_block(x, p['w1'], bn=(p['g1'], p['b1']), prelu=True)
        x = conv_block(y, p['w2'], bn=(p['g2'], p['b2']), residual=x)

    # last_res_conv: conv3x3 + BN, then + first-conv output
    x = conv_block(x, params['lastres_w'],
                   bn=(params['lastres_g'], params['lastres_b']), residual=skip)

    # upsampling blocks: conv3x3 + bias -> PixelShuffle(2) -> PReLU
    # (scalar-alpha PReLU commutes with the permutation, so it is fused into the conv)
    for p in params['up']:
        y = conv_block(x, p['w'], b=p['b'], prelu=True)
        x = pixel_shuffle_nhwc(y, 2)

    # last_conv: conv9x9 + bias + PReLU, then final Tanh (fused)
    x = conv_block(x, params['last_w'], b=params['last_b'], prelu=True, apply_tanh=True)

    return jnp.transpose(x, (0, 3, 1, 2))                          # NHWC -> NCHW


# ---------------------------------------------------------------------------
# Deterministic parameter initialization (synthetic; weights stored HWIO).
# ---------------------------------------------------------------------------
def init_params(key, cin, c, rate):
    keys = iter(jax.random.split(key, 64))

    def nrm(shape, fan_in):
        return jax.random.normal(next(keys), shape, jnp.float32) / jnp.sqrt(float(fan_in))

    params = {
        'first_w': nrm((9, 9, cin, c), 81 * cin),
        'first_b': nrm((c,), 81 * cin),
        'res': [],
        'up': [],
    }
    for _ in range(16):
        params['res'].append({
            'w1': nrm((3, 3, c, c), 9 * c),
            'g1': jnp.ones((c,), jnp.float32), 'b1': jnp.zeros((c,), jnp.float32),
            'w2': nrm((3, 3, c, c), 9 * c),
            'g2': jnp.ones((c,), jnp.float32), 'b2': jnp.zeros((c,), jnp.float32),
        })
    params['lastres_w'] = nrm((3, 3, c, c), 9 * c)
    params['lastres_g'] = jnp.ones((c,), jnp.float32)
    params['lastres_b'] = jnp.zeros((c,), jnp.float32)
    for _ in range(rate // 2):
        params['up'].append({'w': nrm((3, 3, c, c * rate), 9 * c),
                             'b': nrm((c * rate,), 9 * c)})
    params['last_w'] = nrm((9, 9, c, cin), 81 * c)
    params['last_b'] = nrm((cin,), 81 * c)
    return params


# ---------------------------------------------------------------------------
# Pure-JAX reference (NCHW, PyTorch semantics, f32 HIGHEST) for correctness checks.
# ---------------------------------------------------------------------------
def _conv_ref(x, w_hwio, b=None):
    w = jnp.transpose(w_hwio, (3, 2, 0, 1))  # OIHW
    y = jax.lax.conv_general_dilated(x, w, (1, 1), 'SAME',
                                     dimension_numbers=('NCHW', 'OIHW', 'NCHW'),
                                     precision=jax.lax.Precision.HIGHEST)
    if b is not None:
        y = y + b[None, :, None, None]
    return y


def _bn_ref(x, g, b, eps=1e-5):
    m = jnp.mean(x, axis=(0, 2, 3), keepdims=True)
    v = jnp.mean((x - m) ** 2, axis=(0, 2, 3), keepdims=True)
    return (x - m) * jax.lax.rsqrt(v + eps) * g[None, :, None, None] + b[None, :, None, None]


def _pixel_shuffle_ref(x, r):
    N, Crr, H, W = x.shape
    C = Crr // (r * r)
    x = x.reshape(N, C, r, r, H, W)
    x = jnp.transpose(x, (0, 1, 4, 2, 5, 3))
    return x.reshape(N, C, H * r, W * r)


def srgan_forward_ref(x, params):
    pr = lambda z: jnp.where(z >= 0, z, PRELU_ALPHA * z)
    x = pr(_conv_ref(x, params['first_w'], params['first_b']))
    skip = x
    for p in params['res']:
        y = pr(_bn_ref(_conv_ref(x, p['w1']), p['g1'], p['b1']))
        x = _bn_ref(_conv_ref(y, p['w2']), p['g2'], p['b2']) + x
    x = _bn_ref(_conv_ref(x, params['lastres_w']),
                params['lastres_g'], params['lastres_b']) + skip
    for p in params['up']:
        x = pr(_pixel_shuffle_ref(_conv_ref(x, p['w'], p['b']), 2))
    x = jnp.tanh(pr(_conv_ref(x, params['last_w'], params['last_b'])))
    return x


# ---------------------------------------------------------------------------
if __name__ == "__main__":
    N, Cin, H, W = 2, 3, 8, 8        # small NCHW input
    C, RATE = 8, 4                   # out_channels=8, upsampling_rate=4 (x4 total)

    key = jax.random.PRNGKey(0)
    kx, kp, kb = jax.random.split(key, 3)
    x = jax.random.normal(kx, (N, Cin, H, W), jnp.float32)
    params = init_params(kp, Cin, C, RATE)

    out = jax.block_until_ready(jax.jit(srgan_forward)(x, params))
    assert out.shape == (N, Cin, H * RATE, W * RATE), out.shape
    assert bool(jnp.all(jnp.isfinite(out)))
    assert bool(jnp.all(jnp.abs(out) <= 1.0))

    # End-to-end check vs f32 HIGHEST reference; tolerance covers bf16 matmul drift
    # accumulated over the ~35 conv layers (f32 accumulation + f32 epilogues).
    ref = jax.block_until_ready(srgan_forward_ref(x, params))
    np.testing.assert_allclose(np.asarray(out), np.asarray(ref), atol=5e-2, rtol=5e-2)

    # Separately exercise the tiled two-pass BatchNorm path (NHW > one row tile).
    kk = jax.random.split(kb, 3)
    xb = jax.random.normal(kk[0], (1, 40, 40, 8), jnp.float32)   # NHW=1600 -> 4 tiles
    wb = jax.random.normal(kk[1], (3, 3, 8, 8), jnp.float32) / jnp.sqrt(72.0)
    rb = jax.random.normal(kk[2], (1, 40, 40, 8), jnp.float32)
    g = jnp.linspace(0.5, 1.5, 8, dtype=jnp.float32)
    be = jnp.linspace(-0.2, 0.2, 8, dtype=jnp.float32)
    got = jax.block_until_ready(
        jax.jit(lambda a, wgt, r: conv_block(a, wgt, bn=(g, be), prelu=True, residual=r))(
            xb, wb, rb))
    t = _bn_ref(_conv_ref(jnp.transpose(xb, (0, 3, 1, 2)), wb), g, be)
    t = jnp.where(t >= 0, t, PRELU_ALPHA * t) + jnp.transpose(rb, (0, 3, 1, 2))
    want = jnp.transpose(t, (0, 2, 3, 1))
    np.testing.assert_allclose(np.asarray(got), np.asarray(want), atol=2e-2, rtol=2e-2)

    print("KERNEL_OK")
</pallas_src>

<mosaic_0001>
module attributes {stable_mosaic.version = 11 : i64} {
  func.func @kernel(%arg0: i32, %arg1: memref<128x256xbf16, #tpu.memory_space<vmem>>, %arg2: memref<256x128xbf16, #tpu.memory_space<vmem>>, %arg3: memref<1x128xf32, #tpu.memory_space<vmem>>, %arg4: memref<128x128xf32, #tpu.memory_space<vmem>>) attributes {dimension_semantics = [#tpu.dimension_semantics<parallel>], iteration_bounds = array<i64: 1>, scalar_prefetch = 0 : i64, scratch_operands = 0 : i64, tpu.core_type = #tpu.core_type<tc>, window_params = [{transform_indices = @transform_0, window_bounds = array<i64: 128, 256>}, {pipeline_mode = #tpu.pipeline_mode<synchronous>, transform_indices = @transform_1, window_bounds = array<i64: 256, 128>}, {pipeline_mode = #tpu.pipeline_mode<synchronous>, transform_indices = @transform_2, window_bounds = array<i64: 1, 128>}, {transform_indices = @transform_3, window_bounds = array<i64: 128, 128>}]} {
    %c0 = arith.constant 0 : index
    %c0_0 = arith.constant 0 : index
    %0 = vector.load %arg1[%c0, %c0_0] : memref<128x256xbf16, #tpu.memory_space<vmem>>, vector<128x256xbf16>
    %c0_1 = arith.constant 0 : index
    %c0_2 = arith.constant 0 : index
    %1 = vector.load %arg2[%c0_1, %c0_2] : memref<256x128xbf16, #tpu.memory_space<vmem>>, vector<256x128xbf16>
    %cst = arith.constant dense<0.000000e+00> : vector<128x128xf32>
    %2 = tpu.matmul %0, %1, %cst {dimension_numbers = #tpu.dot_dimension_numbers<[1], [0], [0], [1], [0, 0, 1, 1], [], []>} : vector<128x256xbf16>, vector<256x128xbf16>, vector<128x128xf32> -> vector<128x128xf32>
    %c0_3 = arith.constant 0 : index
    %c0_4 = arith.constant 0 : index
    %3 = vector.load %arg3[%c0_3, %c0_4] : memref<1x128xf32, #tpu.memory_space<vmem>>, vector<1x128xf32>
    %4 = vector.broadcast %3 : vector<1x128xf32> to vector<128x128xf32>
    %5 = arith.addf %2, %4 : vector<128x128xf32>
    %cst_5 = arith.constant 0.000000e+00 : f32
    %6 = vector.broadcast %cst_5 : f32 to vector<128x128xf32>
    %7 = arith.cmpf oge, %5, %6 : vector<128x128xf32>
    %cst_6 = arith.constant 2.500000e-01 : f32
    %8 = vector.broadcast %cst_6 : f32 to vector<128x128xf32>
    %9 = arith.mulf %8, %5 : vector<128x128xf32>
    %10 = arith.select %7, %5, %9 : vector<128x128xi1>, vector<128x128xf32>
    %c0_7 = arith.constant 0 : index
    %c0_8 = arith.constant 0 : index
    %11 = vector.load %arg4[%c0_7, %c0_8] : memref<128x128xf32, #tpu.memory_space<vmem>>, vector<128x128xf32>
    tpu.vector_store %arg4[%c0_7, %c0_8], %10 {strides = array<i32>} : memref<128x128xf32, #tpu.memory_space<vmem>>, vector<128x128xf32>,
    return
  }
  func.func @transform_0(%arg0: i32) -> (i32, i32) {
    %c0_i32 = arith.constant 0 : i32
    %c0_i32_0 = arith.constant 0 : i32
    return %arg0, %c0_i32 : i32, i32
  }
  func.func @transform_1(%arg0: i32) -> (i32, i32) {
    %c0_i32 = arith.constant 0 : i32
    %c0_i32_0 = arith.constant 0 : i32
    %c0_i32_1 = arith.constant 0 : i32
    return %c0_i32, %c0_i32_0 : i32, i32
  }
  func.func @transform_2(%arg0: i32) -> (i32, i32) {
    %c0_i32 = arith.constant 0 : i32
    %c0_i32_0 = arith.constant 0 : i32
    %c0_i32_1 = arith.constant 0 : i32
    return %c0_i32, %c0_i32_0 : i32, i32
  }
  func.func @transform_3(%arg0: i32) -> (i32, i32) {
    %c0_i32 = arith.constant 0 : i32
    %c0_i32_0 = arith.constant 0 : i32
    return %arg0, %c0_i32 : i32, i32
  }
}

module attributes {stable_mosaic.version = 11 : i64} {
  func.func @kernel(%arg0: i32, %arg1: memref<128x128xbf16, #tpu.memory_space<vmem>>, %arg2: memref<128x128xbf16, #tpu.memory_space<vmem>>, %arg3: memref<1x128xf32, #tpu.memory_space<vmem>>, %arg4: memref<1x128xf32, #tpu.memory_space<vmem>>, %arg5: memref<128x128xf32, #tpu.memory_space<vmem>>) attributes {dimension_semantics = [#tpu.dimension_semantics<parallel>], iteration_bounds = array<i64: 1>, scalar_prefetch = 0 : i64, scratch_operands = 0 : i64, tpu.core_type = #tpu.core_type<tc>, window_params = [{transform_indices = @transform_0, window_bounds = array<i64: 128, 128>}, {pipeline_mode = #tpu.pipeline_mode<synchronous>, transform_indices = @transform_1, window_bounds = array<i64: 128, 128>}, {pipeline_mode = #tpu.pipeline_mode<synchronous>, transform_indices = @transform_2, window_bounds = array<i64: 1, 128>}, {pipeline_mode = #tpu.pipeline_mode<synchronous>, transform_indices = @transform_3, window_bounds = array<i64: 1, 128>}, {transform_indices = @transform_4, window_bounds = array<i64: 128, 128>}]} {
    %c0 = arith.constant 0 : index
    %c0_0 = arith.constant 0 : index
    %0 = vector.load %arg1[%c0, %c0_0] : memref<128x128xbf16, #tpu.memory_space<vmem>>, vector<128x128xbf16>
    %c0_1 = arith.constant 0 : index
    %c0_2 = arith.constant 0 : index
    %1 = vector.load %arg2[%c0_1, %c0_2] : memref<128x128xbf16, #tpu.memory_space<vmem>>, vector<128x128xbf16>
    %cst = arith.constant dense<0.000000e+00> : vector<128x128xf32>
    %2 = tpu.matmul %0, %1, %cst {dimension_numbers = #tpu.dot_dimension_numbers<[1], [0], [0], [1], [0, 0, 1, 1], [], []>} : vector<128x128xbf16>, vector<128x128xbf16>, vector<128x128xf32> -> vector<128x128xf32>
    %cst_3 = arith.constant dense<0.000000e+00> : vector<128xf32>
    %3 = vector.multi_reduction <add>, %2, %cst_3 [0] : vector<128x128xf32> to vector<128xf32>
    %4 = vector.shape_cast %3 : vector<128xf32> to vector<1x128xf32>
    %cst_4 = arith.constant 7.812500e-03 : f32
    %5 = vector.broadcast %cst_4 : f32 to vector<1x128xf32>
    %6 = arith.mulf %4, %5 : vector<1x128xf32>
    %7 = arith.mulf %2, %2 : vector<128x128xf32>
    %cst_5 = arith.constant dense<0.000000e+00> : vector<128xf32>
    %8 = vector.multi_reduction <add>, %7, %cst_5 [0] : vector<128x128xf32> to vector<128xf32>
    %9 = vector.shape_cast %8 : vector<128xf32> to vector<1x128xf32>
    %cst_6 = arith.constant 7.812500e-03 : f32
    %10 = vector.broadcast %cst_6 : f32 to vector<1x128xf32>
    %11 = arith.mulf %9, %10 : vector<1x128xf32>
    %12 = arith.mulf %6, %6 : vector<1x128xf32>
    %13 = arith.subf %11, %12 : vector<1x128xf32>
    %cst_7 = arith.constant 0.000000e+00 : f32
    %14 = vector.broadcast %cst_7 : f32 to vector<1x128xf32>
    %15 = arith.maximumf %13, %14 : vector<1x128xf32>
    %16 = vector.broadcast %6 : vector<1x128xf32> to vector<128x128xf32>
    %17 = arith.subf %2, %16 : vector<128x128xf32>
    %cst_8 = arith.constant 9.99999974E-6 : f32
    %18 = vector.broadcast %cst_8 : f32 to vector<1x128xf32>
    %19 = arith.addf %15, %18 : vector<1x128xf32>
    %20 = math.rsqrt %19 : vector<1x128xf32>
    %21 = vector.broadcast %20 : vector<1x128xf32> to vector<128x128xf32>
    %22 = arith.mulf %17, %21 : vector<128x128xf32>
    %c0_9 = arith.constant 0 : index
    %c0_10 = arith.constant 0 : index
    %23 = vector.load %arg3[%c0_9, %c0_10] : memref<1x128xf32, #tpu.memory_space<vmem>>, vector<1x128xf32>
    %24 = vector.broadcast %23 : vector<1x128xf32> to vector<128x128xf32>
    %25 = arith.mulf %22, %24 : vector<128x128xf32>
    %c0_11 = arith.constant 0 : index
    %c0_12 = arith.constant 0 : index
    %26 = vector.load %arg4[%c0_11, %c0_12] : memref<1x128xf32, #tpu.memory_space<vmem>>, vector<1x128xf32>
    %27 = vector.broadcast %26 : vector<1x128xf32> to vector<128x128xf32>
    %28 = arith.addf %25, %27 : vector<128x128xf32>
    %cst_13 = arith.constant 0.000000e+00 : f32
    %29 = vector.broadcast %cst_13 : f32 to vector<128x128xf32>
    %30 = arith.cmpf oge, %28, %29 : vector<128x128xf32>
    %cst_14 = arith.constant 2.500000e-01 : f32
    %31 = vector.broadcast %cst_14 : f32 to vector<128x128xf32>
    %32 = arith.mulf %31, %28 : vector<128x128xf32>
    %33 = arith.select %30, %28, %32 : vector<128x128xi1>, vector<128x128xf32>
    %c0_15 = arith.constant 0 : index
    %c0_16 = arith.constant 0 : index
    %34 = vector.load %arg5[%c0_15, %c0_16] : memref<128x128xf32, #tpu.memory_space<vmem>>, vector<128x128xf32>
    tpu.vector_store %arg5[%c0_15, %c0_16], %33 {strides = array<i32>} : memref<128x128xf32, #tpu.memory_space<vmem>>, vector<128x128xf32>,
    return
  }
  func.func @transform_0(%arg0: i32) -> (i32, i32) {
    %c0_i32 = arith.constant 0 : i32
    %c0_i32_0 = arith.constant 0 : i32
    return %arg0, %c0_i32 : i32, i32
  }
  func.func @transform_1(%arg0: i32) -> (i32, i32) {
    %c0_i32 = arith.constant 0 : i32
    %c0_i32_0 = arith.constant 0 : i32
    %c0_i32_1 = arith.constant 0 : i32
    return %c0_i32, %c0_i32_0 : i32, i32
  }
  func.func @transform_2(%arg0: i32) -> (i32, i32) {
    %c0_i32 = arith.constant 0 : i32
    %c0_i32_0 = arith.constant 0 : i32
    %c0_i32_1 = arith.constant 0 : i32
    return %c0_i32, %c0_i32_0 : i32, i32
  }
  func.func @transform_3(%arg0: i32) -> (i32, i32) {
    %c0_i32 = arith.constant 0 : i32
    %c0_i32_0 = arith.constant 0 : i32
    %c0_i32_1 = arith.constant 0 : i32
    return %c0_i32, %c0_i32_0 : i32, i32
  }
  func.func @transform_4(%arg0: i32) -> (i32, i32) {
    %c0_i32 = arith.constant 0 : i32
    %c0_i32_0 = arith.constant 0 : i32
    return %arg0, %c0_i32 : i32, i32
  }
}

module attributes {stable_mosaic.version = 11 : i64} {
  func.func @kernel(%arg0: i32, %arg1: memref<128x128xbf16, #tpu.memory_space<vmem>>, %arg2: memref<128x128xbf16, #tpu.memory_space<vmem>>, %arg3: memref<1x128xf32, #tpu.memory_space<vmem>>, %arg4: memref<1x128xf32, #tpu.memory_space<vmem>>, %arg5: memref<128x128xf32, #tpu.memory_space<vmem>>, %arg6: memref<128x128xf32, #tpu.memory_space<vmem>>) attributes {dimension_semantics = [#tpu.dimension_semantics<parallel>], iteration_bounds = array<i64: 1>, scalar_prefetch = 0 : i64, scratch_operands = 0 : i64, tpu.core_type = #tpu.core_type<tc>, window_params = [{transform_indices = @transform_0, window_bounds = array<i64: 128, 128>}, {pipeline_mode = #tpu.pipeline_mode<synchronous>, transform_indices = @transform_1, window_bounds = array<i64: 128, 128>}, {pipeline_mode = #tpu.pipeline_mode<synchronous>, transform_indices = @transform_2, window_bounds = array<i64: 1, 128>}, {pipeline_mode = #tpu.pipeline_mode<synchronous>, transform_indices = @transform_3, window_bounds = array<i64: 1, 128>}, {transform_indices = @transform_4, window_bounds = array<i64: 128, 128>}, {transform_indices = @transform_5, window_bounds = array<i64: 128, 128>}]} {
    %c0 = arith.constant 0 : index
    %c0_0 = arith.constant 0 : index
    %0 = vector.load %arg1[%c0, %c0_0] : memref<128x128xbf16, #tpu.memory_space<vmem>>, vector<128x128xbf16>
    %c0_1 = arith.constant 0 : index
    %c0_2 = arith.constant 0 : index
    %1 = vector.load %arg2[%c0_1, %c0_2] : memref<128x128xbf16, #tpu.memory_space<vmem>>, vector<128x128xbf16>
    %cst = arith.constant dense<0.000000e+00> : vector<128x128xf32>
    %2 = tpu.matmul %0, %1, %cst {dimension_numbers = #tpu.dot_dimension_numbers<[1], [0], [0], [1], [0, 0, 1, 1], [], []>} : vector<128x128xbf16>, vector<128x128xbf16>, vector<128x128xf32> -> vector<128x128xf32>
    %cst_3 = arith.constant dense<0.000000e+00> : vector<128xf32>
    %3 = vector.multi_reduction <add>, %2, %cst_3 [0] : vector<128x128xf32> to vector<128xf32>
    %4 = vector.shape_cast %3 : vector<128xf32> to vector<1x128xf32>
    %cst_4 = arith.constant 7.812500e-03 : f32
    %5 = vector.broadcast %cst_4 : f32 to vector<1x128xf32>
    %6 = arith.mulf %4, %5 : vector<1x128xf32>
    %7 = arith.mulf %2, %2 : vector<128x128xf32>
    %cst_5 = arith.constant dense<0.000000e+00> : vector<128xf32>
    %8 = vector.multi_reduction <add>, %7, %cst_5 [0] : vector<128x128xf32> to vector<128xf32>
    %9 = vector.shape_cast %8 : vector<128xf32> to vector<1x128xf32>
    %cst_6 = arith.constant 7.812500e-03 : f32
    %10 = vector.broadcast %cst_6 : f32 to vector<1x128xf32>
    %11 = arith.mulf %9, %10 : vector<1x128xf32>
    %12 = arith.mulf %6, %6 : vector<1x128xf32>
    %13 = arith.subf %11, %12 : vector<1x128xf32>
    %cst_7 = arith.constant 0.000000e+00 : f32
    %14 = vector.broadcast %cst_7 : f32 to vector<1x128xf32>
    %15 = arith.maximumf %13, %14 : vector<1x128xf32>
    %16 = vector.broadcast %6 : vector<1x128xf32> to vector<128x128xf32>
    %17 = arith.subf %2, %16 : vector<128x128xf32>
    %cst_8 = arith.constant 9.99999974E-6 : f32
    %18 = vector.broadcast %cst_8 : f32 to vector<1x128xf32>
    %19 = arith.addf %15, %18 : vector<1x128xf32>
    %20 = math.rsqrt %19 : vector<1x128xf32>
    %21 = vector.broadcast %20 : vector<1x128xf32> to vector<128x128xf32>
    %22 = arith.mulf %17, %21 : vector<128x128xf32>
    %c0_9 = arith.constant 0 : index
    %c0_10 = arith.constant 0 : index
    %23 = vector.load %arg3[%c0_9, %c0_10] : memref<1x128xf32, #tpu.memory_space<vmem>>, vector<1x128xf32>
    %24 = vector.broadcast %23 : vector<1x128xf32> to vector<128x128xf32>
    %25 = arith.mulf %22, %24 : vector<128x128xf32>
    %c0_11 = arith.constant 0 : index
    %c0_12 = arith.constant 0 : index
    %26 = vector.load %arg4[%c0_11, %c0_12] : memref<1x128xf32, #tpu.memory_space<vmem>>, vector<1x128xf32>
    %27 = vector.broadcast %26 : vector<1x128xf32> to vector<128x128xf32>
    %28 = arith.addf %25, %27 : vector<128x128xf32>
    %c0_13 = arith.constant 0 : index
    %c0_14 = arith.constant 0 : index
    %29 = vector.load %arg5[%c0_13, %c0_14] : memref<128x128xf32, #tpu.memory_space<vmem>>, vector<128x128xf32>
    %30 = arith.addf %28, %29 : vector<128x128xf32>
    %c0_15 = arith.constant 0 : index
    %c0_16 = arith.constant 0 : index
    %31 = vector.load %arg6[%c0_15, %c0_16] : memref<128x128xf32, #tpu.memory_space<vmem>>, vector<128x128xf32>
    tpu.vector_store %arg6[%c0_15, %c0_16], %30 {strides = array<i32>} : memref<128x128xf32, #tpu.memory_space<vmem>>, vector<128x128xf32>,
    return
  }
  func.func @transform_0(%arg0: i32) -> (i32, i32) {
    %c0_i32 = arith.constant 0 : i32
    %c0_i32_0 = arith.constant 0 : i32
    return %arg0, %c0_i32 : i32, i32
  }
  func.func @transform_1(%arg0: i32) -> (i32, i32) {
    %c0_i32 = arith.constant 0 : i32
    %c0_i32_0 = arith.constant 0 : i32
    %c0_i32_1 = arith.constant 0 : i32
    return %c0_i32, %c0_i32_0 : i32, i32
  }
  func.func @transform_2(%arg0: i32) -> (i32, i32) {
    %c0_i32 = arith.constant 0 : i32
    %c0_i32_0 = arith.constant 0 : i32
    %c0_i32_1 = arith.constant 0 : i32
    return %c0_i32, %c0_i32_0 : i32, i32
  }
  func.func @transform_3(%arg0: i32) -> (i32, i32) {
    %c0_i32 = arith.constant 0 : i32
    %c0_i32_0 = arith.constant 0 : i32
    %c0_i32_1 = arith.constant 0 : i32
    return %c0_i32, %c0_i32_0 : i32, i32
  }
  func.func @transform_4(%arg0: i32) -> (i32, i32) {
    %c0_i32 = arith.constant 0 : i32
    %c0_i32_0 = arith.constant 0 : i32
    return %arg0, %c0_i32 : i32, i32
  }
  func.func @transform_5(%arg0: i32) -> (i32, i32) {
    %c0_i32 = arith.constant 0 : i32
    %c0_i32_0 = arith.constant 0 : i32
    return %arg0, %c0_i32 : i32, i32
  }
}

module attributes {stable_mosaic.version = 11 : i64} {
  func.func @kernel(%arg0: i32, %arg1: memref<128x128xbf16, #tpu.memory_space<vmem>>, %arg2: memref<128x128xbf16, #tpu.memory_space<vmem>>, %arg3: memref<1x128xf32, #tpu.memory_space<vmem>>, %arg4: memref<128x128xf32, #tpu.memory_space<vmem>>) attributes {dimension_semantics = [#tpu.dimension_semantics<parallel>], iteration_bounds = array<i64: 1>, scalar_prefetch = 0 : i64, scratch_operands = 0 : i64, tpu.core_type = #tpu.core_type<tc>, window_params = [{transform_indices = @transform_0, window_bounds = array<i64: 128, 128>}, {pipeline_mode = #tpu.pipeline_mode<synchronous>, transform_indices = @transform_1, window_bounds = array<i64: 128, 128>}, {pipeline_mode = #tpu.pipeline_mode<synchronous>, transform_indices = @transform_2, window_bounds = array<i64: 1, 128>}, {transform_indices = @transform_3, window_bounds = array<i64: 128, 128>}]} {
    %c0 = arith.constant 0 : index
    %c0_0 = arith.constant 0 : index
    %0 = vector.load %arg1[%c0, %c0_0] : memref<128x128xbf16, #tpu.memory_space<vmem>>, vector<128x128xbf16>
    %c0_1 = arith.constant 0 : index
    %c0_2 = arith.constant 0 : index
    %1 = vector.load %arg2[%c0_1, %c0_2] : memref<128x128xbf16, #tpu.memory_space<vmem>>, vector<128x128xbf16>
    %cst = arith.constant dense<0.000000e+00> : vector<128x128xf32>
    %2 = tpu.matmul %0, %1, %cst {dimension_numbers = #tpu.dot_dimension_numbers<[1], [0], [0], [1], [0, 0, 1, 1], [], []>} : vector<128x128xbf16>, vector<128x128xbf16>, vector<128x128xf32> -> vector<128x128xf32>
    %c0_3 = arith.constant 0 : index
    %c0_4 = arith.constant 0 : index
    %3 = vector.load %arg3[%c0_3, %c0_4] : memref<1x128xf32, #tpu.memory_space<vmem>>, vector<1x128xf32>
    %4 = vector.broadcast %3 : vector<1x128xf32> to vector<128x128xf32>
    %5 = arith.addf %2, %4 : vector<128x128xf32>
    %cst_5 = arith.constant 0.000000e+00 : f32
    %6 = vector.broadcast %cst_5 : f32 to vector<128x128xf32>
    %7 = arith.cmpf oge, %5, %6 : vector<128x128xf32>
    %cst_6 = arith.constant 2.500000e-01 : f32
    %8 = vector.broadcast %cst_6 : f32 to vector<128x128xf32>
    %9 = arith.mulf %8, %5 : vector<128x128xf32>
    %10 = arith.select %7, %5, %9 : vector<128x128xi1>, vector<128x128xf32>
    %c0_7 = arith.constant 0 : index
    %c0_8 = arith.constant 0 : index
    %11 = vector.load %arg4[%c0_7, %c0_8] : memref<128x128xf32, #tpu.memory_space<vmem>>, vector<128x128xf32>
    tpu.vector_store %arg4[%c0_7, %c0_8], %10 {strides = array<i32>} : memref<128x128xf32, #tpu.memory_space<vmem>>, vector<128x128xf32>,
    return
  }
  func.func @transform_0(%arg0: i32) -> (i32, i32) {
    %c0_i32 = arith.constant 0 : i32
    %c0_i32_0 = arith.constant 0 : i32
    return %arg0, %c0_i32 : i32, i32
  }
  func.func @transform_1(%arg0: i32) -> (i32, i32) {
    %c0_i32 = arith.constant 0 : i32
    %c0_i32_0 = arith.constant 0 : i32
    %c0_i32_1 = arith.constant 0 : i32
    return %c0_i32, %c0_i32_0 : i32, i32
  }
  func.func @transform_2(%arg0: i32) -> (i32, i32) {
    %c0_i32 = arith.constant 0 : i32
    %c0_i32_0 = arith.constant 0 : i32
    %c0_i32_1 = arith.constant 0 : i32
    return %c0_i32, %c0_i32_0 : i32, i32
  }
  func.func @transform_3(%arg0: i32) -> (i32, i32) {
    %c0_i32 = arith.constant 0 : i32
    %c0_i32_0 = arith.constant 0 : i32
    return %arg0, %c0_i32 : i32, i32
  }
}

module attributes {stable_mosaic.version = 11 : i64} {
  func.func @kernel(%arg0: i32, %arg1: memref<512x128xbf16, #tpu.memory_space<vmem>>, %arg2: memref<128x128xbf16, #tpu.memory_space<vmem>>, %arg3: memref<1x128xf32, #tpu.memory_space<vmem>>, %arg4: memref<512x128xf32, #tpu.memory_space<vmem>>) attributes {dimension_semantics = [#tpu.dimension_semantics<parallel>], iteration_bounds = array<i64: 1>, scalar_prefetch = 0 : i64, scratch_operands = 0 : i64, tpu.core_type = #tpu.core_type<tc>, window_params = [{transform_indices = @transform_0, window_bounds = array<i64: 512, 128>}, {pipeline_mode = #tpu.pipeline_mode<synchronous>, transform_indices = @transform_1, window_bounds = array<i64: 128, 128>}, {pipeline_mode = #tpu.pipeline_mode<synchronous>, transform_indices = @transform_2, window_bounds = array<i64: 1, 128>}, {transform_indices = @transform_3, window_bounds = array<i64: 512, 128>}]} {
    %c0 = arith.constant 0 : index
    %c0_0 = arith.constant 0 : index
    %0 = vector.load %arg1[%c0, %c0_0] : memref<512x128xbf16, #tpu.memory_space<vmem>>, vector<512x128xbf16>
    %c0_1 = arith.constant 0 : index
    %c0_2 = arith.constant 0 : index
    %1 = vector.load %arg2[%c0_1, %c0_2] : memref<128x128xbf16, #tpu.memory_space<vmem>>, vector<128x128xbf16>
    %cst = arith.constant dense<0.000000e+00> : vector<512x128xf32>
    %2 = tpu.matmul %0, %1, %cst {dimension_numbers = #tpu.dot_dimension_numbers<[1], [0], [0], [1], [0, 0, 1, 1], [], []>} : vector<512x128xbf16>, vector<128x128xbf16>, vector<512x128xf32> -> vector<512x128xf32>
    %c0_3 = arith.constant 0 : index
    %c0_4 = arith.constant 0 : index
    %3 = vector.load %arg3[%c0_3, %c0_4] : memref<1x128xf32, #tpu.memory_space<vmem>>, vector<1x128xf32>
    %4 = vector.broadcast %3 : vector<1x128xf32> to vector<512x128xf32>
    %5 = arith.addf %2, %4 : vector<512x128xf32>
    %cst_5 = arith.constant 0.000000e+00 : f32
    %6 = vector.broadcast %cst_5 : f32 to vector<512x128xf32>
    %7 = arith.cmpf oge, %5, %6 : vector<512x128xf32>
    %cst_6 = arith.constant 2.500000e-01 : f32
    %8 = vector.broadcast %cst_6 : f32 to vector<512x128xf32>
    %9 = arith.mulf %8, %5 : vector<512x128xf32>
    %10 = arith.select %7, %5, %9 : vector<512x128xi1>, vector<512x128xf32>
    %c0_7 = arith.constant 0 : index
    %c0_8 = arith.constant 0 : index
    %11 = vector.load %arg4[%c0_7, %c0_8] : memref<512x128xf32, #tpu.memory_space<vmem>>, vector<512x128xf32>
    tpu.vector_store %arg4[%c0_7, %c0_8], %10 {strides = array<i32>} : memref<512x128xf32, #tpu.memory_space<vmem>>, vector<512x128xf32>,
    return
  }
  func.func @transform_0(%arg0: i32) -> (i32, i32) {
    %c0_i32 = arith.constant 0 : i32
    %c0_i32_0 = arith.constant 0 : i32
    return %arg0, %c0_i32 : i32, i32
  }
  func.func @transform_1(%arg0: i32) -> (i32, i32) {
    %c0_i32 = arith.constant 0 : i32
    %c0_i32_0 = arith.constant 0 : i32
    %c0_i32_1 = arith.constant 0 : i32
    return %c0_i32, %c0_i32_0 : i32, i32
  }
  func.func @transform_2(%arg0: i32) -> (i32, i32) {
    %c0_i32 = arith.constant 0 : i32
    %c0_i32_0 = arith.constant 0 : i32
    %c0_i32_1 = arith.constant 0 : i32
    return %c0_i32, %c0_i32_0 : i32, i32
  }
  func.func @transform_3(%arg0: i32) -> (i32, i32) {
    %c0_i32 = arith.constant 0 : i32
    %c0_i32_0 = arith.constant 0 : i32
    return %arg0, %c0_i32 : i32, i32
  }
}

module attributes {stable_mosaic.version = 11 : i64} {
  func.func @kernel(%arg0: i32, %arg1: memref<512x768xbf16, #tpu.memory_space<vmem>>, %arg2: memref<768x128xbf16, #tpu.memory_space<vmem>>, %arg3: memref<1x128xf32, #tpu.memory_space<vmem>>, %arg4: memref<512x128xf32, #tpu.memory_space<vmem>>) attributes {dimension_semantics = [#tpu.dimension_semantics<parallel>], iteration_bounds = array<i64: 4>, scalar_prefetch = 0 : i64, scratch_operands = 0 : i64, tpu.core_type = #tpu.core_type<tc>, window_params = [{transform_indices = @transform_0, window_bounds = array<i64: 512, 768>}, {pipeline_mode = #tpu.pipeline_mode<synchronous>, transform_indices = @transform_1, window_bounds = array<i64: 768, 128>}, {pipeline_mode = #tpu.pipeline_mode<synchronous>, transform_indices = @transform_2, window_bounds = array<i64: 1, 128>}, {transform_indices = @transform_3, window_bounds = array<i64: 512, 128>}]} {
    %c0 = arith.constant 0 : index
    %c0_0 = arith.constant 0 : index
    %0 = vector.load %arg1[%c0, %c0_0] : memref<512x768xbf16, #tpu.memory_space<vmem>>, vector<512x768xbf16>
    %c0_1 = arith.constant 0 : index
    %c0_2 = arith.constant 0 : index
    %1 = vector.load %arg2[%c0_1, %c0_2] : memref<768x128xbf16, #tpu.memory_space<vmem>>, vector<768x128xbf16>
    %cst = arith.constant dense<0.000000e+00> : vector<512x128xf32>
    %2 = tpu.matmul %0, %1, %cst {dimension_numbers = #tpu.dot_dimension_numbers<[1], [0], [0], [1], [0, 0, 1, 1], [], []>} : vector<512x768xbf16>, vector<768x128xbf16>, vector<512x128xf32> -> vector<512x128xf32>
    %c0_3 = arith.constant 0 : index
    %c0_4 = arith.constant 0 : index
    %3 = vector.load %arg3[%c0_3, %c0_4] : memref<1x128xf32, #tpu.memory_space<vmem>>, vector<1x128xf32>
    %4 = vector.broadcast %3 : vector<1x128xf32> to vector<512x128xf32>
    %5 = arith.addf %2, %4 : vector<512x128xf32>
    %cst_5 = arith.constant 0.000000e+00 : f32
    %6 = vector.broadcast %cst_5 : f32 to vector<512x128xf32>
    %7 = arith.cmpf oge, %5, %6 : vector<512x128xf32>
    %cst_6 = arith.constant 2.500000e-01 : f32
    %8 = vector.broadcast %cst_6 : f32 to vector<512x128xf32>
    %9 = arith.mulf %8, %5 : vector<512x128xf32>
    %10 = arith.select %7, %5, %9 : vector<512x128xi1>, vector<512x128xf32>
    %11 = math.tanh %10 : vector<512x128xf32>
    %c0_7 = arith.constant 0 : index
    %c0_8 = arith.constant 0 : index
    %12 = vector.load %arg4[%c0_7, %c0_8] : memref<512x128xf32, #tpu.memory_space<vmem>>, vector<512x128xf32>
    tpu.vector_store %arg4[%c0_7, %c0_8], %11 {strides = array<i32>} : memref<512x128xf32, #tpu.memory_space<vmem>>, vector<512x128xf32>,
    return
  }
  func.func @transform_0(%arg0: i32) -> (i32, i32) {
    %c0_i32 = arith.constant 0 : i32
    %c0_i32_0 = arith.constant 0 : i32
    return %arg0, %c0_i32 : i32, i32
  }
  func.func @transform_1(%arg0: i32) -> (i32, i32) {
    %c0_i32 = arith.constant 0 : i32
    %c0_i32_0 = arith.constant 0 : i32
    %c0_i32_1 = arith.constant 0 : i32
    return %c0_i32, %c0_i32_0 : i32, i32
  }
  func.func @transform_2(%arg0: i32) -> (i32, i32) {
    %c0_i32 = arith.constant 0 : i32
    %c0_i32_0 = arith.constant 0 : i32
    %c0_i32_1 = arith.constant 0 : i32
    return %c0_i32, %c0_i32_0 : i32, i32
  }
  func.func @transform_3(%arg0: i32) -> (i32, i32) {
    %c0_i32 = arith.constant 0 : i32
    %c0_i32_0 = arith.constant 0 : i32
    return %arg0, %c0_i32 : i32, i32
  }
}

</mosaic_0001>

<bundles_post_ra>
// kernel: srgan_forward.38
= control target key start
LH: loop header
LB: loop body
LE: loop exit
PB: predicated region body
PF: predicated region fallthrough
CT: control target
= control target key end

     0   :  { %s761_s1 = inlined_call_operand.vmem [shape: bf16[128,128], index: 1, kind: input, shape index: {}]   ;;  %s762_s0 = inlined_call_operand.vmem [shape: bf16[128,128], index: 0, kind: input, shape index: {}]   ;;  %s763_s2 = inlined_call_operand.vmem [shape: f32[1,128], index: 2, kind: input, shape index: {}]   ;;  %s764_s3 = inlined_call_operand.vmem [shape: f32[1,128], index: 3, kind: input, shape index: {}]   ;;  %s765_s4 = inlined_call_operand.vmem [shape: f32[128,128], index: 4, kind: output, shape index: {}]  }
   0x1   :  { %v487_v0 = vld [vmem:[%s761_s1 + $0x38] sm:$0xff]  ;;  %v486_v1 = vld [vmem:[%s761_s1 + $0x30] sm:$0xff]  ;;  %v485_v2 = vld [vmem:[%s761_s1 + $0x28] sm:$0xff] }
   0x2   :  { %145 = vmatpush.bf16.msra.mxu0 %v487_v0  ;;  %488 = vmatpush.bf16.msra.mxu1 %v487_v0  ;;  %v484_v3 = vld [vmem:[%s761_s1 + $0x20] sm:$0xff]  ;;  %v483_v4 = vld [vmem:[%s761_s1 + $0x18] sm:$0xff]  ;;  %v482_v5 = vld [vmem:[%s761_s1 + $0x10] sm:$0xff] }
   0x3   :  { %489 = vmatpush.bf16.msra.mxu2 %v487_v0  ;;  %490 = vmatpush.bf16.msra.mxu3 %v487_v0  ;;  %v481_v6 = vld [vmem:[%s761_s1 + $0x8] sm:$0xff]  ;;  %v480_v7 = vld [vmem:[%s761_s1] sm:$0xff]  ;;  %v474_v9 = vld [vmem:[%s762_s0 + $0x10] sm:$0xff] }
   0x4   :  { %v472_v8 = vld [vmem:[%s762_s0] sm:$0xff]  ;;  %v478_v11 = vld [vmem:[%s762_s0 + $0x30] sm:$0xff]  ;;  %v473_v12 = vld [vmem:[%s762_s0 + $0x8] sm:$0xff] }
   0x5   :  { %v476_v10 = vld [vmem:[%s762_s0 + $0x20] sm:$0xff]  ;;  %v475_v13 = vld [vmem:[%s762_s0 + $0x18] sm:$0xff]  ;;  %v477_v14 = vld [vmem:[%s762_s0 + $0x28] sm:$0xff] }
   0x6   :  { %146 = vmatpush.bf16.msra.mxu0 %v486_v1  ;;  %491 = vmatpush.bf16.msra.mxu1 %v486_v1  ;;  %v479_v15 = vld [vmem:[%s762_s0 + $0x38] sm:$0xff] }
   0x7   :  { %492 = vmatpush.bf16.msra.mxu2 %v486_v1  ;;  %493 = vmatpush.bf16.msra.mxu3 %v486_v1 }
   0xa   :  { %147 = vmatpush.bf16.msra.mxu0 %v485_v2  ;;  %494 = vmatpush.bf16.msra.mxu1 %v485_v2 }
   0xb   :  { %495 = vmatpush.bf16.msra.mxu2 %v485_v2  ;;  %496 = vmatpush.bf16.msra.mxu3 %v485_v2 }
   0xe   :  { %148 = vmatpush.bf16.msra.mxu0 %v484_v3  ;;  %497 = vmatpush.bf16.msra.mxu1 %v484_v3 }
   0xf   :  { %498 = vmatpush.bf16.msra.mxu2 %v484_v3  ;;  %499 = vmatpush.bf16.msra.mxu3 %v484_v3 }
  0x12   :  { %149 = vmatpush.bf16.msra.mxu0 %v483_v4  ;;  %500 = vmatpush.bf16.msra.mxu1 %v483_v4 }
  0x13   :  { %501 = vmatpush.bf16.msra.mxu2 %v483_v4  ;;  %502 = vmatpush.bf16.msra.mxu3 %v483_v4 }
  0x16   :  { %150 = vmatpush.bf16.msra.mxu0 %v482_v5  ;;  %503 = vmatpush.bf16.msra.mxu1 %v482_v5 }
  0x17   :  { %504 = vmatpush.bf16.msra.mxu2 %v482_v5  ;;  %505 = vmatpush.bf16.msra.mxu3 %v482_v5 }
  0x1a   :  { %151 = vmatpush.bf16.msra.mxu0 %v481_v6  ;;  %506 = vmatpush.bf16.msra.mxu1 %v481_v6 }
  0x1b   :  { %507 = vmatpush.bf16.msra.mxu2 %v481_v6  ;;  %508 = vmatpush.bf16.msra.mxu3 %v481_v6 }
  0x1e   :  { %152 = vmatpush.bf16.msra.mxu0 %v480_v7  ;;  %509 = vmatpush.bf16.msra.mxu1 %v480_v7 }
  0x1f   :  { %510 = vmatpush.bf16.msra.mxu2 %v480_v7  ;;  %511 = vmatpush.bf16.msra.mxu3 %v480_v7 }
  0x21   :  { %153 = vmatmul.bf16.vlgmr.msra.gmra.mxu0 %v472_v8  ;;  %163 = vmatmul.bf16.vlgmr.msra.gmra.mxu1 %v474_v9 }
  0x22   :  { %173 = vmatmul.bf16.vlgmr.msra.gmra.mxu2 %v476_v10  ;;  %183 = vmatmul.bf16.vlgmr.msra.gmra.mxu3 %v478_v11 }
  0x31   :  { %158 = vmatmul.bf16.gmra.mxu0 %v473_v12  ;;  %168 = vmatmul.bf16.gmra.mxu1 %v475_v13 }
  0x32   :  { %178 = vmatmul.bf16.gmra.mxu2 %v477_v14  ;;  %188 = vmatmul.bf16.gmra.mxu3 %v479_v15 }
  0x9e   :  { %v589_v16 = vpop.f32.mrf.mxu0  ;;  %v591_v17 = vpop.f32.mrf.mxu1 }
  0x9f   :  { %v216_v26 = vmul.f32 %v589_v16, %v589_v16  ;;  %v220_v36 = vmul.f32 %v591_v17, %v591_v17 }
  0xa5   :  { %v595_v19 = vpop.f32.mrf.mxu2  ;;  %v601_v22 = vpop.f32.mrf.mxu3 }
  0xa6   :  { %v593_v18 = vpop.f32.mrf.mxu0  ;;  %v597_v20 = vpop.f32.mrf.mxu1  ;;  %v224_v50 = vmul.f32 %v595_v19, %v595_v19  ;;  %v228_v0 = vmul.f32 %v601_v22, %v601_v22 }
  0xa7   :  { %v217_v24 = vmul.f32 %v593_v18, %v593_v18  ;;  %v194_v27 = vadd.f32 %v593_v18, %v589_v16  ;;  %v221_v40 = vmul.f32 %v597_v20, %v597_v20 }
  0xa9   :  { %v232_v29 = vadd.f32 %v217_v24, %v216_v26 }
  0xad   :  { %v603_v23 = vpop.f32.mrf.mxu2  ;;  %v621_v35 = vpop.f32.mrf.mxu3 }
  0xae   :  { %v599_v21 = vpop.f32.mrf.mxu0  ;;  %v607_v25 = vpop.f32.mrf.mxu1  ;;  %v225_v54 = vmul.f32 %v603_v23, %v603_v23  ;;  %v229_v3 = vmul.f32 %v621_v35, %v621_v35 }
  0xaf   :  { %v218_v28 = vmul.f32 %v599_v21, %v599_v21  ;;  %v195_v30 = vadd.f32 %v194_v27, %v599_v21  ;;  %v222_v44 = vmul.f32 %v607_v25, %v607_v25 }
  0xb1   :  { %v233_v32 = vadd.f32 %v232_v29, %v218_v28 }
  0xb5   :  { %v626_v39 = vpop.f32.mrf.mxu2  ;;  %v642_v53 = vpop.f32.mrf.mxu3 }
  0xb6   :  { %v616_v31 = vpop.f32.mrf.mxu0  ;;  %v631_v43 = vpop.f32.mrf.mxu1  ;;  %v226_v59 = vmul.f32 %v626_v39, %v626_v39  ;;  %v230_v8 = vmul.f32 %v642_v53, %v642_v53 }
  0xb7   :  { %v196_v33 = vadd.f32 %v195_v30, %v616_v31  ;;  %v219_v34 = vmul.f32 %v616_v31, %v616_v31  ;;  %v223_v48 = vmul.f32 %v631_v43, %v631_v43 }
  0xb9   :  { %v197_v37 = vadd.f32 %v196_v33, %v591_v17  ;;  %v234_v38 = vadd.f32 %v233_v32, %v219_v34 }
  0xbb   :  { %v235_v41 = vadd.f32 %v234_v38, %v220_v36  ;;  %v198_v42 = vadd.f32 %v197_v37, %v597_v20 }
  0xbd   :  { %v199_v45 = vadd.f32 %v198_v42, %v607_v25  ;;  %v236_v46 = vadd.f32 %v235_v41, %v221_v40  ;;  %v647_v57 = vpop.f32.mrf.mxu2  ;;  %v661_v6 = vpop.f32.mrf.mxu3 }
  0xbe   :  { %v227_v63 = vmul.f32 %v647_v57, %v647_v57  ;;  %v231_v12 = vmul.f32 %v661_v6, %v661_v6 }
  0xbf   :  { %v200_v47 = vadd.f32 %v199_v45, %v631_v43  ;;  %v237_v49 = vadd.f32 %v236_v46, %v222_v44 }
  0xc1   :  { %v201_v51 = vadd.f32 %v200_v47, %v595_v19  ;;  %v238_v52 = vadd.f32 %v237_v49, %v223_v48 }
  0xc3   :  { %v239_v55 = vadd.f32 %v238_v52, %v224_v50  ;;  %v202_v56 = vadd.f32 %v201_v51, %v603_v23 }
  0xc5   :  { %v203_v58 = vadd.f32 %v202_v56, %v626_v39  ;;  %v240_v60 = vadd.f32 %v239_v55, %v225_v54 }
  0xc7   :  { %v241_v61 = vadd.f32 %v240_v60, %v226_v59  ;;  %v204_v62 = vadd.f32 %v203_v58, %v647_v57 }
  0xc9   :  { %v205_v1 = vadd.f32 %v204_v62, %v601_v22  ;;  %v242_v2 = vadd.f32 %v241_v61, %v227_v63 }
  0xcb   :  { %v243_v4 = vadd.f32 %v242_v2, %v228_v0  ;;  %v206_v5 = vadd.f32 %v205_v1, %v621_v35 }
  0xcd   :  { %v207_v7 = vadd.f32 %v206_v5, %v642_v53  ;;  %v244_v9 = vadd.f32 %v243_v4, %v229_v3 }
  0xcf   :  { %v245_v10 = vadd.f32 %v244_v9, %v230_v8  ;;  %v208_v11 = vadd.f32 %v207_v7, %v661_v6 }
  0xd1   :  { %v209_v13 = vrot.slane %v208_v11, 4  ;;  %v246_v14 = vadd.f32 %v245_v10, %v231_v12 }
  0xd3   :  { %v210_v15 = vadd.f32 %v209_v13, %v208_v11  ;;  %v247_v24 = vrot.slane %v246_v14, 4 }
  0xd5   :  { %v211_v26 = vrot.slane %v210_v15, 2  ;;  %v248_v27 = vadd.f32 %v247_v24, %v246_v14 }
  0xd7   :  { %v212_v28 = vadd.f32 %v211_v26, %v210_v15  ;;  %v249_v29 = vrot.slane %v248_v27, 2 }
  0xd9   :  { %v213_v30 = vrot.slane %v212_v28, 1  ;;  %v250_v32 = vadd.f32 %v249_v29, %v248_v27 }
  0xdb   :  { %v214_v33 = vadd.f32 %v213_v30, %v212_v28  ;;  %v251_v34 = vrot.slane %v250_v32, 1 }
  0xdd   :  { %v215_v36 = vmul.f32 0.0078125, %v214_v33  ;;  %v252_v37 = vadd.f32 %v251_v34, %v250_v32 }
  0xdf   :  { %v253_v38 = vmul.f32 0.0078125, %v252_v37  ;;  %v254_v40 = vmul.f32 %v215_v36, %v215_v36  ;;  %v257_v52 = vsub.f32 %v589_v16, %v215_v36  ;;  %v258_v54 = vsub.f32 %v593_v18, %v215_v36  ;;  %v512_v16 = vld [vmem:[%s763_s2] ss:$0 sm:$0xff] }
  0xe0   :  { %v259_v55 = vsub.f32 %v599_v21, %v215_v36  ;;  %v260_v56 = vsub.f32 %v616_v31, %v215_v36  ;;  %v261_v58 = vsub.f32 %v591_v17, %v215_v36  ;;  %v262_v59 = vsub.f32 %v597_v20, %v215_v36 }
  0xe1   :  { %v255_v41 = vsub.f32 %v253_v38, %v254_v40  ;;  %v263_v60 = vsub.f32 %v607_v25, %v215_v36  ;;  %v264_v61 = vsub.f32 %v631_v43, %v215_v36  ;;  %v265_v18 = vsub.f32 %v595_v19, %v215_v36 }
  0xe2   :  { %v266_v21 = vsub.f32 %v603_v23, %v215_v36  ;;  %v267_v31 = vsub.f32 %v626_v39, %v215_v36  ;;  %v268_v20 = vsub.f32 %v647_v57, %v215_v36  ;;  %v269_v25 = vsub.f32 %v601_v22, %v215_v36  ;;  %v691_v39 = vld [vmem:[%s764_s3] ss:$0 sm:$0xff] }
  0xe3   :  { %v256_v42 = vmax.f32 %v255_v41, 0.0  ;;  %v270_v43 = vsub.f32 %v621_v35, %v215_v36  ;;  %v271_v2 = vsub.f32 %v642_v53, %v215_v36  ;;  %v272_v3 = vsub.f32 %v661_v6, %v215_v36 }
  0xe5   :  { %v273_v44 = vadd.f32 1e-05, %v256_v42 }
  0xe7   :  { %514 = vrsqrt.f32 %v273_v44  ;;  %vm280_vm1 = vweird.f32 %v273_v44 }
  0xed   :  { %v515_v45 = vpop.eup %514 }
  0xee   :  { %v275_v46 = vmul.f32 %v515_v45, %v273_v44  ;;  %vm281_vm0 = vweird.f32 %v515_v45 }
  0xef   :  { %vm282_vm2 = vmor %vm280_vm1, %vm281_vm0 }
  0xf0   :  { %v276_v47 = vmul.f32 %v515_v45, %v275_v46 }
  0xf2   :  { %v277_v48 = vmul.f32 0.5, %v276_v47 }
  0xf4   :  { %v278_v49 = vsub.f32 1.5, %v277_v48 }
  0xf6   :  { %v279_v50 = vmul.f32 %v515_v45, %v278_v49 }
  0xf8   :  { %v283_v51 = vsel %vm282_vm2, %v515_v45, %v279_v50 }
  0xf9   :  { %v284_v62 = vmul.f32 %v283_v51, %v257_v52  ;;  %v285_v63 = vmul.f32 %v283_v51, %v258_v54  ;;  %v286_v0 = vmul.f32 %v283_v51, %v259_v55  ;;  %v287_v17 = vmul.f32 %v283_v51, %v260_v56 }
  0xfa   :  { %v288_v1 = vmul.f32 %v283_v51, %v261_v58  ;;  %v289_v4 = vmul.f32 %v283_v51, %v262_v59  ;;  %v290_v5 = vmul.f32 %v283_v51, %v263_v60  ;;  %v291_v7 = vmul.f32 %v283_v51, %v264_v61 }
  0xfb   :  { %v304_v19 = vmul.f32 %v512_v16, %v284_v62  ;;  %v305_v8 = vmul.f32 %v512_v16, %v285_v63  ;;  %v306_v23 = vmul.f32 %v512_v16, %v286_v0  ;;  %v292_v57 = vmul.f32 %v283_v51, %v265_v18 }
  0xfc   :  { %v293_v22 = vmul.f32 %v283_v51, %v266_v21  ;;  %v294_v9 = vmul.f32 %v283_v51, %v267_v31  ;;  %v307_v35 = vmul.f32 %v512_v16, %v287_v17  ;;  %v295_v10 = vmul.f32 %v283_v51, %v268_v20 }
  0xfd   :  { %v296_v11 = vmul.f32 %v283_v51, %v269_v25  ;;  %v297_v53 = vmul.f32 %v283_v51, %v270_v43  ;;  %v308_v12 = vmul.f32 %v512_v16, %v288_v1  ;;  %v298_v6 = vmul.f32 %v283_v51, %v271_v2 }
  0xfe   :  { %v299_v13 = vmul.f32 %v283_v51, %v272_v3  ;;  %v309_v14 = vmul.f32 %v512_v16, %v289_v4  ;;  %v310_v15 = vmul.f32 %v512_v16, %v290_v5  ;;  %v311_v24 = vmul.f32 %v512_v16, %v291_v7 }
  0xff   :  { %v324_v26 = vadd.f32 %v691_v39, %v304_v19  ;;  %v325_v27 = vadd.f32 %v691_v39, %v305_v8  ;;  %v326_v28 = vadd.f32 %v691_v39, %v306_v23  ;;  %v312_v29 = vmul.f32 %v512_v16, %v292_v57 }
 0x100   :  { %v313_v30 = vmul.f32 %v512_v16, %v293_v22  ;;  %v314_v32 = vmul.f32 %v512_v16, %v294_v9  ;;  %v327_v33 = vadd.f32 %v691_v39, %v307_v35  ;;  %v315_v34 = vmul.f32 %v512_v16, %v295_v10 }
 0x101   :  { %v316_v36 = vmul.f32 %v512_v16, %v296_v11  ;;  %v317_v37 = vmul.f32 %v512_v16, %v297_v53  ;;  %v328_v38 = vadd.f32 %v691_v39, %v308_v12  ;;  %v318_v40 = vmul.f32 %v512_v16, %v298_v6 }
 0x102   :  { %v319_v41 = vmul.f32 %v512_v16, %v299_v13  ;;  %v329_v42 = vadd.f32 %v691_v39, %v309_v14  ;;  %v330_v44 = vadd.f32 %v691_v39, %v310_v15  ;;  %v331_v45 = vadd.f32 %v691_v39, %v311_v24 }
 0x103   :  { %v356_v46 = vmul.f32 0.25, %v324_v26  ;;  %v357_v47 = vmul.f32 0.25, %v325_v27  ;;  %v358_v48 = vmul.f32 0.25, %v326_v28  ;;  %vm340_vm3 = vcmp.ge.f32.partialorder %v324_v26, 0.0 }
 0x104   :  { %vm341_vm4 = vcmp.ge.f32.partialorder %v325_v27, 0.0  ;;  %vm342_vm5 = vcmp.ge.f32.partialorder %v326_v28, 0.0  ;;  %v359_v49 = vmul.f32 0.25, %v327_v33  ;;  %v332_v50 = vadd.f32 %v691_v39, %v312_v29 }
 0x105   :  { %v333_v51 = vadd.f32 %v691_v39, %v313_v30  ;;  %vm343_vm6 = vcmp.ge.f32.partialorder %v327_v33, 0.0  ;;  %v360_v52 = vmul.f32 0.25, %v328_v38  ;;  %v334_v54 = vadd.f32 %v691_v39, %v314_v32 }
 0x106   :  { %vm344_vm7 = vcmp.ge.f32.partialorder %v328_v38, 0.0  ;;  %vm345_vm8 = vcmp.ge.f32.partialorder %v329_v42, 0.0  ;;  %v361_v55 = vmul.f32 0.25, %v329_v42  ;;  %v362_v56 = vmul.f32 0.25, %v330_v44 }
 0x107   :  { %v372_v58 = vsel %vm340_vm3, %v324_v26, %v356_v46  ;;  %v373_v59 = vsel %vm341_vm4, %v325_v27, %v357_v47  ;;  %v374_v60 = vsel %vm342_vm5, %v326_v28, %v358_v48  ;;  %v335_v61 = vadd.f32 %v691_v39, %v315_v34 }
 0x108   :  { %vm346_vm9 = vcmp.ge.f32.partialorder %v330_v44, 0.0  ;;  %v363_v62 = vmul.f32 0.25, %v331_v45  ;;  %v375_v63 = vsel %vm343_vm6, %v327_v33, %v359_v49  ;;  %388 = vst [vmem:[%s765_s4] sm:$0xff] %v372_v58  ;;  %v336_v0 = vadd.f32 %v691_v39, %v316_v36 }
 0x109   :  { %vm347_vm10 = vcmp.ge.f32.partialorder %v331_v45, 0.0  ;;  %v364_v16 = vmul.f32 0.25, %v332_v50  ;;  %v376_v18 = vsel %vm344_vm7, %v328_v38, %v360_v52  ;;  %389 = vst [vmem:[%s765_s4 + $0x8] sm:$0xff] %v373_v59  ;;  %v337_v21 = vadd.f32 %v691_v39, %v317_v37 }
 0x10a   :  { %vm348_vm11 = vcmp.ge.f32.partialorder %v332_v50, 0.0  ;;  %v365_v31 = vmul.f32 0.25, %v333_v51  ;;  %v377_v17 = vsel %vm345_vm8, %v329_v42, %v361_v55  ;;  %390 = vst [vmem:[%s765_s4 + $0x10] sm:$0xff] %v374_v60  ;;  %v338_v20 = vadd.f32 %v691_v39, %v318_v40 }
 0x10b   :  { %vm349_vm12 = vcmp.ge.f32.partialorder %v333_v51, 0.0  ;;  %v366_v25 = vmul.f32 0.25, %v334_v54  ;;  %v378_v43 = vsel %vm346_vm9, %v330_v44, %v362_v56  ;;  %391 = vst [vmem:[%s765_s4 + $0x18] sm:$0xff] %v375_v63  ;;  %v339_v1 = vadd.f32 %v691_v39, %v319_v41 }
 0x10c   :  { %vm350_vm13 = vcmp.ge.f32.partialorder %v334_v54, 0.0  ;;  %v367_v2 = vmul.f32 0.25, %v335_v61  ;;  %v379_v3 = vsel %vm347_vm10, %v331_v45, %v363_v62  ;;  %392 = vst [vmem:[%s765_s4 + $0x20] sm:$0xff] %v376_v18  ;;  %vm351_vm14 = vcmp.ge.f32.partialorder %v335_v61, 0.0 }
 0x10d   :  { %v368_v4 = vmul.f32 0.25, %v336_v0  ;;  %v380_v5 = vsel %vm348_vm11, %v332_v50, %v364_v16  ;;  %393 = vst [vmem:[%s765_s4 + $0x28] sm:$0xff] %v377_v17  ;;  %vm352_vm15 = vcmp.ge.f32.partialorder %v336_v0, 0.0  ;;  %v369_v7 = vmul.f32 0.25, %v337_v21 }
 0x10e   :  { %v381_v19 = vsel %vm349_vm12, %v333_v51, %v365_v31  ;;  %394 = vst [vmem:[%s765_s4 + $0x30] sm:$0xff] %v378_v43  ;;  %vm353_vm0 = vcmp.ge.f32.partialorder %v337_v21, 0.0  ;;  %v370_v8 = vmul.f32 0.25, %v338_v20  ;;  %v382_v23 = vsel %vm350_vm13, %v334_v54, %v366_v25 }
 0x10f   :  { %395 = vst [vmem:[%s765_s4 + $0x38] sm:$0xff] %v379_v3  ;;  %vm354_vm1 = vcmp.ge.f32.partialorder %v338_v20, 0.0  ;;  %v371_v39 = vmul.f32 0.25, %v339_v1  ;;  %v383_v57 = vsel %vm351_vm14, %v335_v61, %v367_v2  ;;  %vm355_vm2 = vcmp.ge.f32.partialorder %v339_v1, 0.0 }
 0x110   :  { %396 = vst [vmem:[%s765_s4 + $0x40] sm:$0xff] %v380_v5  ;;  %v384_v22 = vsel %vm352_vm15, %v336_v0, %v368_v4  ;;  %v385_v9 = vsel %vm353_vm0, %v337_v21, %v369_v7  ;;  %v386_v35 = vsel %vm354_vm1, %v338_v20, %v370_v8 }
 0x111   :  { %397 = vst [vmem:[%s765_s4 + $0x48] sm:$0xff] %v381_v19  ;;  %v387_v10 = vsel %vm355_vm2, %v339_v1, %v371_v39 }
 0x112   :  { %398 = vst [vmem:[%s765_s4 + $0x50] sm:$0xff] %v382_v23 }
 0x113   :  { %399 = vst [vmem:[%s765_s4 + $0x58] sm:$0xff] %v383_v57 }
 0x114   :  { %400 = vst [vmem:[%s765_s4 + $0x60] sm:$0xff] %v384_v22 }
 0x115   :  { %401 = vst [vmem:[%s765_s4 + $0x68] sm:$0xff] %v385_v9 }
 0x116   :  { %402 = vst [vmem:[%s765_s4 + $0x70] sm:$0xff] %v386_v35 }
 0x117   :  { %403 = vst [vmem:[%s765_s4 + $0x78] sm:$0xff] %v387_v10 }

// kernel: srgan_forward.37
= control target key start
LH: loop header
LB: loop body
LE: loop exit
PB: predicated region body
PF: predicated region fallthrough
CT: control target
= control target key end

     0   :  { %s818_s1 = inlined_call_operand.vmem [shape: bf16[256,128], index: 1, kind: input, shape index: {}]   ;;  %s819_s2 = inlined_call_operand.vmem [shape: f32[1,128], index: 2, kind: input, shape index: {}]   ;;  %s820_s0 = inlined_call_operand.vmem [shape: bf16[128,256], index: 0, kind: input, shape index: {}]   ;;  %s821_s3 = inlined_call_operand.vmem [shape: f32[128,128], index: 3, kind: output, shape index: {}]  }
   0x1   :  { %v559_v0 = vld [vmem:[%s818_s1 + $0x38] sm:$0xff]  ;;  %v558_v2 = vld [vmem:[%s818_s1 + $0x30] sm:$0xff]  ;;  %v557_v4 = vld [vmem:[%s818_s1 + $0x28] sm:$0xff] }
   0x2   :  { %v567_v1 = vld [vmem:[%s818_s1 + $0x78] sm:$0xff]  ;;  %242 = vmatpush.bf16.msra.mxu0 %v559_v0  ;;  %568 = vmatpush.bf16.msra.mxu2 %v559_v0  ;;  %v566_v3 = vld [vmem:[%s818_s1 + $0x70] sm:$0xff]  ;;  %v565_v5 = vld [vmem:[%s818_s1 + $0x68] sm:$0xff] }
   0x3   :  { %291 = vmatpush.bf16.msra.mxu1 %v567_v1  ;;  %576 = vmatpush.bf16.msra.mxu3 %v567_v1  ;;  %v556_v6 = vld [vmem:[%s818_s1 + $0x20] sm:$0xff]  ;;  %v555_v8 = vld [vmem:[%s818_s1 + $0x18] sm:$0xff]  ;;  %v554_v10 = vld [vmem:[%s818_s1 + $0x10] sm:$0xff] }
   0x4   :  { %v564_v7 = vld [vmem:[%s818_s1 + $0x60] sm:$0xff]  ;;  %v563_v9 = vld [vmem:[%s818_s1 + $0x58] sm:$0xff]  ;;  %v562_v11 = vld [vmem:[%s818_s1 + $0x50] sm:$0xff] }
   0x5   :  { %v553_v12 = vld [vmem:[%s818_s1 + $0x8] sm:$0xff]  ;;  %v552_v14 = vld [vmem:[%s818_s1] sm:$0xff]  ;;  %v418_v28 = vld [vmem:[%s820_s0 + $0x10] sm:$0xf] }
   0x6   :  { %243 = vmatpush.bf16.msra.mxu0 %v558_v2  ;;  %569 = vmatpush.bf16.msra.mxu2 %v558_v2  ;;  %v561_v13 = vld [vmem:[%s818_s1 + $0x48] sm:$0xff]  ;;  %v560_v15 = vld [vmem:[%s818_s1 + $0x40] sm:$0xff]  ;;  %v539_v29 = vld [vmem:[%s820_s0 + $0x14] sm:$0xf0] }
   0x7   :  { %292 = vmatpush.bf16.msra.mxu1 %v566_v3  ;;  %577 = vmatpush.bf16.msra.mxu3 %v566_v3  ;;  %v410_v16 = vld [vmem:[%s820_s0] sm:$0xf]  ;;  %v537_v17 = vld [vmem:[%s820_s0 + $0x4] sm:$0xf0]  ;;  %v536_v20 = vld [vmem:[%s820_s0 + $0x4] sm:$0xf]  ;;  %v419_v36 = vor.u32 %v539_v29, %v418_v28 }
   0x8   :  { %v442_v18 = vld [vmem:[%s820_s0 + $0x40] sm:$0xf]  ;;  %v545_v19 = vld [vmem:[%s820_s0 + $0x44] sm:$0xf0]  ;;  %v412_v21 = vld [vmem:[%s820_s0 + $0x8] sm:$0xf0]  ;;  %v411_v24 = vor.u32 %v537_v17, %v410_v16 }
   0x9   :  { %v544_v22 = vld [vmem:[%s820_s0 + $0x44] sm:$0xf]  ;;  %v444_v23 = vld [vmem:[%s820_s0 + $0x48] sm:$0xf0]  ;;  %v443_v25 = vor.u32 %v545_v19, %v442_v18  ;;  %v415_v26 = vor.u32 %v536_v20, %v412_v21  ;;  %v450_v30 = vld [vmem:[%s820_s0 + $0x50] sm:$0xf] }
   0xa   :  { %244 = vmatpush.bf16.msra.mxu0 %v557_v4  ;;  %570 = vmatpush.bf16.msra.mxu2 %v557_v4  ;;  %v447_v27 = vor.u32 %v544_v22, %v444_v23  ;;  %v547_v31 = vld [vmem:[%s820_s0 + $0x54] sm:$0xf0]  ;;  %v538_v32 = vld [vmem:[%s820_s0 + $0x14] sm:$0xf]  ;;  %v420_v33 = vld [vmem:[%s820_s0 + $0x18] sm:$0xf0] }
   0xb   :  { %293 = vmatpush.bf16.msra.mxu1 %v565_v5  ;;  %578 = vmatpush.bf16.msra.mxu3 %v565_v5  ;;  %v546_v34 = vld [vmem:[%s820_s0 + $0x54] sm:$0xf]  ;;  %v452_v35 = vld [vmem:[%s820_s0 + $0x58] sm:$0xf0]  ;;  %v451_v37 = vor.u32 %v547_v31, %v450_v30  ;;  %v423_v38 = vor.u32 %v538_v32, %v420_v33  ;;  %v426_v40 = vld [vmem:[%s820_s0 + $0x20] sm:$0xf] }
   0xc   :  { %v455_v39 = vor.u32 %v546_v34, %v452_v35  ;;  %v541_v41 = vld [vmem:[%s820_s0 + $0x24] sm:$0xf0]  ;;  %v458_v42 = vld [vmem:[%s820_s0 + $0x60] sm:$0xf]  ;;  %v540_v44 = vld [vmem:[%s820_s0 + $0x24] sm:$0xf] }
   0xd   :  { %v549_v43 = vld [vmem:[%s820_s0 + $0x64] sm:$0xf0]  ;;  %v428_v45 = vld [vmem:[%s820_s0 + $0x28] sm:$0xf0]  ;;  %v548_v46 = vld [vmem:[%s820_s0 + $0x64] sm:$0xf]  ;;  %v427_v48 = vor.u32 %v541_v41, %v426_v40 }
   0xe   :  { %245 = vmatpush.bf16.msra.mxu0 %v556_v6  ;;  %571 = vmatpush.bf16.msra.mxu2 %v556_v6  ;;  %v460_v47 = vld [vmem:[%s820_s0 + $0x68] sm:$0xf0]  ;;  %v459_v49 = vor.u32 %v549_v43, %v458_v42  ;;  %v431_v50 = vor.u32 %v540_v44, %v428_v45  ;;  %v434_v52 = vld [vmem:[%s820_s0 + $0x30] sm:$0xf]  ;;  %v543_v53 = vld [vmem:[%s820_s0 + $0x34] sm:$0xf0] }
   0xf   :  { %294 = vmatpush.bf16.msra.mxu1 %v564_v7  ;;  %579 = vmatpush.bf16.msra.mxu3 %v564_v7  ;;  %v463_v51 = vor.u32 %v548_v46, %v460_v47  ;;  %v466_v54 = vld [vmem:[%s820_s0 + $0x70] sm:$0xf]  ;;  %v551_v55 = vld [vmem:[%s820_s0 + $0x74] sm:$0xf0]  ;;  %v542_v56 = vld [vmem:[%s820_s0 + $0x34] sm:$0xf]  ;;  %v435_v60 = vor.u32 %v543_v53, %v434_v52 }
  0x10   :  { %v436_v57 = vld [vmem:[%s820_s0 + $0x38] sm:$0xf0]  ;;  %v550_v58 = vld [vmem:[%s820_s0 + $0x74] sm:$0xf]  ;;  %v467_v61 = vor.u32 %v551_v55, %v466_v54  ;;  %v752_v0 = vld [vmem:[%s819_s2] ss:$0 sm:$0xff] }
  0x11   :  { %v468_v59 = vld [vmem:[%s820_s0 + $0x78] sm:$0xf0]  ;;  %v439_v62 = vor.u32 %v542_v56, %v436_v57 }
  0x12   :  { %246 = vmatpush.bf16.msra.mxu0 %v555_v8  ;;  %572 = vmatpush.bf16.msra.mxu2 %v555_v8  ;;  %v471_v63 = vor.u32 %v550_v58, %v468_v59 }
  0x13   :  { %295 = vmatpush.bf16.msra.mxu1 %v563_v9  ;;  %580 = vmatpush.bf16.msra.mxu3 %v563_v9 }
  0x16   :  { %247 = vmatpush.bf16.msra.mxu0 %v554_v10  ;;  %573 = vmatpush.bf16.msra.mxu2 %v554_v10 }
  0x17   :  { %296 = vmatpush.bf16.msra.mxu1 %v562_v11  ;;  %581 = vmatpush.bf16.msra.mxu3 %v562_v11 }
  0x1a   :  { %248 = vmatpush.bf16.msra.mxu0 %v553_v12  ;;  %574 = vmatpush.bf16.msra.mxu2 %v553_v12 }
  0x1b   :  { %297 = vmatpush.bf16.msra.mxu1 %v561_v13  ;;  %582 = vmatpush.bf16.msra.mxu3 %v561_v13 }
  0x1e   :  { %249 = vmatpush.bf16.msra.mxu0 %v552_v14  ;;  %575 = vmatpush.bf16.msra.mxu2 %v552_v14 }
  0x1f   :  { %298 = vmatpush.bf16.msra.mxu1 %v560_v15  ;;  %583 = vmatpush.bf16.msra.mxu3 %v560_v15 }
  0x21   :  { %250 = vmatmul.bf16.vlgmr.msra.gmra.mxu0 %v411_v24  ;;  %270 = vmatmul.bf16.vlgmr.msra.gmra.mxu2 %v443_v25 }
  0x22   :  { %299 = vmatmul.bf16.vlgmr.msra.gmra.mxu1 %v415_v26  ;;  %319 = vmatmul.bf16.vlgmr.msra.gmra.mxu3 %v447_v27 }
  0x31   :  { %255 = vmatmul.bf16.gmra.mxu0 %v419_v36  ;;  %275 = vmatmul.bf16.gmra.mxu2 %v451_v37 }
  0x32   :  { %304 = vmatmul.bf16.gmra.mxu1 %v423_v38  ;;  %324 = vmatmul.bf16.gmra.mxu3 %v455_v39 }
  0x41   :  { %260 = vmatmul.bf16.gmra.mxu0 %v427_v48  ;;  %280 = vmatmul.bf16.gmra.mxu2 %v459_v49 }
  0x42   :  { %309 = vmatmul.bf16.gmra.mxu1 %v431_v50  ;;  %329 = vmatmul.bf16.gmra.mxu3 %v463_v51 }
  0x51   :  { %265 = vmatmul.bf16.gmra.mxu0 %v435_v60  ;;  %285 = vmatmul.bf16.gmra.mxu2 %v467_v61 }
  0x52   :  { %314 = vmatmul.bf16.gmra.mxu1 %v439_v62  ;;  %334 = vmatmul.bf16.gmra.mxu3 %v471_v63 }
  0x9e   :  { %v251_v1 = vpop.f32.mrf.mxu0 }
  0x9f   :  { %v252_v2 = vadd.f32 %v752_v0, %v251_v1  ;;  %v300_v3 = vpop.f32.mrf.mxu1 }
  0xa1   :  { %v301_v4 = vadd.f32 %v300_v3, %v252_v2 }
  0xa3   :  { %vm340_vm0 = vcmp.ge.f32.partialorder %v301_v4, 0.0  ;;  %v356_v5 = vmul.f32 0.25, %v301_v4 }
  0xa4   :  { %v271_v6 = vpop.f32.mrf.mxu2 }
  0xa5   :  { %v372_v7 = vsel %vm340_vm0, %v301_v4, %v356_v5  ;;  %v272_v8 = vadd.f32 %v752_v0, %v271_v6  ;;  %v320_v9 = vpop.f32.mrf.mxu3 }
  0xa6   :  { %388 = vst [vmem:[%s821_s3] sm:$0xff] %v372_v7  ;;  %v253_v10 = vpop.f32.mrf.mxu0 }
  0xa7   :  { %v321_v11 = vadd.f32 %v320_v9, %v272_v8  ;;  %v254_v12 = vadd.f32 %v752_v0, %v253_v10  ;;  %v302_v13 = vpop.f32.mrf.mxu1 }
  0xa9   :  { %vm348_vm1 = vcmp.ge.f32.partialorder %v321_v11, 0.0  ;;  %v364_v14 = vmul.f32 0.25, %v321_v11  ;;  %v303_v15 = vadd.f32 %v302_v13, %v254_v12 }
  0xab   :  { %v380_v16 = vsel %vm348_vm1, %v321_v11, %v364_v14  ;;  %vm341_vm2 = vcmp.ge.f32.partialorder %v303_v15, 0.0  ;;  %v357_v17 = vmul.f32 0.25, %v303_v15 }
  0xac   :  { %396 = vst [vmem:[%s821_s3 + $0x40] sm:$0xff] %v380_v16  ;;  %v273_v18 = vpop.f32.mrf.mxu2 }
  0xad   :  { %v373_v19 = vsel %vm341_vm2, %v303_v15, %v357_v17  ;;  %v274_v20 = vadd.f32 %v752_v0, %v273_v18  ;;  %v322_v21 = vpop.f32.mrf.mxu3 }
  0xae   :  { %389 = vst [vmem:[%s821_s3 + $0x8] sm:$0xff] %v373_v19  ;;  %v256_v22 = vpop.f32.mrf.mxu0 }
  0xaf   :  { %v323_v23 = vadd.f32 %v322_v21, %v274_v20  ;;  %v257_v24 = vadd.f32 %v752_v0, %v256_v22  ;;  %v305_v25 = vpop.f32.mrf.mxu1 }
  0xb1   :  { %vm349_vm3 = vcmp.ge.f32.partialorder %v323_v23, 0.0  ;;  %v365_v26 = vmul.f32 0.25, %v323_v23  ;;  %v306_v27 = vadd.f32 %v305_v25, %v257_v24 }
  0xb3   :  { %v381_v28 = vsel %vm349_vm3, %v323_v23, %v365_v26  ;;  %vm342_vm4 = vcmp.ge.f32.partialorder %v306_v27, 0.0  ;;  %v358_v29 = vmul.f32 0.25, %v306_v27 }
  0xb4   :  { %397 = vst [vmem:[%s821_s3 + $0x48] sm:$0xff] %v381_v28  ;;  %v276_v30 = vpop.f32.mrf.mxu2 }
  0xb5   :  { %v374_v31 = vsel %vm342_vm4, %v306_v27, %v358_v29  ;;  %v277_v32 = vadd.f32 %v752_v0, %v276_v30  ;;  %v325_v33 = vpop.f32.mrf.mxu3 }
  0xb6   :  { %390 = vst [vmem:[%s821_s3 + $0x10] sm:$0xff] %v374_v31  ;;  %v258_v34 = vpop.f32.mrf.mxu0 }
  0xb7   :  { %v326_v35 = vadd.f32 %v325_v33, %v277_v32  ;;  %v259_v36 = vadd.f32 %v752_v0, %v258_v34  ;;  %v307_v37 = vpop.f32.mrf.mxu1 }
  0xb9   :  { %vm350_vm5 = vcmp.ge.f32.partialorder %v326_v35, 0.0  ;;  %v366_v38 = vmul.f32 0.25, %v326_v35  ;;  %v308_v39 = vadd.f32 %v307_v37, %v259_v36 }
  0xbb   :  { %v382_v40 = vsel %vm350_vm5, %v326_v35, %v366_v38  ;;  %vm343_vm6 = vcmp.ge.f32.partialorder %v308_v39, 0.0  ;;  %v359_v41 = vmul.f32 0.25, %v308_v39 }
  0xbc   :  { %398 = vst [vmem:[%s821_s3 + $0x50] sm:$0xff] %v382_v40  ;;  %v278_v42 = vpop.f32.mrf.mxu2 }
  0xbd   :  { %v375_v43 = vsel %vm343_vm6, %v308_v39, %v359_v41  ;;  %v279_v44 = vadd.f32 %v752_v0, %v278_v42  ;;  %v327_v45 = vpop.f32.mrf.mxu3 }
  0xbe   :  { %391 = vst [vmem:[%s821_s3 + $0x18] sm:$0xff] %v375_v43  ;;  %v261_v46 = vpop.f32.mrf.mxu0 }
  0xbf   :  { %v328_v47 = vadd.f32 %v327_v45, %v279_v44  ;;  %v262_v48 = vadd.f32 %v752_v0, %v261_v46  ;;  %v310_v49 = vpop.f32.mrf.mxu1 }
  0xc1   :  { %vm351_vm7 = vcmp.ge.f32.partialorder %v328_v47, 0.0  ;;  %v367_v50 = vmul.f32 0.25, %v328_v47  ;;  %v311_v51 = vadd.f32 %v310_v49, %v262_v48 }
  0xc3   :  { %v383_v52 = vsel %vm351_vm7, %v328_v47, %v367_v50  ;;  %vm344_vm8 = vcmp.ge.f32.partialorder %v311_v51, 0.0  ;;  %v360_v53 = vmul.f32 0.25, %v311_v51 }
  0xc4   :  { %399 = vst [vmem:[%s821_s3 + $0x58] sm:$0xff] %v383_v52  ;;  %v281_v54 = vpop.f32.mrf.mxu2 }
  0xc5   :  { %v376_v55 = vsel %vm344_vm8, %v311_v51, %v360_v53  ;;  %v282_v56 = vadd.f32 %v752_v0, %v281_v54  ;;  %v330_v57 = vpop.f32.mrf.mxu3 }
  0xc6   :  { %392 = vst [vmem:[%s821_s3 + $0x20] sm:$0xff] %v376_v55  ;;  %v263_v58 = vpop.f32.mrf.mxu0 }
  0xc7   :  { %v331_v59 = vadd.f32 %v330_v57, %v282_v56  ;;  %v264_v60 = vadd.f32 %v752_v0, %v263_v58  ;;  %v312_v61 = vpop.f32.mrf.mxu1 }
  0xc9   :  { %vm352_vm9 = vcmp.ge.f32.partialorder %v331_v59, 0.0  ;;  %v368_v62 = vmul.f32 0.25, %v331_v59  ;;  %v313_v63 = vadd.f32 %v312_v61, %v264_v60 }
  0xcb   :  { %v384_v1 = vsel %vm352_vm9, %v331_v59, %v368_v62  ;;  %vm345_vm10 = vcmp.ge.f32.partialorder %v313_v63, 0.0  ;;  %v361_v2 = vmul.f32 0.25, %v313_v63 }
  0xcc   :  { %400 = vst [vmem:[%s821_s3 + $0x60] sm:$0xff] %v384_v1  ;;  %v283_v3 = vpop.f32.mrf.mxu2 }
  0xcd   :  { %v377_v4 = vsel %vm345_vm10, %v313_v63, %v361_v2  ;;  %v284_v5 = vadd.f32 %v752_v0, %v283_v3  ;;  %v332_v6 = vpop.f32.mrf.mxu3 }
  0xce   :  { %393 = vst [vmem:[%s821_s3 + $0x28] sm:$0xff] %v377_v4  ;;  %v266_v7 = vpop.f32.mrf.mxu0 }
  0xcf   :  { %v333_v8 = vadd.f32 %v332_v6, %v284_v5  ;;  %v267_v9 = vadd.f32 %v752_v0, %v266_v7  ;;  %v315_v10 = vpop.f32.mrf.mxu1 }
  0xd1   :  { %vm353_vm11 = vcmp.ge.f32.partialorder %v333_v8, 0.0  ;;  %v369_v11 = vmul.f32 0.25, %v333_v8  ;;  %v316_v12 = vadd.f32 %v315_v10, %v267_v9 }
  0xd3   :  { %v385_v13 = vsel %vm353_vm11, %v333_v8, %v369_v11  ;;  %vm346_vm12 = vcmp.ge.f32.partialorder %v316_v12, 0.0  ;;  %v362_v14 = vmul.f32 0.25, %v316_v12 }
  0xd4   :  { %401 = vst [vmem:[%s821_s3 + $0x68] sm:$0xff] %v385_v13  ;;  %v286_v15 = vpop.f32.mrf.mxu2 }
  0xd5   :  { %v378_v16 = vsel %vm346_vm12, %v316_v12, %v362_v14  ;;  %v287_v17 = vadd.f32 %v752_v0, %v286_v15  ;;  %v335_v18 = vpop.f32.mrf.mxu3 }
  0xd6   :  { %394 = vst [vmem:[%s821_s3 + $0x30] sm:$0xff] %v378_v16  ;;  %v268_v19 = vpop.f32.mrf.mxu0 }
  0xd7   :  { %v336_v20 = vadd.f32 %v335_v18, %v287_v17  ;;  %v269_v21 = vadd.f32 %v752_v0, %v268_v19  ;;  %v317_v22 = vpop.f32.mrf.mxu1 }
  0xd9   :  { %vm354_vm13 = vcmp.ge.f32.partialorder %v336_v20, 0.0  ;;  %v370_v23 = vmul.f32 0.25, %v336_v20  ;;  %v318_v24 = vadd.f32 %v317_v22, %v269_v21 }
  0xdb   :  { %v386_v25 = vsel %vm354_vm13, %v336_v20, %v370_v23  ;;  %vm347_vm14 = vcmp.ge.f32.partialorder %v318_v24, 0.0  ;;  %v363_v26 = vmul.f32 0.25, %v318_v24 }
  0xdc   :  { %402 = vst [vmem:[%s821_s3 + $0x70] sm:$0xff] %v386_v25  ;;  %v288_v27 = vpop.f32.mrf.mxu2 }
  0xdd   :  { %v379_v28 = vsel %vm347_vm14, %v318_v24, %v363_v26  ;;  %v289_v29 = vadd.f32 %v752_v0, %v288_v27  ;;  %v337_v30 = vpop.f32.mrf.mxu3 }
  0xde   :  { %395 = vst [vmem:[%s821_s3 + $0x38] sm:$0xff] %v379_v28 }
  0xdf   :  { %v338_v31 = vadd.f32 %v337_v30, %v289_v29 }
  0xe1   :  { %vm355_vm15 = vcmp.ge.f32.partialorder %v338_v31, 0.0  ;;  %v371_v32 = vmul.f32 0.25, %v338_v31 }
  0xe3   :  { %v387_v33 = vsel %vm355_vm15, %v338_v31, %v371_v32 }
  0xe4   :  { %403 = vst [vmem:[%s821_s3 + $0x78] sm:$0xff] %v387_v33 }

// kernel: srgan_forward.39
= control target key start
LH: loop header
LB: loop body
LE: loop exit
PB: predicated region body
PF: predicated region fallthrough
CT: control target
= control target key end

     0   :  { %s835_s1 = inlined_call_operand.vmem [shape: bf16[128,128], index: 1, kind: input, shape index: {}]   ;;  %s836_s0 = inlined_call_operand.vmem [shape: bf16[128,128], index: 0, kind: input, shape index: {}]   ;;  %s837_s2 = inlined_call_operand.vmem [shape: f32[1,128], index: 2, kind: input, shape index: {}]   ;;  %s838_s3 = inlined_call_operand.vmem [shape: f32[1,128], index: 3, kind: input, shape index: {}]   ;;  %s839_s4 = inlined_call_operand.vmem [shape: f32[128,128], index: 4, kind: input, shape index: {}]   ;;  %s840_s5 = inlined_call_operand.vmem [shape: f32[128,128], index: 5, kind: output, shape index: {}]  }
   0x1   :  { %v474_v0 = vld [vmem:[%s835_s1 + $0x38] sm:$0xff]  ;;  %v473_v1 = vld [vmem:[%s835_s1 + $0x30] sm:$0xff]  ;;  %v472_v2 = vld [vmem:[%s835_s1 + $0x28] sm:$0xff] }
   0x2   :  { %148 = vmatpush.bf16.msra.mxu0 %v474_v0  ;;  %475 = vmatpush.bf16.msra.mxu1 %v474_v0  ;;  %v471_v3 = vld [vmem:[%s835_s1 + $0x20] sm:$0xff]  ;;  %v470_v4 = vld [vmem:[%s835_s1 + $0x18] sm:$0xff]  ;;  %v469_v5 = vld [vmem:[%s835_s1 + $0x10] sm:$0xff] }
   0x3   :  { %476 = vmatpush.bf16.msra.mxu2 %v474_v0  ;;  %477 = vmatpush.bf16.msra.mxu3 %v474_v0  ;;  %v468_v6 = vld [vmem:[%s835_s1 + $0x8] sm:$0xff]  ;;  %v467_v7 = vld [vmem:[%s835_s1] sm:$0xff]  ;;  %v461_v9 = vld [vmem:[%s836_s0 + $0x10] sm:$0xff] }
   0x4   :  { %v459_v8 = vld [vmem:[%s836_s0] sm:$0xff]  ;;  %v465_v11 = vld [vmem:[%s836_s0 + $0x30] sm:$0xff]  ;;  %v460_v12 = vld [vmem:[%s836_s0 + $0x8] sm:$0xff] }
   0x5   :  { %v463_v10 = vld [vmem:[%s836_s0 + $0x20] sm:$0xff]  ;;  %v462_v13 = vld [vmem:[%s836_s0 + $0x18] sm:$0xff]  ;;  %v464_v14 = vld [vmem:[%s836_s0 + $0x28] sm:$0xff] }
   0x6   :  { %149 = vmatpush.bf16.msra.mxu0 %v473_v1  ;;  %478 = vmatpush.bf16.msra.mxu1 %v473_v1  ;;  %v466_v15 = vld [vmem:[%s836_s0 + $0x38] sm:$0xff] }
   0x7   :  { %479 = vmatpush.bf16.msra.mxu2 %v473_v1  ;;  %480 = vmatpush.bf16.msra.mxu3 %v473_v1 }
   0xa   :  { %150 = vmatpush.bf16.msra.mxu0 %v472_v2  ;;  %481 = vmatpush.bf16.msra.mxu1 %v472_v2 }
   0xb   :  { %482 = vmatpush.bf16.msra.mxu2 %v472_v2  ;;  %483 = vmatpush.bf16.msra.mxu3 %v472_v2 }
   0xe   :  { %151 = vmatpush.bf16.msra.mxu0 %v471_v3  ;;  %484 = vmatpush.bf16.msra.mxu1 %v471_v3 }
   0xf   :  { %485 = vmatpush.bf16.msra.mxu2 %v471_v3  ;;  %486 = vmatpush.bf16.msra.mxu3 %v471_v3 }
  0x12   :  { %152 = vmatpush.bf16.msra.mxu0 %v470_v4  ;;  %487 = vmatpush.bf16.msra.mxu1 %v470_v4 }
  0x13   :  { %488 = vmatpush.bf16.msra.mxu2 %v470_v4  ;;  %489 = vmatpush.bf16.msra.mxu3 %v470_v4 }
  0x16   :  { %153 = vmatpush.bf16.msra.mxu0 %v469_v5  ;;  %490 = vmatpush.bf16.msra.mxu1 %v469_v5 }
  0x17   :  { %491 = vmatpush.bf16.msra.mxu2 %v469_v5  ;;  %492 = vmatpush.bf16.msra.mxu3 %v469_v5 }
  0x1a   :  { %154 = vmatpush.bf16.msra.mxu0 %v468_v6  ;;  %493 = vmatpush.bf16.msra.mxu1 %v468_v6 }
  0x1b   :  { %494 = vmatpush.bf16.msra.mxu2 %v468_v6  ;;  %495 = vmatpush.bf16.msra.mxu3 %v468_v6 }
  0x1e   :  { %155 = vmatpush.bf16.msra.mxu0 %v467_v7  ;;  %496 = vmatpush.bf16.msra.mxu1 %v467_v7 }
  0x1f   :  { %497 = vmatpush.bf16.msra.mxu2 %v467_v7  ;;  %498 = vmatpush.bf16.msra.mxu3 %v467_v7 }
  0x21   :  { %156 = vmatmul.bf16.vlgmr.msra.gmra.mxu0 %v459_v8  ;;  %166 = vmatmul.bf16.vlgmr.msra.gmra.mxu1 %v461_v9 }
  0x22   :  { %176 = vmatmul.bf16.vlgmr.msra.gmra.mxu2 %v463_v10  ;;  %186 = vmatmul.bf16.vlgmr.msra.gmra.mxu3 %v465_v11 }
  0x31   :  { %161 = vmatmul.bf16.gmra.mxu0 %v460_v12  ;;  %171 = vmatmul.bf16.gmra.mxu1 %v462_v13 }
  0x32   :  { %181 = vmatmul.bf16.gmra.mxu2 %v464_v14  ;;  %191 = vmatmul.bf16.gmra.mxu3 %v466_v15 }
  0x9e   :  { %v581_v16 = vpop.f32.mrf.mxu0  ;;  %v583_v17 = vpop.f32.mrf.mxu1 }
  0x9f   :  { %v219_v26 = vmul.f32 %v581_v16, %v581_v16  ;;  %v223_v36 = vmul.f32 %v583_v17, %v583_v17 }
  0xa5   :  { %v587_v19 = vpop.f32.mrf.mxu2  ;;  %v593_v22 = vpop.f32.mrf.mxu3 }
  0xa6   :  { %v585_v18 = vpop.f32.mrf.mxu0  ;;  %v589_v20 = vpop.f32.mrf.mxu1  ;;  %v227_v50 = vmul.f32 %v587_v19, %v587_v19  ;;  %v231_v0 = vmul.f32 %v593_v22, %v593_v22 }
  0xa7   :  { %v220_v24 = vmul.f32 %v585_v18, %v585_v18  ;;  %v197_v27 = vadd.f32 %v585_v18, %v581_v16  ;;  %v224_v40 = vmul.f32 %v589_v20, %v589_v20 }
  0xa9   :  { %v235_v29 = vadd.f32 %v220_v24, %v219_v26 }
  0xad   :  { %v595_v23 = vpop.f32.mrf.mxu2  ;;  %v613_v35 = vpop.f32.mrf.mxu3 }
  0xae   :  { %v591_v21 = vpop.f32.mrf.mxu0  ;;  %v599_v25 = vpop.f32.mrf.mxu1  ;;  %v228_v54 = vmul.f32 %v595_v23, %v595_v23  ;;  %v232_v3 = vmul.f32 %v613_v35, %v613_v35 }
  0xaf   :  { %v221_v28 = vmul.f32 %v591_v21, %v591_v21  ;;  %v198_v30 = vadd.f32 %v197_v27, %v591_v21  ;;  %v225_v44 = vmul.f32 %v599_v25, %v599_v25 }
  0xb1   :  { %v236_v32 = vadd.f32 %v235_v29, %v221_v28 }
  0xb5   :  { %v618_v39 = vpop.f32.mrf.mxu2  ;;  %v634_v53 = vpop.f32.mrf.mxu3 }
  0xb6   :  { %v608_v31 = vpop.f32.mrf.mxu0  ;;  %v623_v43 = vpop.f32.mrf.mxu1  ;;  %v229_v59 = vmul.f32 %v618_v39, %v618_v39  ;;  %v233_v8 = vmul.f32 %v634_v53, %v634_v53 }
  0xb7   :  { %v199_v33 = vadd.f32 %v198_v30, %v608_v31  ;;  %v222_v34 = vmul.f32 %v608_v31, %v608_v31  ;;  %v226_v48 = vmul.f32 %v623_v43, %v623_v43 }
  0xb9   :  { %v200_v37 = vadd.f32 %v199_v33, %v583_v17  ;;  %v237_v38 = vadd.f32 %v236_v32, %v222_v34 }
  0xbb   :  { %v238_v41 = vadd.f32 %v237_v38, %v223_v36  ;;  %v201_v42 = vadd.f32 %v200_v37, %v589_v20 }
  0xbd   :  { %v202_v45 = vadd.f32 %v201_v42, %v599_v25  ;;  %v239_v46 = vadd.f32 %v238_v41, %v224_v40  ;;  %v639_v57 = vpop.f32.mrf.mxu2  ;;  %v653_v6 = vpop.f32.mrf.mxu3 }
  0xbe   :  { %v230_v63 = vmul.f32 %v639_v57, %v639_v57  ;;  %v234_v12 = vmul.f32 %v653_v6, %v653_v6 }
  0xbf   :  { %v203_v47 = vadd.f32 %v202_v45, %v623_v43  ;;  %v240_v49 = vadd.f32 %v239_v46, %v225_v44 }
  0xc1   :  { %v204_v51 = vadd.f32 %v203_v47, %v587_v19  ;;  %v241_v52 = vadd.f32 %v240_v49, %v226_v48 }
  0xc3   :  { %v242_v55 = vadd.f32 %v241_v52, %v227_v50  ;;  %v205_v56 = vadd.f32 %v204_v51, %v595_v23 }
  0xc5   :  { %v206_v58 = vadd.f32 %v205_v56, %v618_v39  ;;  %v243_v60 = vadd.f32 %v242_v55, %v228_v54 }
  0xc7   :  { %v244_v61 = vadd.f32 %v243_v60, %v229_v59  ;;  %v207_v62 = vadd.f32 %v206_v58, %v639_v57 }
  0xc9   :  { %v208_v1 = vadd.f32 %v207_v62, %v593_v22  ;;  %v245_v2 = vadd.f32 %v244_v61, %v230_v63 }
  0xcb   :  { %v246_v4 = vadd.f32 %v245_v2, %v231_v0  ;;  %v209_v5 = vadd.f32 %v208_v1, %v613_v35 }
  0xcd   :  { %v210_v7 = vadd.f32 %v209_v5, %v634_v53  ;;  %v247_v9 = vadd.f32 %v246_v4, %v232_v3 }
  0xcf   :  { %v248_v10 = vadd.f32 %v247_v9, %v233_v8  ;;  %v211_v11 = vadd.f32 %v210_v7, %v653_v6 }
  0xd1   :  { %v212_v13 = vrot.slane %v211_v11, 4  ;;  %v249_v14 = vadd.f32 %v248_v10, %v234_v12 }
  0xd3   :  { %v213_v15 = vadd.f32 %v212_v13, %v211_v11  ;;  %v250_v24 = vrot.slane %v249_v14, 4 }
  0xd5   :  { %v214_v26 = vrot.slane %v213_v15, 2  ;;  %v251_v27 = vadd.f32 %v250_v24, %v249_v14 }
  0xd7   :  { %v215_v28 = vadd.f32 %v214_v26, %v213_v15  ;;  %v252_v29 = vrot.slane %v251_v27, 2 }
  0xd9   :  { %v216_v30 = vrot.slane %v215_v28, 1  ;;  %v253_v32 = vadd.f32 %v252_v29, %v251_v27  ;;  %v343_v27 = vld [vmem:[%s839_s4] sm:$0xff]  ;;  %v345_v29 = vld [vmem:[%s839_s4 + $0x10] sm:$0xff] }
  0xdb   :  { %v217_v33 = vadd.f32 %v216_v30, %v215_v28  ;;  %v254_v34 = vrot.slane %v253_v32, 1  ;;  %v344_v28 = vld [vmem:[%s839_s4 + $0x8] sm:$0xff] }
  0xdd   :  { %v661_v36 = vmul.f32 0.0078125, %v217_v33  ;;  %v255_v37 = vadd.f32 %v254_v34, %v253_v32  ;;  %v346_v34 = vld [vmem:[%s839_s4 + $0x18] sm:$0xff] }
  0xdf   :  { %v256_v38 = vmul.f32 0.0078125, %v255_v37  ;;  %v257_v40 = vmul.f32 %v661_v36, %v661_v36  ;;  %v260_v51 = vsub.f32 %v581_v16, %v661_v36  ;;  %v261_v52 = vsub.f32 %v585_v18, %v661_v36  ;;  %v678_v16 = vld [vmem:[%s837_s2] ss:$0 sm:$0xff] }
  0xe0   :  { %v262_v54 = vsub.f32 %v591_v21, %v661_v36  ;;  %v263_v55 = vsub.f32 %v608_v31, %v661_v36  ;;  %v264_v58 = vsub.f32 %v583_v17, %v661_v36  ;;  %v265_v18 = vsub.f32 %v589_v20, %v661_v36 }
  0xe1   :  { %v258_v41 = vsub.f32 %v256_v38, %v257_v40  ;;  %v266_v62 = vsub.f32 %v599_v25, %v661_v36  ;;  %v267_v63 = vsub.f32 %v623_v43, %v661_v36  ;;  %v268_v17 = vsub.f32 %v587_v19, %v661_v36  ;;  %v696_v25 = vld [vmem:[%s838_s3] ss:$0 sm:$0xff] }
  0xe2   :  { %v269_v0 = vsub.f32 %v595_v23, %v661_v36  ;;  %v270_v43 = vsub.f32 %v618_v39, %v661_v36  ;;  %v271_v19 = vsub.f32 %v639_v57, %v661_v36  ;;  %v272_v7 = vsub.f32 %v593_v22, %v661_v36 }
  0xe3   :  { %v259_v42 = vmax.f32 %v258_v41, 0.0  ;;  %v273_v8 = vsub.f32 %v613_v35, %v661_v36  ;;  %v274_v11 = vsub.f32 %v634_v53, %v661_v36  ;;  %v275_v35 = vsub.f32 %v653_v6, %v661_v36  ;;  %v347_v41 = vld [vmem:[%s839_s4 + $0x20] sm:$0xff] }
  0xe5   :  { %v276_v44 = vadd.f32 1e-05, %v259_v42 }
  0xe7   :  { %501 = vrsqrt.f32 %v276_v44  ;;  %vm283_vm1 = vweird.f32 %v276_v44 }
  0xed   :  { %v502_v45 = vpop.eup %501 }
  0xee   :  { %v278_v46 = vmul.f32 %v502_v45, %v276_v44  ;;  %vm284_vm0 = vweird.f32 %v502_v45  ;;  %v348_v44 = vld [vmem:[%s839_s4 + $0x28] sm:$0xff] }
  0xef   :  { %vm285_vm2 = vmor %vm283_vm1, %vm284_vm0 }
  0xf0   :  { %v279_v47 = vmul.f32 %v502_v45, %v278_v46 }
  0xf2   :  { %v280_v48 = vmul.f32 0.5, %v279_v47 }
  0xf4   :  { %v281_v49 = vsub.f32 1.5, %v280_v48 }
  0xf6   :  { %v282_v50 = vmul.f32 %v502_v45, %v281_v49 }
  0xf8   :  { %v286_v56 = vsel %vm285_vm2, %v502_v45, %v282_v50 }
  0xf9   :  { %v287_v59 = vmul.f32 %v286_v56, %v260_v51  ;;  %v288_v60 = vmul.f32 %v286_v56, %v261_v52  ;;  %v289_v61 = vmul.f32 %v286_v56, %v262_v54  ;;  %v290_v21 = vmul.f32 %v286_v56, %v263_v55  ;;  %v349_v51 = vld [vmem:[%s839_s4 + $0x30] sm:$0xff] }
  0xfa   :  { %v291_v31 = vmul.f32 %v286_v56, %v264_v58  ;;  %v292_v1 = vmul.f32 %v286_v56, %v265_v18  ;;  %v293_v2 = vmul.f32 %v286_v56, %v266_v62  ;;  %v294_v23 = vmul.f32 %v286_v56, %v267_v63  ;;  %v350_v58 = vld [vmem:[%s839_s4 + $0x38] sm:$0xff] }
  0xfb   :  { %v307_v3 = vmul.f32 %v678_v16, %v287_v59  ;;  %v308_v20 = vmul.f32 %v678_v16, %v288_v60  ;;  %v309_v4 = vmul.f32 %v678_v16, %v289_v61  ;;  %v310_v5 = vmul.f32 %v678_v16, %v290_v21  ;;  %v351_v61 = vld [vmem:[%s839_s4 + $0x40] sm:$0xff] }
  0xfc   :  { %v295_v9 = vmul.f32 %v286_v56, %v268_v17  ;;  %v311_v10 = vmul.f32 %v678_v16, %v291_v31  ;;  %v296_v12 = vmul.f32 %v286_v56, %v269_v0  ;;  %v297_v39 = vmul.f32 %v286_v56, %v270_v43  ;;  %v352_v31 = vld [vmem:[%s839_s4 + $0x48] sm:$0xff]  ;;  %v355_v43 = vld [vmem:[%s839_s4 + $0x60] sm:$0xff] }
  0xfd   :  { %v312_v13 = vmul.f32 %v678_v16, %v292_v1  ;;  %v313_v57 = vmul.f32 %v678_v16, %v293_v2  ;;  %v327_v14 = vadd.f32 %v696_v25, %v307_v3  ;;  %v328_v15 = vadd.f32 %v696_v25, %v308_v20  ;;  %v353_v1 = vld [vmem:[%s839_s4 + $0x50] sm:$0xff]  ;;  %v354_v20 = vld [vmem:[%s839_s4 + $0x58] sm:$0xff] }
  0xfe   :  { %v329_v22 = vadd.f32 %v696_v25, %v309_v4  ;;  %v298_v24 = vmul.f32 %v286_v56, %v271_v19  ;;  %v314_v26 = vmul.f32 %v678_v16, %v294_v23  ;;  %v330_v53 = vadd.f32 %v696_v25, %v310_v5  ;;  %v356_v5 = vld [vmem:[%s839_s4 + $0x68] sm:$0xff] }
  0xff   :  { %v299_v30 = vmul.f32 %v286_v56, %v272_v7  ;;  %v300_v32 = vmul.f32 %v286_v56, %v273_v8  ;;  %v315_v6 = vmul.f32 %v678_v16, %v295_v9  ;;  %v331_v33 = vadd.f32 %v696_v25, %v311_v10  ;;  %v357_v9 = vld [vmem:[%s839_s4 + $0x70] sm:$0xff] }
 0x100   :  { %v301_v36 = vmul.f32 %v286_v56, %v274_v11  ;;  %v316_v37 = vmul.f32 %v678_v16, %v296_v12  ;;  %v317_v38 = vmul.f32 %v678_v16, %v297_v39  ;;  %v332_v40 = vadd.f32 %v696_v25, %v312_v13  ;;  %v358_v11 = vld [vmem:[%s839_s4 + $0x78] sm:$0xff] }
 0x101   :  { %v333_v42 = vadd.f32 %v696_v25, %v313_v57  ;;  %v359_v45 = vadd.f32 %v343_v27, %v327_v14  ;;  %v360_v46 = vadd.f32 %v344_v28, %v328_v15  ;;  %v361_v47 = vadd.f32 %v345_v29, %v329_v22 }
 0x102   :  { %v302_v48 = vmul.f32 %v286_v56, %v275_v35  ;;  %v318_v49 = vmul.f32 %v678_v16, %v298_v24  ;;  %v334_v50 = vadd.f32 %v696_v25, %v314_v26  ;;  %v362_v52 = vadd.f32 %v346_v34, %v330_v53 }
 0x103   :  { %v319_v54 = vmul.f32 %v678_v16, %v299_v30  ;;  %v335_v55 = vadd.f32 %v696_v25, %v315_v6  ;;  %v363_v59 = vadd.f32 %v347_v41, %v331_v33  ;;  %375 = vst [vmem:[%s840_s5] sm:$0xff] %v359_v45  ;;  %v320_v56 = vmul.f32 %v678_v16, %v300_v32 }
 0x104   :  { %v336_v60 = vadd.f32 %v696_v25, %v316_v37  ;;  %v364_v18 = vadd.f32 %v348_v44, %v332_v40  ;;  %376 = vst [vmem:[%s840_s5 + $0x8] sm:$0xff] %v360_v46  ;;  %v321_v21 = vmul.f32 %v678_v16, %v301_v36  ;;  %v337_v62 = vadd.f32 %v696_v25, %v317_v38 }
 0x105   :  { %v365_v63 = vadd.f32 %v349_v51, %v333_v42  ;;  %377 = vst [vmem:[%s840_s5 + $0x10] sm:$0xff] %v361_v47  ;;  %v322_v17 = vmul.f32 %v678_v16, %v302_v48  ;;  %v338_v0 = vadd.f32 %v696_v25, %v318_v49  ;;  %v366_v2 = vadd.f32 %v350_v58, %v334_v50 }
 0x106   :  { %378 = vst [vmem:[%s840_s5 + $0x18] sm:$0xff] %v362_v52  ;;  %v339_v3 = vadd.f32 %v696_v25, %v319_v54  ;;  %v367_v4 = vadd.f32 %v351_v61, %v335_v55  ;;  %v340_v16 = vadd.f32 %v696_v25, %v320_v56  ;;  %v368_v19 = vadd.f32 %v352_v31, %v336_v60 }
 0x107   :  { %379 = vst [vmem:[%s840_s5 + $0x20] sm:$0xff] %v363_v59  ;;  %v341_v23 = vadd.f32 %v696_v25, %v321_v21  ;;  %v369_v7 = vadd.f32 %v353_v1, %v337_v62  ;;  %v342_v8 = vadd.f32 %v696_v25, %v322_v17  ;;  %v370_v10 = vadd.f32 %v354_v20, %v338_v0 }
 0x108   :  { %380 = vst [vmem:[%s840_s5 + $0x28] sm:$0xff] %v364_v18  ;;  %v371_v12 = vadd.f32 %v355_v43, %v339_v3  ;;  %v372_v39 = vadd.f32 %v356_v5, %v340_v16 }
 0x109   :  { %381 = vst [vmem:[%s840_s5 + $0x30] sm:$0xff] %v365_v63  ;;  %v373_v25 = vadd.f32 %v357_v9, %v341_v23  ;;  %v374_v13 = vadd.f32 %v358_v11, %v342_v8 }
 0x10a   :  { %382 = vst [vmem:[%s840_s5 + $0x38] sm:$0xff] %v366_v2 }
 0x10b   :  { %383 = vst [vmem:[%s840_s5 + $0x40] sm:$0xff] %v367_v4 }
 0x10c   :  { %384 = vst [vmem:[%s840_s5 + $0x48] sm:$0xff] %v368_v19 }
 0x10d   :  { %385 = vst [vmem:[%s840_s5 + $0x50] sm:$0xff] %v369_v7 }
 0x10e   :  { %386 = vst [vmem:[%s840_s5 + $0x58] sm:$0xff] %v370_v10 }
 0x10f   :  { %387 = vst [vmem:[%s840_s5 + $0x60] sm:$0xff] %v371_v12 }
 0x110   :  { %388 = vst [vmem:[%s840_s5 + $0x68] sm:$0xff] %v372_v39 }
 0x111   :  { %389 = vst [vmem:[%s840_s5 + $0x70] sm:$0xff] %v373_v25 }
 0x112   :  { %390 = vst [vmem:[%s840_s5 + $0x78] sm:$0xff] %v374_v13 }

// kernel: srgan_forward.71
= control target key start
LH: loop header
LB: loop body
LE: loop exit
PB: predicated region body
PF: predicated region fallthrough
CT: control target
= control target key end

     0   :  { %s505_s1 = inlined_call_operand.vmem [shape: bf16[128,128], index: 1, kind: input, shape index: {}]   ;;  %s506_s2 = inlined_call_operand.vmem [shape: f32[1,128], index: 2, kind: input, shape index: {}]   ;;  %s507_s0 = inlined_call_operand.vmem [shape: bf16[128,128], index: 0, kind: input, shape index: {}]   ;;  %s508_s3 = inlined_call_operand.vmem [shape: f32[128,128], index: 3, kind: output, shape index: {}]  }
   0x1   :  { %v342_v0 = vld [vmem:[%s505_s1 + $0x38] sm:$0xff]  ;;  %v341_v1 = vld [vmem:[%s505_s1 + $0x30] sm:$0xff]  ;;  %v340_v2 = vld [vmem:[%s505_s1 + $0x28] sm:$0xff] }
   0x2   :  { %146 = vmatpush.bf16.msra.mxu0 %v342_v0  ;;  %343 = vmatpush.bf16.msra.mxu1 %v342_v0  ;;  %v339_v3 = vld [vmem:[%s505_s1 + $0x20] sm:$0xff]  ;;  %v338_v4 = vld [vmem:[%s505_s1 + $0x18] sm:$0xff]  ;;  %v337_v5 = vld [vmem:[%s505_s1 + $0x10] sm:$0xff] }
   0x3   :  { %344 = vmatpush.bf16.msra.mxu2 %v342_v0  ;;  %345 = vmatpush.bf16.msra.mxu3 %v342_v0  ;;  %v336_v6 = vld [vmem:[%s505_s1 + $0x8] sm:$0xff]  ;;  %v335_v7 = vld [vmem:[%s505_s1] sm:$0xff]  ;;  %v329_v9 = vld [vmem:[%s507_s0 + $0x10] sm:$0xff] }
   0x4   :  { %v327_v8 = vld [vmem:[%s507_s0] sm:$0xff]  ;;  %v333_v11 = vld [vmem:[%s507_s0 + $0x30] sm:$0xff]  ;;  %v328_v12 = vld [vmem:[%s507_s0 + $0x8] sm:$0xff] }
   0x5   :  { %v331_v10 = vld [vmem:[%s507_s0 + $0x20] sm:$0xff]  ;;  %v330_v13 = vld [vmem:[%s507_s0 + $0x18] sm:$0xff]  ;;  %v332_v14 = vld [vmem:[%s507_s0 + $0x28] sm:$0xff] }
   0x6   :  { %147 = vmatpush.bf16.msra.mxu0 %v341_v1  ;;  %346 = vmatpush.bf16.msra.mxu1 %v341_v1  ;;  %v334_v15 = vld [vmem:[%s507_s0 + $0x38] sm:$0xff]  ;;  %v439_v16 = vld [vmem:[%s506_s2] ss:$0 sm:$0xff] }
   0x7   :  { %347 = vmatpush.bf16.msra.mxu2 %v341_v1  ;;  %348 = vmatpush.bf16.msra.mxu3 %v341_v1 }
   0xa   :  { %148 = vmatpush.bf16.msra.mxu0 %v340_v2  ;;  %349 = vmatpush.bf16.msra.mxu1 %v340_v2 }
   0xb   :  { %350 = vmatpush.bf16.msra.mxu2 %v340_v2  ;;  %351 = vmatpush.bf16.msra.mxu3 %v340_v2 }
   0xe   :  { %149 = vmatpush.bf16.msra.mxu0 %v339_v3  ;;  %352 = vmatpush.bf16.msra.mxu1 %v339_v3 }
   0xf   :  { %353 = vmatpush.bf16.msra.mxu2 %v339_v3  ;;  %354 = vmatpush.bf16.msra.mxu3 %v339_v3 }
  0x12   :  { %150 = vmatpush.bf16.msra.mxu0 %v338_v4  ;;  %355 = vmatpush.bf16.msra.mxu1 %v338_v4 }
  0x13   :  { %356 = vmatpush.bf16.msra.mxu2 %v338_v4  ;;  %357 = vmatpush.bf16.msra.mxu3 %v338_v4 }
  0x16   :  { %151 = vmatpush.bf16.msra.mxu0 %v337_v5  ;;  %358 = vmatpush.bf16.msra.mxu1 %v337_v5 }
  0x17   :  { %359 = vmatpush.bf16.msra.mxu2 %v337_v5  ;;  %360 = vmatpush.bf16.msra.mxu3 %v337_v5 }
  0x1a   :  { %152 = vmatpush.bf16.msra.mxu0 %v336_v6  ;;  %361 = vmatpush.bf16.msra.mxu1 %v336_v6 }
  0x1b   :  { %362 = vmatpush.bf16.msra.mxu2 %v336_v6  ;;  %363 = vmatpush.bf16.msra.mxu3 %v336_v6 }
  0x1e   :  { %153 = vmatpush.bf16.msra.mxu0 %v335_v7  ;;  %364 = vmatpush.bf16.msra.mxu1 %v335_v7 }
  0x1f   :  { %365 = vmatpush.bf16.msra.mxu2 %v335_v7  ;;  %366 = vmatpush.bf16.msra.mxu3 %v335_v7 }
  0x21   :  { %154 = vmatmul.bf16.vlgmr.msra.gmra.mxu0 %v327_v8  ;;  %164 = vmatmul.bf16.vlgmr.msra.gmra.mxu1 %v329_v9 }
  0x22   :  { %174 = vmatmul.bf16.vlgmr.msra.gmra.mxu2 %v331_v10  ;;  %184 = vmatmul.bf16.vlgmr.msra.gmra.mxu3 %v333_v11 }
  0x31   :  { %159 = vmatmul.bf16.gmra.mxu0 %v328_v12  ;;  %169 = vmatmul.bf16.gmra.mxu1 %v330_v13 }
  0x32   :  { %179 = vmatmul.bf16.gmra.mxu2 %v332_v14  ;;  %189 = vmatmul.bf16.gmra.mxu3 %v334_v15 }
  0x9e   :  { %v155_v17 = vpop.f32.mrf.mxu0  ;;  %v165_v18 = vpop.f32.mrf.mxu1 }
  0x9f   :  { %v156_v19 = vadd.f32 %v439_v16, %v155_v17  ;;  %v166_v20 = vadd.f32 %v439_v16, %v165_v18 }
  0xa1   :  { %vm195_vm0 = vcmp.ge.f32.partialorder %v156_v19, 0.0  ;;  %v211_v21 = vmul.f32 0.25, %v156_v19  ;;  %vm199_vm1 = vcmp.ge.f32.partialorder %v166_v20, 0.0  ;;  %v215_v22 = vmul.f32 0.25, %v166_v20 }
  0xa3   :  { %v227_v23 = vsel %vm195_vm0, %v156_v19, %v211_v21  ;;  %v231_v24 = vsel %vm199_vm1, %v166_v20, %v215_v22 }
  0xa4   :  { %243 = vst [vmem:[%s508_s3] sm:$0xff] %v227_v23 }
  0xa5   :  { %247 = vst [vmem:[%s508_s3 + $0x20] sm:$0xff] %v231_v24  ;;  %v175_v25 = vpop.f32.mrf.mxu2  ;;  %v185_v26 = vpop.f32.mrf.mxu3 }
  0xa6   :  { %v176_v27 = vadd.f32 %v439_v16, %v175_v25  ;;  %v186_v28 = vadd.f32 %v439_v16, %v185_v26  ;;  %v157_v29 = vpop.f32.mrf.mxu0  ;;  %v167_v30 = vpop.f32.mrf.mxu1 }
  0xa7   :  { %v158_v31 = vadd.f32 %v439_v16, %v157_v29  ;;  %v168_v32 = vadd.f32 %v439_v16, %v167_v30 }
  0xa8   :  { %vm203_vm2 = vcmp.ge.f32.partialorder %v176_v27, 0.0  ;;  %v219_v33 = vmul.f32 0.25, %v176_v27  ;;  %vm207_vm3 = vcmp.ge.f32.partialorder %v186_v28, 0.0  ;;  %v223_v34 = vmul.f32 0.25, %v186_v28 }
  0xa9   :  { %vm196_vm4 = vcmp.ge.f32.partialorder %v158_v31, 0.0  ;;  %v212_v35 = vmul.f32 0.25, %v158_v31  ;;  %vm200_vm5 = vcmp.ge.f32.partialorder %v168_v32, 0.0  ;;  %v216_v36 = vmul.f32 0.25, %v168_v32 }
  0xaa   :  { %v235_v37 = vsel %vm203_vm2, %v176_v27, %v219_v33  ;;  %v239_v38 = vsel %vm207_vm3, %v186_v28, %v223_v34 }
  0xab   :  { %251 = vst [vmem:[%s508_s3 + $0x40] sm:$0xff] %v235_v37  ;;  %v228_v39 = vsel %vm196_vm4, %v158_v31, %v212_v35  ;;  %v232_v40 = vsel %vm200_vm5, %v168_v32, %v216_v36 }
  0xac   :  { %255 = vst [vmem:[%s508_s3 + $0x60] sm:$0xff] %v239_v38 }
  0xad   :  { %244 = vst [vmem:[%s508_s3 + $0x8] sm:$0xff] %v228_v39  ;;  %v177_v41 = vpop.f32.mrf.mxu2  ;;  %v187_v42 = vpop.f32.mrf.mxu3 }
  0xae   :  { %248 = vst [vmem:[%s508_s3 + $0x28] sm:$0xff] %v232_v40  ;;  %v178_v43 = vadd.f32 %v439_v16, %v177_v41  ;;  %v188_v44 = vadd.f32 %v439_v16, %v187_v42  ;;  %v160_v45 = vpop.f32.mrf.mxu0  ;;  %v170_v46 = vpop.f32.mrf.mxu1 }
  0xaf   :  { %v161_v47 = vadd.f32 %v439_v16, %v160_v45  ;;  %v171_v48 = vadd.f32 %v439_v16, %v170_v46 }
  0xb0   :  { %vm204_vm6 = vcmp.ge.f32.partialorder %v178_v43, 0.0  ;;  %v220_v49 = vmul.f32 0.25, %v178_v43  ;;  %vm208_vm7 = vcmp.ge.f32.partialorder %v188_v44, 0.0  ;;  %v224_v50 = vmul.f32 0.25, %v188_v44 }
  0xb1   :  { %vm197_vm8 = vcmp.ge.f32.partialorder %v161_v47, 0.0  ;;  %v213_v51 = vmul.f32 0.25, %v161_v47  ;;  %vm201_vm9 = vcmp.ge.f32.partialorder %v171_v48, 0.0  ;;  %v217_v52 = vmul.f32 0.25, %v171_v48 }
  0xb2   :  { %v236_v53 = vsel %vm204_vm6, %v178_v43, %v220_v49  ;;  %v240_v54 = vsel %vm208_vm7, %v188_v44, %v224_v50 }
  0xb3   :  { %252 = vst [vmem:[%s508_s3 + $0x48] sm:$0xff] %v236_v53  ;;  %v229_v55 = vsel %vm197_vm8, %v161_v47, %v213_v51  ;;  %v233_v56 = vsel %vm201_vm9, %v171_v48, %v217_v52 }
  0xb4   :  { %256 = vst [vmem:[%s508_s3 + $0x68] sm:$0xff] %v240_v54 }
  0xb5   :  { %245 = vst [vmem:[%s508_s3 + $0x10] sm:$0xff] %v229_v55  ;;  %v180_v57 = vpop.f32.mrf.mxu2  ;;  %v190_v58 = vpop.f32.mrf.mxu3 }
  0xb6   :  { %249 = vst [vmem:[%s508_s3 + $0x30] sm:$0xff] %v233_v56  ;;  %v181_v59 = vadd.f32 %v439_v16, %v180_v57  ;;  %v191_v60 = vadd.f32 %v439_v16, %v190_v58  ;;  %v162_v61 = vpop.f32.mrf.mxu0  ;;  %v172_v62 = vpop.f32.mrf.mxu1 }
  0xb7   :  { %v163_v63 = vadd.f32 %v439_v16, %v162_v61  ;;  %v173_v0 = vadd.f32 %v439_v16, %v172_v62 }
  0xb8   :  { %vm205_vm10 = vcmp.ge.f32.partialorder %v181_v59, 0.0  ;;  %v221_v1 = vmul.f32 0.25, %v181_v59  ;;  %vm209_vm11 = vcmp.ge.f32.partialorder %v191_v60, 0.0  ;;  %v225_v2 = vmul.f32 0.25, %v191_v60 }
  0xb9   :  { %vm198_vm12 = vcmp.ge.f32.partialorder %v163_v63, 0.0  ;;  %v214_v3 = vmul.f32 0.25, %v163_v63  ;;  %vm202_vm13 = vcmp.ge.f32.partialorder %v173_v0, 0.0  ;;  %v218_v4 = vmul.f32 0.25, %v173_v0 }
  0xba   :  { %v237_v5 = vsel %vm205_vm10, %v181_v59, %v221_v1  ;;  %v241_v6 = vsel %vm209_vm11, %v191_v60, %v225_v2 }
  0xbb   :  { %253 = vst [vmem:[%s508_s3 + $0x50] sm:$0xff] %v237_v5  ;;  %v230_v7 = vsel %vm198_vm12, %v163_v63, %v214_v3  ;;  %v234_v8 = vsel %vm202_vm13, %v173_v0, %v218_v4 }
  0xbc   :  { %257 = vst [vmem:[%s508_s3 + $0x70] sm:$0xff] %v241_v6 }
  0xbd   :  { %246 = vst [vmem:[%s508_s3 + $0x18] sm:$0xff] %v230_v7  ;;  %v182_v9 = vpop.f32.mrf.mxu2  ;;  %v192_v10 = vpop.f32.mrf.mxu3 }
  0xbe   :  { %250 = vst [vmem:[%s508_s3 + $0x38] sm:$0xff] %v234_v8  ;;  %v183_v11 = vadd.f32 %v439_v16, %v182_v9  ;;  %v193_v12 = vadd.f32 %v439_v16, %v192_v10 }
  0xc0   :  { %vm206_vm14 = vcmp.ge.f32.partialorder %v183_v11, 0.0  ;;  %v222_v13 = vmul.f32 0.25, %v183_v11  ;;  %vm210_vm15 = vcmp.ge.f32.partialorder %v193_v12, 0.0  ;;  %v226_v14 = vmul.f32 0.25, %v193_v12 }
  0xc2   :  { %v238_v15 = vsel %vm206_vm14, %v183_v11, %v222_v13  ;;  %v242_v17 = vsel %vm210_vm15, %v193_v12, %v226_v14 }
  0xc3   :  { %254 = vst [vmem:[%s508_s3 + $0x58] sm:$0xff] %v238_v15 }
  0xc4   :  { %258 = vst [vmem:[%s508_s3 + $0x78] sm:$0xff] %v242_v17 }

// kernel: srgan_forward.72
= control target key start
LH: loop header
LB: loop body
LE: loop exit
PB: predicated region body
PF: predicated region fallthrough
CT: control target
= control target key end

     0   :  { %s1393_s1 = inlined_call_operand.vmem [shape: bf16[128,128], index: 1, kind: input, shape index: {}]   ;;  %s1394_s2 = inlined_call_operand.vmem [shape: f32[1,128], index: 2, kind: input, shape index: {}]   ;;  %s1395_s0 = inlined_call_operand.vmem [shape: bf16[512,128], index: 0, kind: input, shape index: {}]   ;;  %s1396_s3 = inlined_call_operand.vmem [shape: f32[512,128], index: 3, kind: output, shape index: {}]  }
   0x1   :  { %v966_v0 = vld [vmem:[%s1393_s1 + $0x38] sm:$0xff]  ;;  %v965_v1 = vld [vmem:[%s1393_s1 + $0x30] sm:$0xff]  ;;  %v964_v2 = vld [vmem:[%s1393_s1 + $0x28] sm:$0xff] }
   0x2   :  { %338 = vmatpush.bf16.msra.mxu0 %v966_v0  ;;  %967 = vmatpush.bf16.msra.mxu1 %v966_v0  ;;  %v963_v3 = vld [vmem:[%s1393_s1 + $0x20] sm:$0xff]  ;;  %v962_v4 = vld [vmem:[%s1393_s1 + $0x18] sm:$0xff]  ;;  %v961_v5 = vld [vmem:[%s1393_s1 + $0x10] sm:$0xff] }
   0x3   :  { %968 = vmatpush.bf16.msra.mxu2 %v966_v0  ;;  %969 = vmatpush.bf16.msra.mxu3 %v966_v0  ;;  %v960_v6 = vld [vmem:[%s1393_s1 + $0x8] sm:$0xff]  ;;  %v959_v7 = vld [vmem:[%s1393_s1] sm:$0xff]  ;;  %v929_v16 = vld [vmem:[%s1395_s0 + $0x10] sm:$0xff] }
   0x4   :  { %v927_v8 = vld [vmem:[%s1395_s0] sm:$0xff]  ;;  %v928_v12 = vld [vmem:[%s1395_s0 + $0x8] sm:$0xff]  ;;  %v937_v17 = vld [vmem:[%s1395_s0 + $0x50] sm:$0xff] }
   0x5   :  { %v935_v9 = vld [vmem:[%s1395_s0 + $0x40] sm:$0xff]  ;;  %v936_v13 = vld [vmem:[%s1395_s0 + $0x48] sm:$0xff]  ;;  %v945_v18 = vld [vmem:[%s1395_s0 + $0x90] sm:$0xff] }
   0x6   :  { %339 = vmatpush.bf16.msra.mxu0 %v965_v1  ;;  %970 = vmatpush.bf16.msra.mxu1 %v965_v1  ;;  %v943_v10 = vld [vmem:[%s1395_s0 + $0x80] sm:$0xff]  ;;  %v944_v14 = vld [vmem:[%s1395_s0 + $0x88] sm:$0xff]  ;;  %v953_v19 = vld [vmem:[%s1395_s0 + $0xd0] sm:$0xff] }
   0x7   :  { %971 = vmatpush.bf16.msra.mxu2 %v965_v1  ;;  %972 = vmatpush.bf16.msra.mxu3 %v965_v1  ;;  %v951_v11 = vld [vmem:[%s1395_s0 + $0xc0] sm:$0xff]  ;;  %v952_v15 = vld [vmem:[%s1395_s0 + $0xc8] sm:$0xff]  ;;  %v930_v20 = vld [vmem:[%s1395_s0 + $0x18] sm:$0xff] }
   0x8   :  { %v938_v21 = vld [vmem:[%s1395_s0 + $0x58] sm:$0xff]  ;;  %v931_v24 = vld [vmem:[%s1395_s0 + $0x20] sm:$0xff]  ;;  %v932_v28 = vld [vmem:[%s1395_s0 + $0x28] sm:$0xff] }
   0x9   :  { %v946_v22 = vld [vmem:[%s1395_s0 + $0x98] sm:$0xff]  ;;  %v939_v25 = vld [vmem:[%s1395_s0 + $0x60] sm:$0xff]  ;;  %v940_v29 = vld [vmem:[%s1395_s0 + $0x68] sm:$0xff] }
   0xa   :  { %340 = vmatpush.bf16.msra.mxu0 %v964_v2  ;;  %973 = vmatpush.bf16.msra.mxu1 %v964_v2  ;;  %v954_v23 = vld [vmem:[%s1395_s0 + $0xd8] sm:$0xff]  ;;  %v947_v26 = vld [vmem:[%s1395_s0 + $0xa0] sm:$0xff]  ;;  %v948_v30 = vld [vmem:[%s1395_s0 + $0xa8] sm:$0xff] }
   0xb   :  { %974 = vmatpush.bf16.msra.mxu2 %v964_v2  ;;  %975 = vmatpush.bf16.msra.mxu3 %v964_v2  ;;  %v955_v27 = vld [vmem:[%s1395_s0 + $0xe0] sm:$0xff]  ;;  %v956_v31 = vld [vmem:[%s1395_s0 + $0xe8] sm:$0xff]  ;;  %v933_v32 = vld [vmem:[%s1395_s0 + $0x30] sm:$0xff] }
   0xc   :  { %v941_v33 = vld [vmem:[%s1395_s0 + $0x70] sm:$0xff]  ;;  %v934_v36 = vld [vmem:[%s1395_s0 + $0x38] sm:$0xff]  ;;  %v1135_v40 = vld [vmem:[%s1394_s2] ss:$0 sm:$0xff] }
   0xd   :  { %v949_v34 = vld [vmem:[%s1395_s0 + $0xb0] sm:$0xff]  ;;  %v942_v37 = vld [vmem:[%s1395_s0 + $0x78] sm:$0xff] }
   0xe   :  { %341 = vmatpush.bf16.msra.mxu0 %v963_v3  ;;  %976 = vmatpush.bf16.msra.mxu1 %v963_v3  ;;  %v957_v35 = vld [vmem:[%s1395_s0 + $0xf0] sm:$0xff]  ;;  %v950_v38 = vld [vmem:[%s1395_s0 + $0xb8] sm:$0xff] }
   0xf   :  { %977 = vmatpush.bf16.msra.mxu2 %v963_v3  ;;  %978 = vmatpush.bf16.msra.mxu3 %v963_v3  ;;  %v958_v39 = vld [vmem:[%s1395_s0 + $0xf8] sm:$0xff] }
  0x12   :  { %342 = vmatpush.bf16.msra.mxu0 %v962_v4  ;;  %979 = vmatpush.bf16.msra.mxu1 %v962_v4 }
  0x13   :  { %980 = vmatpush.bf16.msra.mxu2 %v962_v4  ;;  %981 = vmatpush.bf16.msra.mxu3 %v962_v4 }
  0x16   :  { %343 = vmatpush.bf16.msra.mxu0 %v961_v5  ;;  %982 = vmatpush.bf16.msra.mxu1 %v961_v5 }
  0x17   :  { %983 = vmatpush.bf16.msra.mxu2 %v961_v5  ;;  %984 = vmatpush.bf16.msra.mxu3 %v961_v5 }
  0x1a   :  { %344 = vmatpush.bf16.msra.mxu0 %v960_v6  ;;  %985 = vmatpush.bf16.msra.mxu1 %v960_v6 }
  0x1b   :  { %986 = vmatpush.bf16.msra.mxu2 %v960_v6  ;;  %987 = vmatpush.bf16.msra.mxu3 %v960_v6 }
  0x1e   :  { %345 = vmatpush.bf16.msra.mxu0 %v959_v7  ;;  %988 = vmatpush.bf16.msra.mxu1 %v959_v7 }
  0x1f   :  { %989 = vmatpush.bf16.msra.mxu2 %v959_v7  ;;  %990 = vmatpush.bf16.msra.mxu3 %v959_v7 }
  0x21   :  { %346 = vmatmul.bf16.vlgmr.msra.gmra.mxu0 %v927_v8  ;;  %386 = vmatmul.bf16.vlgmr.msra.gmra.mxu1 %v935_v9 }
  0x22   :  { %426 = vmatmul.bf16.vlgmr.msra.gmra.mxu2 %v943_v10  ;;  %466 = vmatmul.bf16.vlgmr.msra.gmra.mxu3 %v951_v11 }
  0x31   :  { %351 = vmatmul.bf16.gmra.mxu0 %v928_v12  ;;  %391 = vmatmul.bf16.gmra.mxu1 %v936_v13 }
  0x32   :  { %431 = vmatmul.bf16.gmra.mxu2 %v944_v14  ;;  %471 = vmatmul.bf16.gmra.mxu3 %v952_v15 }
  0x41   :  { %356 = vmatmul.bf16.gmra.mxu0 %v929_v16  ;;  %396 = vmatmul.bf16.gmra.mxu1 %v937_v17 }
  0x42   :  { %436 = vmatmul.bf16.gmra.mxu2 %v945_v18  ;;  %476 = vmatmul.bf16.gmra.mxu3 %v953_v19 }
  0x51   :  { %361 = vmatmul.bf16.gmra.mxu0 %v930_v20  ;;  %401 = vmatmul.bf16.gmra.mxu1 %v938_v21 }
  0x52   :  { %441 = vmatmul.bf16.gmra.mxu2 %v946_v22  ;;  %481 = vmatmul.bf16.gmra.mxu3 %v954_v23 }
  0x61   :  { %366 = vmatmul.bf16.gmra.mxu0 %v931_v24  ;;  %406 = vmatmul.bf16.gmra.mxu1 %v939_v25 }
  0x62   :  { %446 = vmatmul.bf16.gmra.mxu2 %v947_v26  ;;  %486 = vmatmul.bf16.gmra.mxu3 %v955_v27 }
  0x71   :  { %371 = vmatmul.bf16.gmra.mxu0 %v932_v28  ;;  %411 = vmatmul.bf16.gmra.mxu1 %v940_v29 }
  0x72   :  { %451 = vmatmul.bf16.gmra.mxu2 %v948_v30  ;;  %491 = vmatmul.bf16.gmra.mxu3 %v956_v31 }
  0x81   :  { %376 = vmatmul.bf16.gmra.mxu0 %v933_v32  ;;  %416 = vmatmul.bf16.gmra.mxu1 %v941_v33 }
  0x82   :  { %456 = vmatmul.bf16.gmra.mxu2 %v949_v34  ;;  %496 = vmatmul.bf16.gmra.mxu3 %v957_v35 }
  0x91   :  { %381 = vmatmul.bf16.gmra.mxu0 %v934_v36  ;;  %421 = vmatmul.bf16.gmra.mxu1 %v942_v37 }
  0x92   :  { %461 = vmatmul.bf16.gmra.mxu2 %v950_v38  ;;  %501 = vmatmul.bf16.gmra.mxu3 %v958_v39 }
  0x9e   :  { %v347_v41 = vpop.f32.mrf.mxu0  ;;  %v387_v42 = vpop.f32.mrf.mxu1 }
  0x9f   :  { %v348_v43 = vadd.f32 %v1135_v40, %v347_v41  ;;  %v388_v44 = vadd.f32 %v1135_v40, %v387_v42 }
  0xa1   :  { %vm507_vm0 = vcmp.ge.f32.partialorder %v348_v43, 0.0  ;;  %v571_v45 = vmul.f32 0.25, %v348_v43  ;;  %vm523_vm1 = vcmp.ge.f32.partialorder %v388_v44, 0.0  ;;  %v587_v46 = vmul.f32 0.25, %v388_v44 }
  0xa3   :  { %v635_v47 = vsel %vm507_vm0, %v348_v43, %v571_v45  ;;  %v651_v48 = vsel %vm523_vm1, %v388_v44, %v587_v46 }
  0xa4   :  { %699 = vst [vmem:[%s1396_s3] sm:$0xff] %v635_v47 }
  0xa5   :  { %715 = vst [vmem:[%s1396_s3 + $0x80] sm:$0xff] %v651_v48  ;;  %v427_v49 = vpop.f32.mrf.mxu2  ;;  %v467_v50 = vpop.f32.mrf.mxu3 }
  0xa6   :  { %v428_v51 = vadd.f32 %v1135_v40, %v427_v49  ;;  %v468_v52 = vadd.f32 %v1135_v40, %v467_v50  ;;  %v349_v53 = vpop.f32.mrf.mxu0  ;;  %v389_v54 = vpop.f32.mrf.mxu1 }
  0xa7   :  { %v350_v55 = vadd.f32 %v1135_v40, %v349_v53  ;;  %v390_v56 = vadd.f32 %v1135_v40, %v389_v54 }
  0xa8   :  { %vm539_vm2 = vcmp.ge.f32.partialorder %v428_v51, 0.0  ;;  %v603_v57 = vmul.f32 0.25, %v428_v51  ;;  %vm555_vm3 = vcmp.ge.f32.partialorder %v468_v52, 0.0  ;;  %v619_v58 = vmul.f32 0.25, %v468_v52 }
  0xa9   :  { %vm508_vm4 = vcmp.ge.f32.partialorder %v350_v55, 0.0  ;;  %v572_v59 = vmul.f32 0.25, %v350_v55  ;;  %vm524_vm5 = vcmp.ge.f32.partialorder %v390_v56, 0.0  ;;  %v588_v60 = vmul.f32 0.25, %v390_v56 }
  0xaa   :  { %v667_v61 = vsel %vm539_vm2, %v428_v51, %v603_v57  ;;  %v683_v62 = vsel %vm555_vm3, %v468_v52, %v619_v58 }
  0xab   :  { %731 = vst [vmem:[%s1396_s3 + $0x100] sm:$0xff] %v667_v61  ;;  %v636_v63 = vsel %vm508_vm4, %v350_v55, %v572_v59  ;;  %v652_v0 = vsel %vm524_vm5, %v390_v56, %v588_v60 }
  0xac   :  { %747 = vst [vmem:[%s1396_s3 + $0x180] sm:$0xff] %v683_v62 }
  0xad   :  { %700 = vst [vmem:[%s1396_s3 + $0x8] sm:$0xff] %v636_v63  ;;  %v429_v1 = vpop.f32.mrf.mxu2  ;;  %v469_v2 = vpop.f32.mrf.mxu3 }
  0xae   :  { %716 = vst [vmem:[%s1396_s3 + $0x88] sm:$0xff] %v652_v0  ;;  %v430_v3 = vadd.f32 %v1135_v40, %v429_v1  ;;  %v470_v4 = vadd.f32 %v1135_v40, %v469_v2  ;;  %v352_v5 = vpop.f32.mrf.mxu0  ;;  %v392_v6 = vpop.f32.mrf.mxu1 }
  0xaf   :  { %v353_v7 = vadd.f32 %v1135_v40, %v352_v5  ;;  %v393_v8 = vadd.f32 %v1135_v40, %v392_v6 }
  0xb0   :  { %vm540_vm6 = vcmp.ge.f32.partialorder %v430_v3, 0.0  ;;  %v604_v9 = vmul.f32 0.25, %v430_v3  ;;  %vm556_vm7 = vcmp.ge.f32.partialorder %v470_v4, 0.0  ;;  %v620_v10 = vmul.f32 0.25, %v470_v4 }
  0xb1   :  { %vm509_vm8 = vcmp.ge.f32.partialorder %v353_v7, 0.0  ;;  %v573_v11 = vmul.f32 0.25, %v353_v7  ;;  %vm525_vm9 = vcmp.ge.f32.partialorder %v393_v8, 0.0  ;;  %v589_v12 = vmul.f32 0.25, %v393_v8 }
  0xb2   :  { %v668_v13 = vsel %vm540_vm6, %v430_v3, %v604_v9  ;;  %v684_v14 = vsel %vm556_vm7, %v470_v4, %v620_v10 }
  0xb3   :  { %732 = vst [vmem:[%s1396_s3 + $0x108] sm:$0xff] %v668_v13  ;;  %v637_v15 = vsel %vm509_vm8, %v353_v7, %v573_v11  ;;  %v653_v16 = vsel %vm525_vm9, %v393_v8, %v589_v12 }
  0xb4   :  { %748 = vst [vmem:[%s1396_s3 + $0x188] sm:$0xff] %v684_v14 }
  0xb5   :  { %701 = vst [vmem:[%s1396_s3 + $0x10] sm:$0xff] %v637_v15  ;;  %v432_v17 = vpop.f32.mrf.mxu2  ;;  %v472_v18 = vpop.f32.mrf.mxu3 }
  0xb6   :  { %717 = vst [vmem:[%s1396_s3 + $0x90] sm:$0xff] %v653_v16  ;;  %v433_v19 = vadd.f32 %v1135_v40, %v432_v17  ;;  %v473_v20 = vadd.f32 %v1135_v40, %v472_v18  ;;  %v354_v21 = vpop.f32.mrf.mxu0  ;;  %v394_v22 = vpop.f32.mrf.mxu1 }
  0xb7   :  { %v355_v23 = vadd.f32 %v1135_v40, %v354_v21  ;;  %v395_v24 = vadd.f32 %v1135_v40, %v394_v22 }
  0xb8   :  { %vm541_vm10 = vcmp.ge.f32.partialorder %v433_v19, 0.0  ;;  %v605_v25 = vmul.f32 0.25, %v433_v19  ;;  %vm557_vm11 = vcmp.ge.f32.partialorder %v473_v20, 0.0  ;;  %v621_v26 = vmul.f32 0.25, %v473_v20 }
  0xb9   :  { %vm510_vm12 = vcmp.ge.f32.partialorder %v355_v23, 0.0  ;;  %v574_v27 = vmul.f32 0.25, %v355_v23  ;;  %vm526_vm13 = vcmp.ge.f32.partialorder %v395_v24, 0.0  ;;  %v590_v28 = vmul.f32 0.25, %v395_v24 }
  0xba   :  { %v669_v29 = vsel %vm541_vm10, %v433_v19, %v605_v25  ;;  %v685_v30 = vsel %vm557_vm11, %v473_v20, %v621_v26 }
  0xbb   :  { %733 = vst [vmem:[%s1396_s3 + $0x110] sm:$0xff] %v669_v29  ;;  %v638_v31 = vsel %vm510_vm12, %v355_v23, %v574_v27  ;;  %v654_v32 = vsel %vm526_vm13, %v395_v24, %v590_v28 }
  0xbc   :  { %749 = vst [vmem:[%s1396_s3 + $0x190] sm:$0xff] %v685_v30 }
  0xbd   :  { %702 = vst [vmem:[%s1396_s3 + $0x18] sm:$0xff] %v638_v31  ;;  %v434_v33 = vpop.f32.mrf.mxu2  ;;  %v474_v34 = vpop.f32.mrf.mxu3 }
  0xbe   :  { %718 = vst [vmem:[%s1396_s3 + $0x98] sm:$0xff] %v654_v32  ;;  %v435_v35 = vadd.f32 %v1135_v40, %v434_v33  ;;  %v475_v36 = vadd.f32 %v1135_v40, %v474_v34  ;;  %v357_v37 = vpop.f32.mrf.mxu0  ;;  %v397_v38 = vpop.f32.mrf.mxu1 }
  0xbf   :  { %v358_v39 = vadd.f32 %v1135_v40, %v357_v37  ;;  %v398_v41 = vadd.f32 %v1135_v40, %v397_v38 }
  0xc0   :  { %vm542_vm14 = vcmp.ge.f32.partialorder %v435_v35, 0.0  ;;  %v606_v42 = vmul.f32 0.25, %v435_v35  ;;  %vm558_vm15 = vcmp.ge.f32.partialorder %v475_v36, 0.0  ;;  %v622_v43 = vmul.f32 0.25, %v475_v36 }
  0xc1   :  { %vm511_vm0 = vcmp.ge.f32.partialorder %v358_v39, 0.0  ;;  %v575_v44 = vmul.f32 0.25, %v358_v39  ;;  %vm527_vm1 = vcmp.ge.f32.partialorder %v398_v41, 0.0  ;;  %v591_v45 = vmul.f32 0.25, %v398_v41 }
  0xc2   :  { %v670_v46 = vsel %vm542_vm14, %v435_v35, %v606_v42  ;;  %v686_v47 = vsel %vm558_vm15, %v475_v36, %v622_v43 }
  0xc3   :  { %734 = vst [vmem:[%s1396_s3 + $0x118] sm:$0xff] %v670_v46  ;;  %v639_v48 = vsel %vm511_vm0, %v358_v39, %v575_v44  ;;  %v655_v49 = vsel %vm527_vm1, %v398_v41, %v591_v45 }
  0xc4   :  { %750 = vst [vmem:[%s1396_s3 + $0x198] sm:$0xff] %v686_v47 }
  0xc5   :  { %703 = vst [vmem:[%s1396_s3 + $0x20] sm:$0xff] %v639_v48  ;;  %v437_v50 = vpop.f32.mrf.mxu2  ;;  %v477_v51 = vpop.f32.mrf.mxu3 }
  0xc6   :  { %719 = vst [vmem:[%s1396_s3 + $0xa0] sm:$0xff] %v655_v49  ;;  %v438_v52 = vadd.f32 %v1135_v40, %v437_v50  ;;  %v478_v53 = vadd.f32 %v1135_v40, %v477_v51  ;;  %v359_v54 = vpop.f32.mrf.mxu0  ;;  %v399_v55 = vpop.f32.mrf.mxu1 }
  0xc7   :  { %v360_v56 = vadd.f32 %v1135_v40, %v359_v54  ;;  %v400_v57 = vadd.f32 %v1135_v40, %v399_v55 }
  0xc8   :  { %vm543_vm2 = vcmp.ge.f32.partialorder %v438_v52, 0.0  ;;  %v607_v58 = vmul.f32 0.25, %v438_v52  ;;  %vm559_vm3 = vcmp.ge.f32.partialorder %v478_v53, 0.0  ;;  %v623_v59 = vmul.f32 0.25, %v478_v53 }
  0xc9   :  { %vm512_vm4 = vcmp.ge.f32.partialorder %v360_v56, 0.0  ;;  %v576_v60 = vmul.f32 0.25, %v360_v56  ;;  %vm528_vm5 = vcmp.ge.f32.partialorder %v400_v57, 0.0  ;;  %v592_v61 = vmul.f32 0.25, %v400_v57 }
  0xca   :  { %v671_v62 = vsel %vm543_vm2, %v438_v52, %v607_v58  ;;  %v687_v63 = vsel %vm559_vm3, %v478_v53, %v623_v59 }
  0xcb   :  { %735 = vst [vmem:[%s1396_s3 + $0x120] sm:$0xff] %v671_v62  ;;  %v640_v0 = vsel %vm512_vm4, %v360_v56, %v576_v60  ;;  %v656_v1 = vsel %vm528_vm5, %v400_v57, %v592_v61 }
  0xcc   :  { %751 = vst [vmem:[%s1396_s3 + $0x1a0] sm:$0xff] %v687_v63 }
  0xcd   :  { %704 = vst [vmem:[%s1396_s3 + $0x28] sm:$0xff] %v640_v0  ;;  %v439_v2 = vpop.f32.mrf.mxu2  ;;  %v479_v3 = vpop.f32.mrf.mxu3 }
  0xce   :  { %720 = vst [vmem:[%s1396_s3 + $0xa8] sm:$0xff] %v656_v1  ;;  %v440_v4 = vadd.f32 %v1135_v40, %v439_v2  ;;  %v480_v5 = vadd.f32 %v1135_v40, %v479_v3  ;;  %v362_v6 = vpop.f32.mrf.mxu0  ;;  %v402_v7 = vpop.f32.mrf.mxu1 }
  0xcf   :  { %v363_v8 = vadd.f32 %v1135_v40, %v362_v6  ;;  %v403_v9 = vadd.f32 %v1135_v40, %v402_v7 }
  0xd0   :  { %vm544_vm6 = vcmp.ge.f32.partialorder %v440_v4, 0.0  ;;  %v608_v10 = vmul.f32 0.25, %v440_v4  ;;  %vm560_vm7 = vcmp.ge.f32.partialorder %v480_v5, 0.0  ;;  %v624_v11 = vmul.f32 0.25, %v480_v5 }
  0xd1   :  { %vm513_vm8 = vcmp.ge.f32.partialorder %v363_v8, 0.0  ;;  %v577_v12 = vmul.f32 0.25, %v363_v8  ;;  %vm529_vm9 = vcmp.ge.f32.partialorder %v403_v9, 0.0  ;;  %v593_v13 = vmul.f32 0.25, %v403_v9 }
  0xd2   :  { %v672_v14 = vsel %vm544_vm6, %v440_v4, %v608_v10  ;;  %v688_v15 = vsel %vm560_vm7, %v480_v5, %v624_v11 }
  0xd3   :  { %736 = vst [vmem:[%s1396_s3 + $0x128] sm:$0xff] %v672_v14  ;;  %v641_v16 = vsel %vm513_vm8, %v363_v8, %v577_v12  ;;  %v657_v17 = vsel %vm529_vm9, %v403_v9, %v593_v13 }
  0xd4   :  { %752 = vst [vmem:[%s1396_s3 + $0x1a8] sm:$0xff] %v688_v15 }
  0xd5   :  { %705 = vst [vmem:[%s1396_s3 + $0x30] sm:$0xff] %v641_v16  ;;  %v442_v18 = vpop.f32.mrf.mxu2  ;;  %v482_v19 = vpop.f32.mrf.mxu3 }
  0xd6   :  { %721 = vst [vmem:[%s1396_s3 + $0xb0] sm:$0xff] %v657_v17  ;;  %v443_v20 = vadd.f32 %v1135_v40, %v442_v18  ;;  %v483_v21 = vadd.f32 %v1135_v40, %v482_v19  ;;  %v364_v22 = vpop.f32.mrf.mxu0  ;;  %v404_v23 = vpop.f32.mrf.mxu1 }
  0xd7   :  { %v365_v24 = vadd.f32 %v1135_v40, %v364_v22  ;;  %v405_v25 = vadd.f32 %v1135_v40, %v404_v23 }
  0xd8   :  { %vm545_vm10 = vcmp.ge.f32.partialorder %v443_v20, 0.0  ;;  %v609_v26 = vmul.f32 0.25, %v443_v20  ;;  %vm561_vm11 = vcmp.ge.f32.partialorder %v483_v21, 0.0  ;;  %v625_v27 = vmul.f32 0.25, %v483_v21 }
  0xd9   :  { %vm514_vm12 = vcmp.ge.f32.partialorder %v365_v24, 0.0  ;;  %v578_v28 = vmul.f32 0.25, %v365_v24  ;;  %vm530_vm13 = vcmp.ge.f32.partialorder %v405_v25, 0.0  ;;  %v594_v29 = vmul.f32 0.25, %v405_v25 }
  0xda   :  { %v673_v30 = vsel %vm545_vm10, %v443_v20, %v609_v26  ;;  %v689_v31 = vsel %vm561_vm11, %v483_v21, %v625_v27 }
  0xdb   :  { %737 = vst [vmem:[%s1396_s3 + $0x130] sm:$0xff] %v673_v30  ;;  %v642_v32 = vsel %vm514_vm12, %v365_v24, %v578_v28  ;;  %v658_v33 = vsel %vm530_vm13, %v405_v25, %v594_v29 }
  0xdc   :  { %753 = vst [vmem:[%s1396_s3 + $0x1b0] sm:$0xff] %v689_v31 }
  0xdd   :  { %706 = vst [vmem:[%s1396_s3 + $0x38] sm:$0xff] %v642_v32  ;;  %v444_v34 = vpop.f32.mrf.mxu2  ;;  %v484_v35 = vpop.f32.mrf.mxu3 }
  0xde   :  { %722 = vst [vmem:[%s1396_s3 + $0xb8] sm:$0xff] %v658_v33  ;;  %v445_v36 = vadd.f32 %v1135_v40, %v444_v34  ;;  %v485_v37 = vadd.f32 %v1135_v40, %v484_v35  ;;  %v367_v38 = vpop.f32.mrf.mxu0  ;;  %v407_v39 = vpop.f32.mrf.mxu1 }
  0xdf   :  { %v368_v41 = vadd.f32 %v1135_v40, %v367_v38  ;;  %v408_v42 = vadd.f32 %v1135_v40, %v407_v39 }
  0xe0   :  { %vm546_vm14 = vcmp.ge.f32.partialorder %v445_v36, 0.0  ;;  %v610_v43 = vmul.f32 0.25, %v445_v36  ;;  %vm562_vm15 = vcmp.ge.f32.partialorder %v485_v37, 0.0  ;;  %v626_v44 = vmul.f32 0.25, %v485_v37 }
  0xe1   :  { %vm515_vm0 = vcmp.ge.f32.partialorder %v368_v41, 0.0  ;;  %v579_v45 = vmul.f32 0.25, %v368_v41  ;;  %vm531_vm1 = vcmp.ge.f32.partialorder %v408_v42, 0.0  ;;  %v595_v46 = vmul.f32 0.25, %v408_v42 }
  0xe2   :  { %v674_v47 = vsel %vm546_vm14, %v445_v36, %v610_v43  ;;  %v690_v48 = vsel %vm562_vm15, %v485_v37, %v626_v44 }
  0xe3   :  { %738 = vst [vmem:[%s1396_s3 + $0x138] sm:$0xff] %v674_v47  ;;  %v643_v49 = vsel %vm515_vm0, %v368_v41, %v579_v45  ;;  %v659_v50 = vsel %vm531_vm1, %v408_v42, %v595_v46 }
  0xe4   :  { %754 = vst [vmem:[%s1396_s3 + $0x1b8] sm:$0xff] %v690_v48 }
  0xe5   :  { %707 = vst [vmem:[%s1396_s3 + $0x40] sm:$0xff] %v643_v49  ;;  %v447_v51 = vpop.f32.mrf.mxu2  ;;  %v487_v52 = vpop.f32.mrf.mxu3 }
  0xe6   :  { %723 = vst [vmem:[%s1396_s3 + $0xc0] sm:$0xff] %v659_v50  ;;  %v448_v53 = vadd.f32 %v1135_v40, %v447_v51  ;;  %v488_v54 = vadd.f32 %v1135_v40, %v487_v52  ;;  %v369_v55 = vpop.f32.mrf.mxu0  ;;  %v409_v56 = vpop.f32.mrf.mxu1 }
  0xe7   :  { %v370_v57 = vadd.f32 %v1135_v40, %v369_v55  ;;  %v410_v58 = vadd.f32 %v1135_v40, %v409_v56 }
  0xe8   :  { %vm547_vm2 = vcmp.ge.f32.partialorder %v448_v53, 0.0  ;;  %v611_v59 = vmul.f32 0.25, %v448_v53  ;;  %vm563_vm3 = vcmp.ge.f32.partialorder %v488_v54, 0.0  ;;  %v627_v60 = vmul.f32 0.25, %v488_v54 }
  0xe9   :  { %vm516_vm4 = vcmp.ge.f32.partialorder %v370_v57, 0.0  ;;  %v580_v61 = vmul.f32 0.25, %v370_v57  ;;  %vm532_vm5 = vcmp.ge.f32.partialorder %v410_v58, 0.0  ;;  %v596_v62 = vmul.f32 0.25, %v410_v58 }
  0xea   :  { %v675_v63 = vsel %vm547_vm2, %v448_v53, %v611_v59  ;;  %v691_v0 = vsel %vm563_vm3, %v488_v54, %v627_v60 }
  0xeb   :  { %739 = vst [vmem:[%s1396_s3 + $0x140] sm:$0xff] %v675_v63  ;;  %v644_v1 = vsel %vm516_vm4, %v370_v57, %v580_v61  ;;  %v660_v2 = vsel %vm532_vm5, %v410_v58, %v596_v62 }
  0xec   :  { %755 = vst [vmem:[%s1396_s3 + $0x1c0] sm:$0xff] %v691_v0 }
  0xed   :  { %708 = vst [vmem:[%s1396_s3 + $0x48] sm:$0xff] %v644_v1  ;;  %v449_v3 = vpop.f32.mrf.mxu2  ;;  %v489_v4 = vpop.f32.mrf.mxu3 }
  0xee   :  { %724 = vst [vmem:[%s1396_s3 + $0xc8] sm:$0xff] %v660_v2  ;;  %v450_v5 = vadd.f32 %v1135_v40, %v449_v3  ;;  %v490_v6 = vadd.f32 %v1135_v40, %v489_v4  ;;  %v372_v7 = vpop.f32.mrf.mxu0  ;;  %v412_v8 = vpop.f32.mrf.mxu1 }
  0xef   :  { %v373_v9 = vadd.f32 %v1135_v40, %v372_v7  ;;  %v413_v10 = vadd.f32 %v1135_v40, %v412_v8 }
  0xf0   :  { %vm548_vm6 = vcmp.ge.f32.partialorder %v450_v5, 0.0  ;;  %v612_v11 = vmul.f32 0.25, %v450_v5  ;;  %vm564_vm7 = vcmp.ge.f32.partialorder %v490_v6, 0.0  ;;  %v628_v12 = vmul.f32 0.25, %v490_v6 }
  0xf1   :  { %vm517_vm8 = vcmp.ge.f32.partialorder %v373_v9, 0.0  ;;  %v581_v13 = vmul.f32 0.25, %v373_v9  ;;  %vm533_vm9 = vcmp.ge.f32.partialorder %v413_v10, 0.0  ;;  %v597_v14 = vmul.f32 0.25, %v413_v10 }
  0xf2   :  { %v676_v15 = vsel %vm548_vm6, %v450_v5, %v612_v11  ;;  %v692_v16 = vsel %vm564_vm7, %v490_v6, %v628_v12 }
  0xf3   :  { %740 = vst [vmem:[%s1396_s3 + $0x148] sm:$0xff] %v676_v15  ;;  %v645_v17 = vsel %vm517_vm8, %v373_v9, %v581_v13  ;;  %v661_v18 = vsel %vm533_vm9, %v413_v10, %v597_v14 }
  0xf4   :  { %756 = vst [vmem:[%s1396_s3 + $0x1c8] sm:$0xff] %v692_v16 }
  0xf5   :  { %709 = vst [vmem:[%s1396_s3 + $0x50] sm:$0xff] %v645_v17  ;;  %v452_v19 = vpop.f32.mrf.mxu2  ;;  %v492_v20 = vpop.f32.mrf.mxu3 }
  0xf6   :  { %725 = vst [vmem:[%s1396_s3 + $0xd0] sm:$0xff] %v661_v18  ;;  %v453_v21 = vadd.f32 %v1135_v40, %v452_v19  ;;  %v493_v22 = vadd.f32 %v1135_v40, %v492_v20  ;;  %v374_v23 = vpop.f32.mrf.mxu0  ;;  %v414_v24 = vpop.f32.mrf.mxu1 }
  0xf7   :  { %v375_v25 = vadd.f32 %v1135_v40, %v374_v23  ;;  %v415_v26 = vadd.f32 %v1135_v40, %v414_v24 }
  0xf8   :  { %vm549_vm10 = vcmp.ge.f32.partialorder %v453_v21, 0.0  ;;  %v613_v27 = vmul.f32 0.25, %v453_v21  ;;  %vm565_vm11 = vcmp.ge.f32.partialorder %v493_v22, 0.0  ;;  %v629_v28 = vmul.f32 0.25, %v493_v22 }
  0xf9   :  { %vm518_vm12 = vcmp.ge.f32.partialorder %v375_v25, 0.0  ;;  %v582_v29 = vmul.f32 0.25, %v375_v25  ;;  %vm534_vm13 = vcmp.ge.f32.partialorder %v415_v26, 0.0  ;;  %v598_v30 = vmul.f32 0.25, %v415_v26 }
  0xfa   :  { %v677_v31 = vsel %vm549_vm10, %v453_v21, %v613_v27  ;;  %v693_v32 = vsel %vm565_vm11, %v493_v22, %v629_v28 }
  0xfb   :  { %741 = vst [vmem:[%s1396_s3 + $0x150] sm:$0xff] %v677_v31  ;;  %v646_v33 = vsel %vm518_vm12, %v375_v25, %v582_v29  ;;  %v662_v34 = vsel %vm534_vm13, %v415_v26, %v598_v30 }
  0xfc   :  { %757 = vst [vmem:[%s1396_s3 + $0x1d0] sm:$0xff] %v693_v32 }
  0xfd   :  { %710 = vst [vmem:[%s1396_s3 + $0x58] sm:$0xff] %v646_v33  ;;  %v454_v35 = vpop.f32.mrf.mxu2  ;;  %v494_v36 = vpop.f32.mrf.mxu3 }
  0xfe   :  { %726 = vst [vmem:[%s1396_s3 + $0xd8] sm:$0xff] %v662_v34  ;;  %v455_v37 = vadd.f32 %v1135_v40, %v454_v35  ;;  %v495_v38 = vadd.f32 %v1135_v40, %v494_v36  ;;  %v377_v39 = vpop.f32.mrf.mxu0  ;;  %v417_v41 = vpop.f32.mrf.mxu1 }
  0xff   :  { %v378_v42 = vadd.f32 %v1135_v40, %v377_v39  ;;  %v418_v43 = vadd.f32 %v1135_v40, %v417_v41 }
 0x100   :  { %vm550_vm14 = vcmp.ge.f32.partialorder %v455_v37, 0.0  ;;  %v614_v44 = vmul.f32 0.25, %v455_v37  ;;  %vm566_vm15 = vcmp.ge.f32.partialorder %v495_v38, 0.0  ;;  %v630_v45 = vmul.f32 0.25, %v495_v38 }
 0x101   :  { %vm519_vm0 = vcmp.ge.f32.partialorder %v378_v42, 0.0  ;;  %v583_v46 = vmul.f32 0.25, %v378_v42  ;;  %vm535_vm1 = vcmp.ge.f32.partialorder %v418_v43, 0.0  ;;  %v599_v47 = vmul.f32 0.25, %v418_v43 }
 0x102   :  { %v678_v48 = vsel %vm550_vm14, %v455_v37, %v614_v44  ;;  %v694_v49 = vsel %vm566_vm15, %v495_v38, %v630_v45 }
 0x103   :  { %742 = vst [vmem:[%s1396_s3 + $0x158] sm:$0xff] %v678_v48  ;;  %v647_v50 = vsel %vm519_vm0, %v378_v42, %v583_v46  ;;  %v663_v51 = vsel %vm535_vm1, %v418_v43, %v599_v47 }
 0x104   :  { %758 = vst [vmem:[%s1396_s3 + $0x1d8] sm:$0xff] %v694_v49 }
 0x105   :  { %711 = vst [vmem:[%s1396_s3 + $0x60] sm:$0xff] %v647_v50  ;;  %v457_v52 = vpop.f32.mrf.mxu2  ;;  %v497_v53 = vpop.f32.mrf.mxu3 }
 0x106   :  { %727 = vst [vmem:[%s1396_s3 + $0xe0] sm:$0xff] %v663_v51  ;;  %v458_v54 = vadd.f32 %v1135_v40, %v457_v52  ;;  %v498_v55 = vadd.f32 %v1135_v40, %v497_v53  ;;  %v379_v56 = vpop.f32.mrf.mxu0  ;;  %v419_v57 = vpop.f32.mrf.mxu1 }
 0x107   :  { %v380_v58 = vadd.f32 %v1135_v40, %v379_v56  ;;  %v420_v59 = vadd.f32 %v1135_v40, %v419_v57 }
 0x108   :  { %vm551_vm2 = vcmp.ge.f32.partialorder %v458_v54, 0.0  ;;  %v615_v60 = vmul.f32 0.25, %v458_v54  ;;  %vm567_vm3 = vcmp.ge.f32.partialorder %v498_v55, 0.0  ;;  %v631_v61 = vmul.f32 0.25, %v498_v55 }
 0x109   :  { %vm520_vm4 = vcmp.ge.f32.partialorder %v380_v58, 0.0  ;;  %v584_v62 = vmul.f32 0.25, %v380_v58  ;;  %vm536_vm5 = vcmp.ge.f32.partialorder %v420_v59, 0.0  ;;  %v600_v63 = vmul.f32 0.25, %v420_v59 }
 0x10a   :  { %v679_v0 = vsel %vm551_vm2, %v458_v54, %v615_v60  ;;  %v695_v1 = vsel %vm567_vm3, %v498_v55, %v631_v61 }
 0x10b   :  { %743 = vst [vmem:[%s1396_s3 + $0x160] sm:$0xff] %v679_v0  ;;  %v648_v2 = vsel %vm520_vm4, %v380_v58, %v584_v62  ;;  %v664_v3 = vsel %vm536_vm5, %v420_v59, %v600_v63 }
 0x10c   :  { %759 = vst [vmem:[%s1396_s3 + $0x1e0] sm:$0xff] %v695_v1 }
 0x10d   :  { %712 = vst [vmem:[%s1396_s3 + $0x68] sm:$0xff] %v648_v2  ;;  %v459_v4 = vpop.f32.mrf.mxu2  ;;  %v499_v5 = vpop.f32.mrf.mxu3 }
 0x10e   :  { %728 = vst [vmem:[%s1396_s3 + $0xe8] sm:$0xff] %v664_v3  ;;  %v460_v6 = vadd.f32 %v1135_v40, %v459_v4  ;;  %v500_v7 = vadd.f32 %v1135_v40, %v499_v5  ;;  %v382_v8 = vpop.f32.mrf.mxu0  ;;  %v422_v9 = vpop.f32.mrf.mxu1 }
 0x10f   :  { %v383_v10 = vadd.f32 %v1135_v40, %v382_v8  ;;  %v423_v11 = vadd.f32 %v1135_v40, %v422_v9 }
 0x110   :  { %vm552_vm6 = vcmp.ge.f32.partialorder %v460_v6, 0.0  ;;  %v616_v12 = vmul.f32 0.25, %v460_v6  ;;  %vm568_vm7 = vcmp.ge.f32.partialorder %v500_v7, 0.0  ;;  %v632_v13 = vmul.f32 0.25, %v500_v7 }
 0x111   :  { %vm521_vm8 = vcmp.ge.f32.partialorder %v383_v10, 0.0  ;;  %v585_v14 = vmul.f32 0.25, %v383_v10  ;;  %vm537_vm9 = vcmp.ge.f32.partialorder %v423_v11, 0.0  ;;  %v601_v15 = vmul.f32 0.25, %v423_v11 }
 0x112   :  { %v680_v16 = vsel %vm552_vm6, %v460_v6, %v616_v12  ;;  %v696_v17 = vsel %vm568_vm7, %v500_v7, %v632_v13 }
 0x113   :  { %744 = vst [vmem:[%s1396_s3 + $0x168] sm:$0xff] %v680_v16  ;;  %v649_v18 = vsel %vm521_vm8, %v383_v10, %v585_v14  ;;  %v665_v19 = vsel %vm537_vm9, %v423_v11, %v601_v15 }
 0x114   :  { %760 = vst [vmem:[%s1396_s3 + $0x1e8] sm:$0xff] %v696_v17 }
 0x115   :  { %713 = vst [vmem:[%s1396_s3 + $0x70] sm:$0xff] %v649_v18  ;;  %v462_v20 = vpop.f32.mrf.mxu2  ;;  %v502_v21 = vpop.f32.mrf.mxu3 }
 0x116   :  { %729 = vst [vmem:[%s1396_s3 + $0xf0] sm:$0xff] %v665_v19  ;;  %v463_v22 = vadd.f32 %v1135_v40, %v462_v20  ;;  %v503_v23 = vadd.f32 %v1135_v40, %v502_v21  ;;  %v384_v24 = vpop.f32.mrf.mxu0  ;;  %v424_v25 = vpop.f32.mrf.mxu1 }
 0x117   :  { %v385_v26 = vadd.f32 %v1135_v40, %v384_v24  ;;  %v425_v27 = vadd.f32 %v1135_v40, %v424_v25 }
 0x118   :  { %vm553_vm10 = vcmp.ge.f32.partialorder %v463_v22, 0.0  ;;  %v617_v28 = vmul.f32 0.25, %v463_v22  ;;  %vm569_vm11 = vcmp.ge.f32.partialorder %v503_v23, 0.0  ;;  %v633_v29 = vmul.f32 0.25, %v503_v23 }
 0x119   :  { %vm522_vm12 = vcmp.ge.f32.partialorder %v385_v26, 0.0  ;;  %v586_v30 = vmul.f32 0.25, %v385_v26  ;;  %vm538_vm13 = vcmp.ge.f32.partialorder %v425_v27, 0.0  ;;  %v602_v31 = vmul.f32 0.25, %v425_v27 }
 0x11a   :  { %v681_v32 = vsel %vm553_vm10, %v463_v22, %v617_v28  ;;  %v697_v33 = vsel %vm569_vm11, %v503_v23, %v633_v29 }
 0x11b   :  { %745 = vst [vmem:[%s1396_s3 + $0x170] sm:$0xff] %v681_v32  ;;  %v650_v34 = vsel %vm522_vm12, %v385_v26, %v586_v30  ;;  %v666_v35 = vsel %vm538_vm13, %v425_v27, %v602_v31 }
 0x11c   :  { %761 = vst [vmem:[%s1396_s3 + $0x1f0] sm:$0xff] %v697_v33 }
 0x11d   :  { %714 = vst [vmem:[%s1396_s3 + $0x78] sm:$0xff] %v650_v34  ;;  %v464_v36 = vpop.f32.mrf.mxu2  ;;  %v504_v37 = vpop.f32.mrf.mxu3 }
 0x11e   :  { %730 = vst [vmem:[%s1396_s3 + $0xf8] sm:$0xff] %v666_v35  ;;  %v465_v38 = vadd.f32 %v1135_v40, %v464_v36  ;;  %v505_v39 = vadd.f32 %v1135_v40, %v504_v37 }
 0x120   :  { %vm554_vm14 = vcmp.ge.f32.partialorder %v465_v38, 0.0  ;;  %v618_v41 = vmul.f32 0.25, %v465_v38  ;;  %vm570_vm15 = vcmp.ge.f32.partialorder %v505_v39, 0.0  ;;  %v634_v42 = vmul.f32 0.25, %v505_v39 }
 0x122   :  { %v682_v43 = vsel %vm554_vm14, %v465_v38, %v618_v41  ;;  %v698_v44 = vsel %vm570_vm15, %v505_v39, %v634_v42 }
 0x123   :  { %746 = vst [vmem:[%s1396_s3 + $0x178] sm:$0xff] %v682_v43 }
 0x124   :  { %762 = vst [vmem:[%s1396_s3 + $0x1f8] sm:$0xff] %v698_v44 }

// kernel: srgan_forward.73
= control target key start
LH: loop header
LB: loop body
LE: loop exit
PB: predicated region body
PF: predicated region fallthrough
CT: control target
= control target key end

     0   :  { %s4501_s12 = smov 0   ;;  %s5379_s0 = inlined_call_operand.vmem [shape: bf16[2048,768], index: 0, kind: input, shape index: {}]   ;;  %s5380_s1 = inlined_call_operand.vmem [shape: bf16[768,128], index: 1, kind: input, shape index: {}]   ;;  %s5381_s2 = inlined_call_operand.vmem [shape: f32[1,128], index: 2, kind: input, shape index: {}]   ;;  %s5382_s3 = inlined_call_operand.vmem [shape: f32[2048,128], index: 3, kind: output, shape index: {}]  }
   0x1 LB: > { %s3107_s13 = sadd.s32 4294967295, %s4479_s12   ;;  %p3111_p0 = scmp.ge.s32.totalorder %s4479_s12, 1  ;;  %s4479_s12 = sphi %s4501_s12, %s13_s12  }
   0x2   : > { %p139_p1 = scmp.lt.s32.totalorder %s4479_s12, 5 }
   0x4   : > { %p140_p2 = pnand %p3111_p0, %p139_p1 }
   0x6   : > { %143 = sbr.rel (%p140_p2) target bundleno = 954 (0x3ba), region = 32 }
   0xb   : > { %v4277_v0 = vld [vmem:[%s5380_s1 + $0x38] sm:$0xff]  ;;  %v4276_v2 = vld [vmem:[%s5380_s1 + $0x30] sm:$0xff]  ;;  %v4275_v4 = vld [vmem:[%s5380_s1 + $0x28] sm:$0xff]  ;;  %s3112_s26 = sshll.u32 %s3107_s13, 6 }
   0xc   : > { %v4285_v1 = vld [vmem:[%s5380_s1 + $0x78] sm:$0xff]  ;;  %4318 = vmatpush.bf16.msra.mxu2 %v4277_v0  ;;  %v4284_v3 = vld [vmem:[%s5380_s1 + $0x70] sm:$0xff]  ;;  %1717 = vmatpush.bf16.msra.mxu0 %v4277_v0  ;;  %v4283_v5 = vld [vmem:[%s5380_s1 + $0x68] sm:$0xff]  ;;  %p165_p3 = scmp.lt.s32.totalorder %s3112_s26, 255 }
   0xd   : > { %4326 = vmatpush.bf16.msra.mxu3 %v4285_v1  ;;  %1886 = vmatpush.bf16.msra.mxu1 %v4285_v1  ;;  %v4274_v6 = vld [vmem:[%s5380_s1 + $0x20] sm:$0xff]  ;;  %v4273_v8 = vld [vmem:[%s5380_s1 + $0x18] sm:$0xff]  ;;  %v4272_v10 = vld [vmem:[%s5380_s1 + $0x10] sm:$0xff] }
   0xe   : > { %v4282_v7 = vld [vmem:[%s5380_s1 + $0x60] sm:$0xff]  ;;  %v4281_v9 = vld [vmem:[%s5380_s1 + $0x58] sm:$0xff]  ;;  %s5430_s26 = smov (!%p165_p3, %s3112_s26), 255  ;;  %v4280_v11 = vld [vmem:[%s5380_s1 + $0x50] sm:$0xff] }
   0xf   : > { %s4334_s13 = smul.u32 24, %s5430_s26  ;;  %v4271_v12 = vld [vmem:[%s5380_s1 + $0x8] sm:$0xff]  ;;  %v4270_v14 = vld [vmem:[%s5380_s1] sm:$0xff]  ;;  %v4293_v20 = vld [vmem:[%s5380_s1 + $0xb8] sm:$0xff]  ;;  %s3115_s21 = sshll.u32 %s5430_s26, 3 }
  0x10   : > { %4319 = vmatpush.bf16.msra.mxu2 %v4276_v2  ;;  %1718 = vmatpush.bf16.msra.mxu0 %v4276_v2  ;;  %v4279_v13 = vld [vmem:[%s5380_s1 + $0x48] sm:$0xff]  ;;  %v4278_v15 = vld [vmem:[%s5380_s1 + $0x40] sm:$0xff]  ;;  %v4301_v23 = vld [vmem:[%s5380_s1 + $0xf8] sm:$0xff]  ;;  %s5072_s24 = scalar_lea.vmem %s5382_s3, %s3115_s21 }
  0x11   : > { %4327 = vmatpush.bf16.msra.mxu3 %v4284_v3  ;;  %1887 = vmatpush.bf16.msra.mxu1 %v4284_v3  ;;  %s4557_s20 = scalar_lea.vmem %s5379_s0, %s4334_s13  ;;  %v4317_v29 = vld [vmem:[%s5380_s1 + $0x178] sm:$0xff]  ;;  %v4292_v32 = vld [vmem:[%s5380_s1 + $0xb0] sm:$0xff]  ;;  %v4291_v60 = vld [vmem:[%s5380_s1 + $0xa8] sm:$0xff] }
  0x12   : > { %v3502_v16 = vld [vmem:[%s4557_s20 + $0x300] sm:$0xf]  ;;  %v4177_v17 = vld [vmem:[%s4557_s20 + $0x314] sm:$0xf0]  ;;  %v4174_v18 = vld [vmem:[%s4557_s20 + $0x304] sm:$0xf] }
  0x13   : > { %v3504_v19 = vld [vmem:[%s4557_s20 + $0x318] sm:$0xf0]  ;;  %v3118_v21 = vld [vmem:[%s4557_s20] sm:$0xf]  ;;  %v4081_v22 = vld [vmem:[%s4557_s20 + $0x14] sm:$0xf0]  ;;  %v3503_v26 = vor.u32 %v4177_v17, %v3502_v16 }
  0x14   : > { %4320 = vmatpush.bf16.msra.mxu2 %v4275_v4  ;;  %1719 = vmatpush.bf16.msra.mxu0 %v4275_v4  ;;  %v4078_v24 = vld [vmem:[%s4557_s20 + $0x4] sm:$0xf]  ;;  %v3120_v25 = vld [vmem:[%s4557_s20 + $0x18] sm:$0xf0]  ;;  %v3507_v27 = vor.u32 %v4174_v18, %v3504_v19  ;;  %v3119_v28 = vor.u32 %v4081_v22, %v3118_v21  ;;  %v4300_v33 = vld [vmem:[%s5380_s1 + $0xf0] sm:$0xff] }
  0x15   : > { %4328 = vmatpush.bf16.msra.mxu3 %v4283_v5  ;;  %1888 = vmatpush.bf16.msra.mxu1 %v4283_v5  ;;  %v3123_v30 = vor.u32 %v4078_v24, %v3120_v25  ;;  %v4309_v31 = vld [vmem:[%s5380_s1 + $0x138] sm:$0xff]  ;;  %v4308_v34 = vld [vmem:[%s5380_s1 + $0x130] sm:$0xff]  ;;  %v4183_v37 = vld [vmem:[%s4557_s20 + $0x344] sm:$0xf0] }
  0x16   : > { %v4316_v35 = vld [vmem:[%s5380_s1 + $0x170] sm:$0xff]  ;;  %v3528_v39 = vld [vmem:[%s4557_s20 + $0x348] sm:$0xf0]  ;;  %v4087_v41 = vld [vmem:[%s4557_s20 + $0x44] sm:$0xf0] }
  0x17   : > { %v3526_v36 = vld [vmem:[%s4557_s20 + $0x330] sm:$0xf]  ;;  %v4180_v38 = vld [vmem:[%s4557_s20 + $0x334] sm:$0xf]  ;;  %v3144_v43 = vld [vmem:[%s4557_s20 + $0x48] sm:$0xf0] }
  0x18   : > { %4321 = vmatpush.bf16.msra.mxu2 %v4274_v6  ;;  %1720 = vmatpush.bf16.msra.mxu0 %v4274_v6  ;;  %v3142_v40 = vld [vmem:[%s4557_s20 + $0x30] sm:$0xf]  ;;  %v4084_v42 = vld [vmem:[%s4557_s20 + $0x34] sm:$0xf]  ;;  %v3527_v44 = vor.u32 %v4183_v37, %v3526_v36  ;;  %v3531_v45 = vor.u32 %v4180_v38, %v3528_v39  ;;  %v3550_v48 = vld [vmem:[%s4557_s20 + $0x360] sm:$0xf] }
  0x19   : > { %4329 = vmatpush.bf16.msra.mxu3 %v4282_v7  ;;  %1889 = vmatpush.bf16.msra.mxu1 %v4282_v7  ;;  %v3143_v46 = vor.u32 %v4087_v41, %v3142_v40  ;;  %v3147_v47 = vor.u32 %v4084_v42, %v3144_v43  ;;  %v4189_v49 = vld [vmem:[%s4557_s20 + $0x374] sm:$0xf0]  ;;  %v4186_v50 = vld [vmem:[%s4557_s20 + $0x364] sm:$0xf]  ;;  %v3552_v51 = vld [vmem:[%s4557_s20 + $0x378] sm:$0xf0] }
  0x1a   : > { %v3166_v52 = vld [vmem:[%s4557_s20 + $0x60] sm:$0xf]  ;;  %v4093_v53 = vld [vmem:[%s4557_s20 + $0x74] sm:$0xf0]  ;;  %v4090_v54 = vld [vmem:[%s4557_s20 + $0x64] sm:$0xf]  ;;  %v3551_v56 = vor.u32 %v4189_v49, %v3550_v48  ;;  %v3555_v57 = vor.u32 %v4186_v50, %v3552_v51 }
  0x1b   : > { %v3168_v55 = vld [vmem:[%s4557_s20 + $0x78] sm:$0xf0]  ;;  %v3167_v58 = vor.u32 %v4093_v53, %v3166_v52  ;;  %v4299_v61 = vld [vmem:[%s5380_s1 + $0xe8] sm:$0xff]  ;;  %v3574_v0 = vld [vmem:[%s4557_s20 + $0x390] sm:$0xf] }
  0x1c   : > { %4322 = vmatpush.bf16.msra.mxu2 %v4273_v8  ;;  %1721 = vmatpush.bf16.msra.mxu0 %v4273_v8  ;;  %v3171_v59 = vor.u32 %v4090_v54, %v3168_v55  ;;  %v4307_v62 = vld [vmem:[%s5380_s1 + $0x128] sm:$0xff]  ;;  %v4192_v2 = vld [vmem:[%s4557_s20 + $0x394] sm:$0xf]  ;;  %v3190_v4 = vld [vmem:[%s4557_s20 + $0x90] sm:$0xf] }
  0x1d   : > { %4330 = vmatpush.bf16.msra.mxu3 %v4281_v9  ;;  %1890 = vmatpush.bf16.msra.mxu1 %v4281_v9  ;;  %v4315_v63 = vld [vmem:[%s5380_s1 + $0x168] sm:$0xff]  ;;  %v4096_v6 = vld [vmem:[%s4557_s20 + $0x94] sm:$0xf]  ;;  %v3214_v16 = vld [vmem:[%s4557_s20 + $0xc0] sm:$0xf] }
  0x1e   : > { %v4195_v1 = vld [vmem:[%s4557_s20 + $0x3a4] sm:$0xf0]  ;;  %v3576_v3 = vld [vmem:[%s4557_s20 + $0x3a8] sm:$0xf0]  ;;  %v4105_v17 = vld [vmem:[%s4557_s20 + $0xd4] sm:$0xf0] }
  0x1f   : > { %v4099_v5 = vld [vmem:[%s4557_s20 + $0xa4] sm:$0xf0]  ;;  %v3192_v7 = vld [vmem:[%s4557_s20 + $0xa8] sm:$0xf0]  ;;  %v3575_v8 = vor.u32 %v4195_v1, %v3574_v0  ;;  %v3579_v9 = vor.u32 %v4192_v2, %v3576_v3  ;;  %v4102_v18 = vld [vmem:[%s4557_s20 + $0xc4] sm:$0xf]  ;;  %v3215_v22 = vor.u32 %v4105_v17, %v3214_v16 }
  0x20   : > { %4323 = vmatpush.bf16.msra.mxu2 %v4272_v10  ;;  %1722 = vmatpush.bf16.msra.mxu0 %v4272_v10  ;;  %v3191_v10 = vor.u32 %v4099_v5, %v3190_v4  ;;  %v3216_v19 = vld [vmem:[%s4557_s20 + $0xd8] sm:$0xf0]  ;;  %v4290_v24 = vld [vmem:[%s5380_s1 + $0xa0] sm:$0xff]  ;;  %v4213_v41 = vld [vmem:[%s4557_s20 + $0x434] sm:$0xf0] }
  0x21   : > { %4331 = vmatpush.bf16.msra.mxu3 %v4280_v11  ;;  %1891 = vmatpush.bf16.msra.mxu1 %v4280_v11  ;;  %v3195_v11 = vor.u32 %v4096_v6, %v3192_v7  ;;  %v4298_v25 = vld [vmem:[%s5380_s1 + $0xe0] sm:$0xff]  ;;  %v3648_v43 = vld [vmem:[%s4557_s20 + $0x438] sm:$0xf0]  ;;  %v3670_v54 = vld [vmem:[%s4557_s20 + $0x450] sm:$0xf] }
  0x22   : > { %v3646_v40 = vld [vmem:[%s4557_s20 + $0x420] sm:$0xf]  ;;  %v4210_v42 = vld [vmem:[%s4557_s20 + $0x424] sm:$0xf]  ;;  %v4289_v52 = vld [vmem:[%s5380_s1 + $0x98] sm:$0xff] }
  0x23   : > { %v3647_v48 = vor.u32 %v4213_v41, %v3646_v40  ;;  %v3651_v49 = vor.u32 %v4210_v42, %v3648_v43  ;;  %v4297_v53 = vld [vmem:[%s5380_s1 + $0xd8] sm:$0xff]  ;;  %v4219_v55 = vld [vmem:[%s4557_s20 + $0x464] sm:$0xf0]  ;;  %v3694_v4 = vld [vmem:[%s4557_s20 + $0x480] sm:$0xf] }
  0x24   : > { %4324 = vmatpush.bf16.msra.mxu2 %v4271_v12  ;;  %1723 = vmatpush.bf16.msra.mxu0 %v4271_v12  ;;  %v3598_v12 = vld [vmem:[%s4557_s20 + $0x3c0] sm:$0xf]  ;;  %v4313_v3 = vld [vmem:[%s5380_s1 + $0x158] sm:$0xff]  ;;  %v4222_v6 = vld [vmem:[%s4557_s20 + $0x484] sm:$0xf] }
  0x25   : > { %4332 = vmatpush.bf16.msra.mxu3 %v4279_v13  ;;  %1892 = vmatpush.bf16.msra.mxu1 %v4279_v13  ;;  %v4201_v13 = vld [vmem:[%s4557_s20 + $0x3d4] sm:$0xf0]  ;;  %v3696_v7 = vld [vmem:[%s4557_s20 + $0x498] sm:$0xf0]  ;;  %v4132_v40 = vld [vmem:[%s4557_s20 + $0x1b4] sm:$0xf] }
  0x26   : > { %v4225_v5 = vld [vmem:[%s4557_s20 + $0x494] sm:$0xf0]  ;;  %v3336_v41 = vld [vmem:[%s4557_s20 + $0x1c8] sm:$0xf0] }
  0x28   : > { %4325 = vmatpush.bf16.msra.mxu2 %v4270_v14  ;;  %1724 = vmatpush.bf16.msra.mxu0 %v4270_v14  ;;  %v4198_v14 = vld [vmem:[%s4557_s20 + $0x3c4] sm:$0xf] }
  0x29   : > { %4333 = vmatpush.bf16.msra.mxu3 %v4278_v15  ;;  %1893 = vmatpush.bf16.msra.mxu1 %v4278_v15  ;;  %v3600_v15 = vld [vmem:[%s4557_s20 + $0x3d8] sm:$0xf0] }
  0x2a   : > { %v3603_v21 = vor.u32 %v4198_v14, %v3600_v15  ;;  %v4700_v14 = vld [vmem:[%s5381_s2] ss:$0 sm:$0xff] }
  0x2b   : > { %1805 = vmatmul.bf16.vlgmr.msra.gmra.mxu2 %v3503_v26  ;;  %1725 = vmatmul.bf16.vlgmr.msra.gmra.mxu0 %v3119_v28  ;;  %v4306_v26 = vld [vmem:[%s5380_s1 + $0x120] sm:$0xff]  ;;  %v3622_v28 = vld [vmem:[%s4557_s20 + $0x3f0] sm:$0xf] }
  0x2c   : > { %2055 = vmatpush.bf16.msrb.mxu2 %v4293_v20  ;;  %1974 = vmatmul.bf16.vlgmr.msra.gmra.mxu3 %v3507_v27  ;;  %v3599_v20 = vor.u32 %v4201_v13, %v3598_v12  ;;  %v4314_v27 = vld [vmem:[%s5380_s1 + $0x160] sm:$0xff]  ;;  %v3695_v12 = vor.u32 %v4225_v5, %v3694_v4  ;;  %v3699_v13 = vor.u32 %v4222_v6, %v3696_v7  ;;  %v3360_v6 = vld [vmem:[%s4557_s20 + $0x1f8] sm:$0xf0] }
  0x2d   : > { %2224 = vmatpush.bf16.msrb.mxu3 %v4301_v23  ;;  %2562 = vmatpush.bf16.msrb.mxu1 %v4317_v29  ;;  %v3219_v23 = vor.u32 %v4102_v18, %v3216_v19  ;;  %v4207_v29 = vld [vmem:[%s4557_s20 + $0x404] sm:$0xf0]  ;;  %v4138_v5 = vld [vmem:[%s4557_s20 + $0x1e4] sm:$0xf] }
  0x2e   : > { %1894 = vmatmul.bf16.vlgmr.msra.gmra.mxu1 %v3123_v30  ;;  %2393 = vmatpush.bf16.msrb.mxu0 %v4309_v31  ;;  %v4204_v30 = vld [vmem:[%s4557_s20 + $0x3f4] sm:$0xf]  ;;  %v3624_v31 = vld [vmem:[%s4557_s20 + $0x408] sm:$0xf0]  ;;  %v3623_v36 = vor.u32 %v4207_v29, %v3622_v28 }
  0x2f   : > { %v3627_v37 = vor.u32 %v4204_v30, %v3624_v31  ;;  %v3718_v30 = vld [vmem:[%s4557_s20 + $0x4b0] sm:$0xf]  ;;  %v4231_v31 = vld [vmem:[%s4557_s20 + $0x4c4] sm:$0xf0] }
  0x30   : > { %2056 = vmatpush.bf16.msrb.mxu2 %v4292_v32  ;;  %v3238_v32 = vld [vmem:[%s4557_s20 + $0xf0] sm:$0xf]  ;;  %v3719_v43 = vor.u32 %v4231_v31, %v3718_v30  ;;  %v4243_v30 = vld [vmem:[%s4557_s20 + $0x524] sm:$0xf0] }
  0x31   : > { %2225 = vmatpush.bf16.msrb.mxu3 %v4300_v33  ;;  %2563 = vmatpush.bf16.msrb.mxu1 %v4316_v35  ;;  %v4111_v33 = vld [vmem:[%s4557_s20 + $0x104] sm:$0xf0]  ;;  %v3240_v35 = vld [vmem:[%s4557_s20 + $0x108] sm:$0xf0] }
  0x32   : > { %2394 = vmatpush.bf16.msrb.mxu0 %v4308_v34  ;;  %v4108_v34 = vld [vmem:[%s4557_s20 + $0xf4] sm:$0xf]  ;;  %v3239_v38 = vor.u32 %v4111_v33, %v3238_v32 }
  0x33   : > { %v3243_v39 = vor.u32 %v4108_v34, %v3240_v35  ;;  %v4228_v33 = vld [vmem:[%s4557_s20 + $0x4b4] sm:$0xf]  ;;  %v3720_v34 = vld [vmem:[%s4557_s20 + $0x4c8] sm:$0xf0] }
  0x34   : > { %2057 = vmatpush.bf16.msrb.mxu2 %v4291_v60  ;;  %v4123_v60 = vld [vmem:[%s4557_s20 + $0x164] sm:$0xf0]  ;;  %v4304_v35 = vld [vmem:[%s5380_s1 + $0x110] sm:$0xff] }
  0x35   : > { %2226 = vmatpush.bf16.msrb.mxu3 %v4299_v61  ;;  %2564 = vmatpush.bf16.msrb.mxu1 %v4315_v63  ;;  %v4120_v61 = vld [vmem:[%s4557_s20 + $0x154] sm:$0xf]  ;;  %v3671_v63 = vor.u32 %v4219_v55, %v3670_v54 }
  0x36   : > { %2395 = vmatpush.bf16.msrb.mxu0 %v4307_v62  ;;  %v3288_v62 = vld [vmem:[%s4557_s20 + $0x168] sm:$0xf0] }
  0x37   : > { %v3291_v2 = vor.u32 %v4120_v61, %v3288_v62  ;;  %v4237_v62 = vld [vmem:[%s4557_s20 + $0x4f4] sm:$0xf0] }
  0x38   : > { %2058 = vmatpush.bf16.msrb.mxu2 %v4290_v24 }
  0x39   : > { %2227 = vmatpush.bf16.msrb.mxu3 %v4298_v25  ;;  %2565 = vmatpush.bf16.msrb.mxu1 %v4314_v27 }
  0x3a   : > { %2396 = vmatpush.bf16.msrb.mxu0 %v4306_v26 }
  0x3b   : > { %1810 = vmatmul.bf16.gmra.mxu2 %v3527_v44  ;;  %1730 = vmatmul.bf16.gmra.mxu0 %v3143_v46  ;;  %v3262_v44 = vld [vmem:[%s4557_s20 + $0x120] sm:$0xf]  ;;  %v4114_v46 = vld [vmem:[%s4557_s20 + $0x124] sm:$0xf] }
  0x3c   : > { %1979 = vmatmul.bf16.gmra.mxu3 %v3531_v45  ;;  %v4117_v45 = vld [vmem:[%s4557_s20 + $0x134] sm:$0xf0]  ;;  %2059 = vmatpush.bf16.msrb.mxu2 %v4289_v52 }
  0x3d   : > { %v3263_v50 = vor.u32 %v4117_v45, %v3262_v44  ;;  %2228 = vmatpush.bf16.msrb.mxu3 %v4297_v53  ;;  %2566 = vmatpush.bf16.msrb.mxu1 %v4313_v3  ;;  %v3723_v44 = vor.u32 %v4228_v33, %v3720_v34  ;;  %v4240_v33 = vld [vmem:[%s4557_s20 + $0x514] sm:$0xf]  ;;  %v3768_v34 = vld [vmem:[%s4557_s20 + $0x528] sm:$0xf0] }
  0x3e   : > { %1899 = vmatmul.bf16.gmra.mxu1 %v3147_v47  ;;  %v3264_v47 = vld [vmem:[%s4557_s20 + $0x138] sm:$0xf0] }
  0x3f   : > { %v3267_v51 = vor.u32 %v4114_v46, %v3264_v47 }
  0x4b   : > { %1815 = vmatmul.bf16.gmra.mxu2 %v3551_v56  ;;  %1735 = vmatmul.bf16.gmra.mxu0 %v3167_v58  ;;  %v4216_v56 = vld [vmem:[%s4557_s20 + $0x454] sm:$0xf]  ;;  %v4305_v58 = vld [vmem:[%s5380_s1 + $0x118] sm:$0xff] }
  0x4c   : > { %1984 = vmatmul.bf16.gmra.mxu3 %v3555_v57  ;;  %v3672_v57 = vld [vmem:[%s4557_s20 + $0x468] sm:$0xf0]  ;;  %2397 = vmatpush.bf16.msrb.mxu0 %v4305_v58 }
  0x4d   : > { %v3675_v0 = vor.u32 %v4216_v56, %v3672_v57 }
  0x4e   : > { %1904 = vmatmul.bf16.gmra.mxu1 %v3171_v59  ;;  %v3286_v59 = vld [vmem:[%s4557_s20 + $0x150] sm:$0xf] }
  0x4f   : > { %v3287_v1 = vor.u32 %v4123_v60, %v3286_v59  ;;  %v3742_v60 = vld [vmem:[%s4557_s20 + $0x4e0] sm:$0xf] }
  0x50   : > { %2398 = vmatpush.bf16.msrb.mxu0 %v4304_v35  ;;  %v4303_v35 = vld [vmem:[%s5380_s1 + $0x108] sm:$0xff] }
  0x54   : > { %2399 = vmatpush.bf16.msrb.mxu0 %v4303_v35 }
  0x5b   : > { %1820 = vmatmul.bf16.gmra.mxu2 %v3575_v8  ;;  %1740 = vmatmul.bf16.gmra.mxu0 %v3191_v10  ;;  %v3310_v8 = vld [vmem:[%s4557_s20 + $0x180] sm:$0xf]  ;;  %v4126_v10 = vld [vmem:[%s4557_s20 + $0x184] sm:$0xf] }
  0x5c   : > { %1989 = vmatmul.bf16.gmra.mxu3 %v3579_v9  ;;  %v4129_v9 = vld [vmem:[%s4557_s20 + $0x194] sm:$0xf0] }
  0x5d   : > { %v3311_v15 = vor.u32 %v4129_v9, %v3310_v8  ;;  %v3743_v8 = vor.u32 %v4237_v62, %v3742_v60 }
  0x5e   : > { %1909 = vmatmul.bf16.gmra.mxu1 %v3195_v11  ;;  %v3312_v11 = vld [vmem:[%s4557_s20 + $0x198] sm:$0xf0] }
  0x5f   : > { %v3315_v17 = vor.u32 %v4126_v10, %v3312_v11 }
  0x6b   : > { %1825 = vmatmul.bf16.gmra.mxu2 %v3599_v20  ;;  %1745 = vmatmul.bf16.gmra.mxu0 %v3215_v22  ;;  %v4288_v20 = vld [vmem:[%s5380_s1 + $0x90] sm:$0xff] }
  0x6c   : > { %1994 = vmatmul.bf16.gmra.mxu3 %v3603_v21  ;;  %v4296_v22 = vld [vmem:[%s5380_s1 + $0xd0] sm:$0xff]  ;;  %2060 = vmatpush.bf16.msrb.mxu2 %v4288_v20 }
  0x6d   : > { %2229 = vmatpush.bf16.msrb.mxu3 %v4296_v22 }
  0x6e   : > { %1914 = vmatmul.bf16.gmra.mxu1 %v3219_v23 }
  0x7b   : > { %1830 = vmatmul.bf16.gmra.mxu2 %v3623_v36  ;;  %1750 = vmatmul.bf16.gmra.mxu0 %v3239_v38  ;;  %v3334_v36 = vld [vmem:[%s4557_s20 + $0x1b0] sm:$0xf] }
  0x7c   : > { %1999 = vmatmul.bf16.gmra.mxu3 %v3627_v37  ;;  %v4135_v37 = vld [vmem:[%s4557_s20 + $0x1c4] sm:$0xf0] }
  0x7d   : > { %v3335_v45 = vor.u32 %v4135_v37, %v3334_v36  ;;  %v3382_v36 = vld [vmem:[%s4557_s20 + $0x210] sm:$0xf]  ;;  %v4147_v37 = vld [vmem:[%s4557_s20 + $0x224] sm:$0xf0] }
  0x7e   : > { %1919 = vmatmul.bf16.gmra.mxu1 %v3243_v39 }
  0x8b   : > { %1835 = vmatmul.bf16.gmra.mxu2 %v3647_v48  ;;  %1755 = vmatmul.bf16.gmra.mxu0 %v3263_v50  ;;  %v3339_v48 = vor.u32 %v4132_v40, %v3336_v41  ;;  %v4144_v40 = vld [vmem:[%s4557_s20 + $0x214] sm:$0xf]  ;;  %v3384_v41 = vld [vmem:[%s4557_s20 + $0x228] sm:$0xf0] }
  0x8c   : > { %2004 = vmatmul.bf16.gmra.mxu3 %v3651_v49  ;;  %v4312_v49 = vld [vmem:[%s5380_s1 + $0x150] sm:$0xff] }
  0x8d   : > { %2567 = vmatpush.bf16.msrb.mxu1 %v4312_v49  ;;  %v3387_v49 = vor.u32 %v4144_v40, %v3384_v41  ;;  %v4252_v41 = vld [vmem:[%s4557_s20 + $0x574] sm:$0xf] }
  0x8e   : > { %1924 = vmatmul.bf16.gmra.mxu1 %v3267_v51 }
  0x9b   : > { %1840 = vmatmul.bf16.gmra.mxu2 %v3671_v63  ;;  %1760 = vmatmul.bf16.gmra.mxu0 %v3287_v1  ;;  %v4234_v63 = vld [vmem:[%s4557_s20 + $0x4e4] sm:$0xf]  ;;  %v3358_v1 = vld [vmem:[%s4557_s20 + $0x1e0] sm:$0xf] }
  0x9c   : > { %2009 = vmatmul.bf16.gmra.mxu3 %v3675_v0  ;;  %v3744_v0 = vld [vmem:[%s4557_s20 + $0x4f8] sm:$0xf0] }
  0x9d   : > { %v3747_v9 = vor.u32 %v4234_v63, %v3744_v0  ;;  %v3790_v0 = vld [vmem:[%s4557_s20 + $0x540] sm:$0xf] }
  0x9e   : > { %1929 = vmatmul.bf16.gmra.mxu1 %v3291_v2  ;;  %v4141_v2 = vld [vmem:[%s4557_s20 + $0x1f4] sm:$0xf0] }
  0x9f   : > { %v3359_v10 = vor.u32 %v4141_v2, %v3358_v1  ;;  %v4249_v2 = vld [vmem:[%s4557_s20 + $0x554] sm:$0xf0] }
  0xa8   : > { %v1726_v16 = vpop.f32.mrf.mxu0 }
  0xa9   : > { %v1727_v18 = vadd.f32 %v4700_v14, %v1726_v16 }
  0xab   : > { %v1895_v19 = vpop.f32.mrf.mxu1  ;;  %1845 = vmatmul.bf16.gmra.mxu2 %v3695_v12  ;;  %1765 = vmatmul.bf16.gmra.mxu0 %v3311_v15 }
  0xac   : > { %2014 = vmatmul.bf16.gmra.mxu3 %v3699_v13  ;;  %v4706_v21 = vadd.f32 %v1895_v19, %v1727_v18  ;;  %v3363_v13 = vor.u32 %v4138_v5, %v3360_v6  ;;  %v4295_v19 = vld [vmem:[%s5380_s1 + $0xc8] sm:$0xff]  ;;  %v3406_v5 = vld [vmem:[%s4557_s20 + $0x240] sm:$0xf]  ;;  %v4153_v6 = vld [vmem:[%s4557_s20 + $0x254] sm:$0xf0] }
  0xad   : > { %2230 = vmatpush.bf16.msrb.mxu3 %v4295_v19 }
  0xae   : > { %1934 = vmatmul.bf16.gmra.mxu1 %v3315_v17  ;;  %v1806_v23 = vpop.f32.mrf.mxu2  ;;  %v4287_v17 = vld [vmem:[%s5380_s1 + $0x88] sm:$0xff] }
  0xaf   : > { %v1975_v24 = vpop.f32.mrf.mxu3  ;;  %v1807_v25 = vadd.f32 %v4700_v14, %v1806_v23  ;;  %2061 = vmatpush.bf16.msrb.mxu2 %v4287_v17 }
  0xb0   : > { %v1728_v27 = vpop.f32.mrf.mxu0 }
  0xb1   : > { %v4712_v26 = vadd.f32 %v1975_v24, %v1807_v25  ;;  %v1729_v28 = vadd.f32 %v4700_v14, %v1728_v27 }
  0xb3   : > { %v1897_v29 = vpop.f32.mrf.mxu1 }
  0xb4   : > { %v4717_v32 = vadd.f32 %v1897_v29, %v1729_v28  ;;  %v3766_v29 = vld [vmem:[%s4557_s20 + $0x510] sm:$0xf] }
  0xb6   : > { %v1808_v38 = vpop.f32.mrf.mxu2 }
  0xb7   : > { %v1977_v39 = vpop.f32.mrf.mxu3  ;;  %v1809_v42 = vadd.f32 %v4700_v14, %v1808_v38 }
  0xb8   : > { %v1731_v47 = vpop.f32.mrf.mxu0 }
  0xb9   : > { %v4729_v46 = vadd.f32 %v1977_v39, %v1809_v42  ;;  %v1732_v50 = vadd.f32 %v4700_v14, %v1731_v47 }
  0xbb   : > { %v1900_v51 = vpop.f32.mrf.mxu1  ;;  %1850 = vmatmul.bf16.gmra.mxu2 %v3719_v43  ;;  %1770 = vmatmul.bf16.gmra.mxu0 %v3335_v45  ;;  %v3767_v43 = vor.u32 %v4243_v30, %v3766_v29  ;;  %v3383_v45 = vor.u32 %v4147_v37, %v3382_v36 }
  0xbc   : > { %2019 = vmatmul.bf16.gmra.mxu3 %v3723_v44  ;;  %v4735_v52 = vadd.f32 %v1900_v51, %v1732_v50  ;;  %v3771_v44 = vor.u32 %v4240_v33, %v3768_v34  ;;  %v4311_v50 = vld [vmem:[%s5380_s1 + $0x148] sm:$0xff] }
  0xbd   : > { %2568 = vmatpush.bf16.msrb.mxu1 %v4311_v50  ;;  %v4156_v50 = vld [vmem:[%s4557_s20 + $0x274] sm:$0xf] }
  0xbe   : > { %1939 = vmatmul.bf16.gmra.mxu1 %v3339_v48  ;;  %v1811_v53 = vpop.f32.mrf.mxu2 }
  0xbf   : > { %v1980_v54 = vpop.f32.mrf.mxu3  ;;  %v1812_v55 = vadd.f32 %v4700_v14, %v1811_v53 }
  0xc0   : > { %v1733_v57 = vpop.f32.mrf.mxu0 }
  0xc1   : > { %v4738_v56 = vadd.f32 %v1980_v54, %v1812_v55  ;;  %v1734_v58 = vadd.f32 %v4700_v14, %v1733_v57 }
  0xc3   : > { %v1902_v59 = vpop.f32.mrf.mxu1 }
  0xc4   : > { %v4742_v61 = vadd.f32 %v1902_v59, %v1734_v58 }
  0xc6   : > { %v1813_v3 = vpop.f32.mrf.mxu2 }
  0xc7   : > { %v1982_v4 = vpop.f32.mrf.mxu3  ;;  %v1814_v7 = vadd.f32 %v4700_v14, %v1813_v3  ;;  %v4246_v3 = vld [vmem:[%s4557_s20 + $0x544] sm:$0xf] }
  0xc8   : > { %v1736_v12 = vpop.f32.mrf.mxu0 }
  0xc9   : > { %v4752_v11 = vadd.f32 %v1982_v4, %v1814_v7  ;;  %v1737_v15 = vadd.f32 %v4700_v14, %v1736_v12  ;;  %v3792_v4 = vld [vmem:[%s4557_s20 + $0x558] sm:$0xf0] }
  0xcb   : > { %v1905_v16 = vpop.f32.mrf.mxu1  ;;  %1855 = vmatmul.bf16.gmra.mxu2 %v3743_v8  ;;  %1775 = vmatmul.bf16.gmra.mxu0 %v3359_v10  ;;  %v3408_v10 = vld [vmem:[%s4557_s20 + $0x258] sm:$0xf0] }
  0xcc   : > { %2024 = vmatmul.bf16.gmra.mxu3 %v3747_v9  ;;  %v4758_v18 = vadd.f32 %v1905_v16, %v1737_v15  ;;  %v4150_v9 = vld [vmem:[%s4557_s20 + $0x244] sm:$0xf]  ;;  %v3795_v15 = vor.u32 %v4246_v3, %v3792_v4  ;;  %v3407_v16 = vor.u32 %v4153_v6, %v3406_v5 }
  0xce   : > { %1944 = vmatmul.bf16.gmra.mxu1 %v3363_v13  ;;  %v1816_v20 = vpop.f32.mrf.mxu2  ;;  %v3791_v13 = vor.u32 %v4249_v2, %v3790_v0  ;;  %v4310_v0 = vld [vmem:[%s5380_s1 + $0x140] sm:$0xff] }
  0xcf   : > { %v1985_v22 = vpop.f32.mrf.mxu3  ;;  %v1817_v23 = vadd.f32 %v4700_v14, %v1816_v20  ;;  %v3411_v20 = vor.u32 %v4150_v9, %v3408_v10  ;;  %2569 = vmatpush.bf16.msrb.mxu1 %v4310_v0  ;;  %v3864_v0 = vld [vmem:[%s4557_s20 + $0x5e8] sm:$0xf0] }
  0xd0   : > { %v1738_v25 = vpop.f32.mrf.mxu0 }
  0xd1   : > { %v4764_v24 = vadd.f32 %v1985_v22, %v1817_v23  ;;  %v1739_v27 = vadd.f32 %v4700_v14, %v1738_v25  ;;  %v4286_v25 = vld [vmem:[%s5380_s1 + $0x80] sm:$0xff] }
  0xd2   : > { %2062 = vmatpush.bf16.msrb.mxu2 %v4286_v25 }
  0xd3   : > { %v1907_v28 = vpop.f32.mrf.mxu1 }
  0xd4   : > { %v4769_v31 = vadd.f32 %v1907_v28, %v1739_v27  ;;  %v4294_v28 = vld [vmem:[%s5380_s1 + $0xc0] sm:$0xff] }
  0xd5   : > { %2231 = vmatpush.bf16.msrb.mxu3 %v4294_v28 }
  0xd6   : > { %v1818_v38 = vpop.f32.mrf.mxu2 }
  0xd7   : > { %v1987_v39 = vpop.f32.mrf.mxu3  ;;  %v1819_v42 = vadd.f32 %v4700_v14, %v1818_v38  ;;  %v3814_v38 = vld [vmem:[%s4557_s20 + $0x570] sm:$0xf] }
  0xd8   : > { %v1741_v48 = vpop.f32.mrf.mxu0 }
  0xd9   : > { %v4781_v47 = vadd.f32 %v1987_v39, %v1819_v42  ;;  %v1742_v51 = vadd.f32 %v4700_v14, %v1741_v48  ;;  %v4255_v39 = vld [vmem:[%s4557_s20 + $0x584] sm:$0xf0]  ;;  %v3816_v42 = vld [vmem:[%s4557_s20 + $0x588] sm:$0xf0] }
  0xdb   : > { %v1910_v53 = vpop.f32.mrf.mxu1  ;;  %1860 = vmatmul.bf16.gmra.mxu2 %v3767_v43  ;;  %1780 = vmatmul.bf16.gmra.mxu0 %v3383_v45  ;;  %v4302_v43 = vld [vmem:[%s5380_s1 + $0x100] sm:$0xff]  ;;  %v4159_v45 = vld [vmem:[%s4557_s20 + $0x284] sm:$0xf0] }
  0xdc   : > { %2029 = vmatmul.bf16.gmra.mxu3 %v3771_v44  ;;  %v4787_v54 = vadd.f32 %v1910_v53, %v1742_v51  ;;  %v3430_v44 = vld [vmem:[%s4557_s20 + $0x270] sm:$0xf]  ;;  %v3432_v51 = vld [vmem:[%s4557_s20 + $0x288] sm:$0xf0]  ;;  %2400 = vmatpush.bf16.msrb.mxu0 %v4302_v43 }
  0xde   : > { %1949 = vmatmul.bf16.gmra.mxu1 %v3387_v49  ;;  %v1821_v55 = vpop.f32.mrf.mxu2 }
  0xdf   : > { %v1990_v57 = vpop.f32.mrf.mxu3  ;;  %v1822_v58 = vadd.f32 %v4700_v14, %v1821_v55  ;;  %v3815_v55 = vor.u32 %v4255_v39, %v3814_v38 }
  0xe0   : > { %v1743_v60 = vpop.f32.mrf.mxu0 }
  0xe1   : > { %v4790_v59 = vadd.f32 %v1990_v57, %v1822_v58  ;;  %v1744_v62 = vadd.f32 %v4700_v14, %v1743_v60  ;;  %v3819_v57 = vor.u32 %v4252_v41, %v3816_v42  ;;  %v3431_v58 = vor.u32 %v4159_v45, %v3430_v44 }
  0xe3   : > { %v1912_v63 = vpop.f32.mrf.mxu1 }
  0xe4   : > { %v4794_v1 = vadd.f32 %v1912_v63, %v1744_v62  ;;  %v3435_v63 = vor.u32 %v4156_v50, %v3432_v51 }
  0xe6   : > { %v1823_v7 = vpop.f32.mrf.mxu2 }
  0xe7   : > { %v1992_v8 = vpop.f32.mrf.mxu3  ;;  %v1824_v12 = vadd.f32 %v4700_v14, %v1823_v7 }
  0xe8   : > { %v1746_v19 = vpop.f32.mrf.mxu0 }
  0xe9   : > { %v4804_v17 = vadd.f32 %v1992_v8, %v1824_v12  ;;  %v1747_v22 = vadd.f32 %v4700_v14, %v1746_v19  ;;  %v4258_v19 = vld [vmem:[%s4557_s20 + $0x5a4] sm:$0xf] }
  0xeb   : > { %v1915_v23 = vpop.f32.mrf.mxu1  ;;  %1865 = vmatmul.bf16.gmra.mxu2 %v3791_v13  ;;  %1785 = vmatmul.bf16.gmra.mxu0 %v3407_v16  ;;  %v3838_v13 = vld [vmem:[%s4557_s20 + $0x5a0] sm:$0xf]  ;;  %v4261_v16 = vld [vmem:[%s4557_s20 + $0x5b4] sm:$0xf0] }
  0xec   : > { %2034 = vmatmul.bf16.gmra.mxu3 %v3795_v15  ;;  %v4810_v27 = vadd.f32 %v1915_v23, %v1747_v22  ;;  %v3454_v22 = vld [vmem:[%s4557_s20 + $0x2a0] sm:$0xf]  ;;  %v4165_v23 = vld [vmem:[%s4557_s20 + $0x2b4] sm:$0xf0] }
  0xee   : > { %1954 = vmatmul.bf16.gmra.mxu1 %v3411_v20  ;;  %v1826_v29 = vpop.f32.mrf.mxu2  ;;  %v3840_v20 = vld [vmem:[%s4557_s20 + $0x5b8] sm:$0xf0] }
  0xef   : > { %v1995_v30 = vpop.f32.mrf.mxu3  ;;  %v1827_v33 = vadd.f32 %v4700_v14, %v1826_v29  ;;  %v4162_v29 = vld [vmem:[%s4557_s20 + $0x2a4] sm:$0xf] }
  0xf0   : > { %v1748_v35 = vpop.f32.mrf.mxu0 }
  0xf1   : > { %v4816_v34 = vadd.f32 %v1995_v30, %v1827_v33  ;;  %v1749_v36 = vadd.f32 %v4700_v14, %v1748_v35  ;;  %v3456_v30 = vld [vmem:[%s4557_s20 + $0x2b8] sm:$0xf0]  ;;  %v3839_v35 = vor.u32 %v4261_v16, %v3838_v13 }
  0xf2   : > { %v3459_v41 = vor.u32 %v4162_v29, %v3456_v30 }
  0xf3   : > { %v1917_v37 = vpop.f32.mrf.mxu1 }
  0xf4   : > { %v4821_v40 = vadd.f32 %v1917_v37, %v1749_v36  ;;  %v3843_v36 = vor.u32 %v4258_v19, %v3840_v20  ;;  %v3455_v37 = vor.u32 %v4165_v23, %v3454_v22 }
  0xf6   : > { %v1828_v48 = vpop.f32.mrf.mxu2 }
  0xf7   : > { %v1997_v49 = vpop.f32.mrf.mxu3  ;;  %v1829_v53 = vadd.f32 %v4700_v14, %v1828_v48 }
  0xf8   : > { %v1751_v62 = vpop.f32.mrf.mxu0 }
  0xf9   : > { %v4833_v60 = vadd.f32 %v1997_v49, %v1829_v53  ;;  %v1752_v2 = vadd.f32 %v4700_v14, %v1751_v62  ;;  %v4267_v62 = vld [vmem:[%s4557_s20 + $0x5e4] sm:$0xf0] }
  0xfb   : > { %5383 = vst [vmem:[#allocation2_spill] sm:$0xff] %v4833_v60  ;;  %v1920_v3 = vpop.f32.mrf.mxu1  ;;  %1870 = vmatmul.bf16.gmra.mxu2 %v3815_v55  ;;  %1790 = vmatmul.bf16.gmra.mxu0 %v3431_v58 }
  0xfc   : > { %2039 = vmatmul.bf16.gmra.mxu3 %v3819_v57  ;;  %v4839_v4 = vadd.f32 %v1920_v3, %v1752_v2  ;;  %v3862_v57 = vld [vmem:[%s4557_s20 + $0x5d0] sm:$0xf]  ;;  %v4171_v3 = vld [vmem:[%s4557_s20 + $0x2e4] sm:$0xf0] }
  0xfd   : > { %v3478_v2 = vld [vmem:[%s4557_s20 + $0x2d0] sm:$0xf] }
  0xfe   : > { %1959 = vmatmul.bf16.gmra.mxu1 %v3435_v63  ;;  %v1831_v5 = vpop.f32.mrf.mxu2  ;;  %v4264_v63 = vld [vmem:[%s4557_s20 + $0x5d4] sm:$0xf]  ;;  %v3479_v16 = vor.u32 %v4171_v3, %v3478_v2 }
  0xff   : > { %v2000_v6 = vpop.f32.mrf.mxu3  ;;  %v1832_v7 = vadd.f32 %v4700_v14, %v1831_v5  ;;  %v3867_v13 = vor.u32 %v4264_v63, %v3864_v0 }
 0x100   : > { %v1753_v9 = vpop.f32.mrf.mxu0 }
 0x101   : > { %v4842_v8 = vadd.f32 %v2000_v6, %v1832_v7  ;;  %v1754_v10 = vadd.f32 %v4700_v14, %v1753_v9  ;;  %v4168_v7 = vld [vmem:[%s4557_s20 + $0x2d4] sm:$0xf]  ;;  %v3480_v9 = vld [vmem:[%s4557_s20 + $0x2e8] sm:$0xf0] }
 0x102   : > { %v3483_v22 = vor.u32 %v4168_v7, %v3480_v9 }
 0x103   : > { %5384 = vst [vmem:[#allocation3_spill] sm:$0xff] %v4842_v8  ;;  %v1922_v12 = vpop.f32.mrf.mxu1 }
 0x104   : > { %v4846_v15 = vadd.f32 %v1922_v12, %v1754_v10  ;;  %v3863_v12 = vor.u32 %v4267_v62, %v3862_v57  ;;  %v4080_v57 = vld [vmem:[%s4557_s20 + $0x14] sm:$0xf]  ;;  %v3136_v62 = vld [vmem:[%s4557_s20 + $0x28] sm:$0xf0] }
 0x105   : > { %v3139_v7 = vor.u32 %v4080_v57, %v3136_v62 }
 0x106   : > { %v1833_v25 = vpop.f32.mrf.mxu2 }
 0x107   : > { %v2002_v28 = vpop.f32.mrf.mxu3  ;;  %v1834_v33 = vadd.f32 %v4700_v14, %v1833_v25 }
 0x108   : > { %v1756_v39 = vpop.f32.mrf.mxu0 }
 0x109   : > { %v4856_v38 = vadd.f32 %v2002_v28, %v1834_v33  ;;  %v1757_v42 = vadd.f32 %v4700_v14, %v1756_v39 }
 0x10b   : > { %5385 = vst [vmem:[#allocation4_spill] sm:$0xff] %v4856_v38  ;;  %v1925_v43 = vpop.f32.mrf.mxu1  ;;  %1875 = vmatmul.bf16.gmra.mxu2 %v3839_v35  ;;  %1795 = vmatmul.bf16.gmra.mxu0 %v3455_v37  ;;  %v3352_v38 = vld [vmem:[%s4557_s20 + $0x1d8] sm:$0xf0] }
 0x10c   : > { %2044 = vmatmul.bf16.gmra.mxu3 %v3843_v36  ;;  %v4859_v44 = vadd.f32 %v1925_v43, %v1757_v42  ;;  %v4082_v43 = vld [vmem:[%s4557_s20 + $0x1c] sm:$0xf0] }
 0x10e   : > { %1964 = vmatmul.bf16.gmra.mxu1 %v3459_v41  ;;  %v1836_v45 = vpop.f32.mrf.mxu2  ;;  %v3126_v41 = vld [vmem:[%s4557_s20 + $0x8] sm:$0xf] }
 0x10f   : > { %v2005_v48 = vpop.f32.mrf.mxu3  ;;  %v1837_v49 = vadd.f32 %v4700_v14, %v1836_v45  ;;  %v4079_v45 = vld [vmem:[%s4557_s20 + $0xc] sm:$0xf]  ;;  %v3127_v0 = vor.u32 %v4082_v43, %v3126_v41  ;;  %v3158_v41 = vld [vmem:[%s4557_s20 + $0x40] sm:$0xf]  ;;  %v4089_v43 = vld [vmem:[%s4557_s20 + $0x54] sm:$0xf0] }
 0x110   : > { %v1758_v51 = vpop.f32.mrf.mxu0  ;;  %v3159_v62 = vor.u32 %v4089_v43, %v3158_v41  ;;  %v3182_v41 = vld [vmem:[%s4557_s20 + $0x70] sm:$0xf]  ;;  %v4095_v43 = vld [vmem:[%s4557_s20 + $0x84] sm:$0xf0] }
 0x111   : > { %v4862_v50 = vadd.f32 %v2005_v48, %v1837_v49  ;;  %v1759_v53 = vadd.f32 %v4700_v14, %v1758_v51  ;;  %v3128_v48 = vld [vmem:[%s4557_s20 + $0x20] sm:$0xf0]  ;;  %v3134_v49 = vld [vmem:[%s4557_s20 + $0x10] sm:$0xf]  ;;  %v4083_v51 = vld [vmem:[%s4557_s20 + $0x24] sm:$0xf0] }
 0x112   : > { %v3131_v2 = vor.u32 %v4079_v45, %v3128_v48  ;;  %v3135_v3 = vor.u32 %v4083_v51, %v3134_v49  ;;  %v4086_v49 = vld [vmem:[%s4557_s20 + $0x44] sm:$0xf]  ;;  %v3160_v51 = vld [vmem:[%s4557_s20 + $0x58] sm:$0xf0] }
 0x113   : > { %5386 = vst [vmem:[#allocation5_spill] sm:$0xff] %v4862_v50  ;;  %v1927_v55 = vpop.f32.mrf.mxu1 }
 0x114   : > { %v4866_v58 = vadd.f32 %v1927_v55, %v1759_v53 }
 0x116   : > { %v1838_v5 = vpop.f32.mrf.mxu2 }
 0x117   : > { %v2007_v6 = vpop.f32.mrf.mxu3  ;;  %v1839_v10 = vadd.f32 %v4700_v14, %v1838_v5 }
 0x118   : > { %v1761_v20 = vpop.f32.mrf.mxu0 }
 0x119   : > { %v4876_v19 = vadd.f32 %v2007_v6, %v1839_v10  ;;  %v1762_v23 = vadd.f32 %v4700_v14, %v1761_v20 }
 0x11b   : > { %5387 = vst [vmem:[#allocation6_spill] sm:$0xff] %v4876_v19  ;;  %v1930_v25 = vpop.f32.mrf.mxu1  ;;  %1880 = vmatmul.bf16.gmra.mxu2 %v3863_v12  ;;  %1800 = vmatmul.bf16.gmra.mxu0 %v3479_v16 }
 0x11c   : > { %2049 = vmatmul.bf16.gmra.mxu3 %v3867_v13  ;;  %v4879_v28 = vadd.f32 %v1930_v25, %v1762_v23 }
 0x11e   : > { %1969 = vmatmul.bf16.gmra.mxu1 %v3483_v22  ;;  %v1841_v29 = vpop.f32.mrf.mxu2 }
 0x11f   : > { %v2010_v30 = vpop.f32.mrf.mxu3  ;;  %v1842_v33 = vadd.f32 %v4700_v14, %v1841_v29 }
 0x120   : > { %v1763_v36 = vpop.f32.mrf.mxu0 }
 0x121   : > { %v4882_v35 = vadd.f32 %v2010_v30, %v1842_v33  ;;  %v1764_v37 = vadd.f32 %v4700_v14, %v1763_v36  ;;  %v3150_v30 = vld [vmem:[%s4557_s20 + $0x38] sm:$0xf]  ;;  %v4088_v36 = vld [vmem:[%s4557_s20 + $0x4c] sm:$0xf0] }
 0x123   : > { %5388 = vst [vmem:[#allocation7_spill] sm:$0xff] %v4882_v35  ;;  %v1932_v39 = vpop.f32.mrf.mxu1 }
 0x124   : > { %v4886_v42 = vadd.f32 %v1932_v39, %v1764_v37  ;;  %v4085_v37 = vld [vmem:[%s4557_s20 + $0x3c] sm:$0xf]  ;;  %v3152_v39 = vld [vmem:[%s4557_s20 + $0x50] sm:$0xf0] }
 0x125   : > { %v3155_v57 = vor.u32 %v4085_v37, %v3152_v39  ;;  %v4091_v37 = vld [vmem:[%s4557_s20 + $0x6c] sm:$0xf]  ;;  %v3176_v39 = vld [vmem:[%s4557_s20 + $0x80] sm:$0xf0] }
 0x126   : > { %v1843_v53 = vpop.f32.mrf.mxu2 }
 0x127   : > { %v2012_v55 = vpop.f32.mrf.mxu3  ;;  %v1844_v63 = vadd.f32 %v4700_v14, %v1843_v53 }
 0x128   : > { %v1766_v6 = vpop.f32.mrf.mxu0 }
 0x129   : > { %v4896_v5 = vadd.f32 %v2012_v55, %v1844_v63  ;;  %v1767_v9 = vadd.f32 %v4700_v14, %v1766_v6  ;;  %v3151_v55 = vor.u32 %v4088_v36, %v3150_v30  ;;  %v4094_v36 = vld [vmem:[%s4557_s20 + $0x7c] sm:$0xf0] }
 0x12b   : > { %5389 = vst [vmem:[#allocation8_spill] sm:$0xff] %v4896_v5  ;;  %v1935_v10 = vpop.f32.mrf.mxu1  ;;  %2063 = vmatmul.bf16.vlgmr.msrb.gmra.mxu2 %v3127_v0  ;;  %2401 = vmatmul.bf16.vlgmr.msrb.gmra.mxu0 %v3135_v3 }
 0x12c   : > { %2232 = vmatmul.bf16.vlgmr.msrb.gmra.mxu3 %v3131_v2  ;;  %v4899_v12 = vadd.f32 %v1935_v10, %v1767_v9  ;;  %v3163_v2 = vor.u32 %v4086_v49, %v3160_v51  ;;  %v4092_v49 = vld [vmem:[%s4557_s20 + $0x74] sm:$0xf]  ;;  %v3184_v51 = vld [vmem:[%s4557_s20 + $0x88] sm:$0xf0] }
 0x12e   : > { %2570 = vmatmul.bf16.vlgmr.msrb.gmra.mxu1 %v3139_v7  ;;  %v1846_v13 = vpop.f32.mrf.mxu2 }
 0x12f   : > { %v2015_v16 = vpop.f32.mrf.mxu3  ;;  %v1847_v20 = vadd.f32 %v4700_v14, %v1846_v13 }
 0x130   : > { %v1768_v23 = vpop.f32.mrf.mxu0 }
 0x131   : > { %v4902_v22 = vadd.f32 %v2015_v16, %v1847_v20  ;;  %v1769_v25 = vadd.f32 %v4700_v14, %v1768_v23 }
 0x133   : > { %5390 = vst [vmem:[#allocation9_spill] sm:$0xff] %v4902_v22  ;;  %v1937_v29 = vpop.f32.mrf.mxu1 }
 0x134   : > { %v4906_v33 = vadd.f32 %v1937_v29, %v1769_v25  ;;  %v3174_v29 = vld [vmem:[%s4557_s20 + $0x68] sm:$0xf] }
 0x136   : > { %v1848_v45 = vpop.f32.mrf.mxu2 }
 0x137   : > { %v2017_v48 = vpop.f32.mrf.mxu3  ;;  %v1849_v53 = vadd.f32 %v4700_v14, %v1848_v45 }
 0x138   : > { %v1771_v0 = vpop.f32.mrf.mxu0 }
 0x139   : > { %v4916_v63 = vadd.f32 %v2017_v48, %v1849_v53  ;;  %v1772_v3 = vadd.f32 %v4700_v14, %v1771_v0 }
 0x13b   : > { %5391 = vst [vmem:[#allocation10_spill] sm:$0xff] %v4916_v63  ;;  %v1940_v6 = vpop.f32.mrf.mxu1  ;;  %2068 = vmatmul.bf16.gmra.mxu2 %v3151_v55  ;;  %2406 = vmatmul.bf16.gmra.mxu0 %v3159_v62  ;;  %v3175_v55 = vor.u32 %v4094_v36, %v3174_v29  ;;  %v3183_v62 = vor.u32 %v4095_v43, %v3182_v41  ;;  %v4100_v43 = vld [vmem:[%s4557_s20 + $0xac] sm:$0xf0] }
 0x13c   : > { %2237 = vmatmul.bf16.gmra.mxu3 %v3155_v57  ;;  %v4919_v7 = vadd.f32 %v1940_v6, %v1772_v3  ;;  %v3179_v57 = vor.u32 %v4091_v37, %v3176_v39  ;;  %v3187_v3 = vor.u32 %v4092_v49, %v3184_v51  ;;  %v3198_v39 = vld [vmem:[%s4557_s20 + $0x98] sm:$0xf]  ;;  %v3206_v49 = vld [vmem:[%s4557_s20 + $0xa0] sm:$0xf] }
 0x13d   : > { %v4101_v51 = vld [vmem:[%s4557_s20 + $0xb4] sm:$0xf0] }
 0x13e   : > { %2575 = vmatmul.bf16.gmra.mxu1 %v3163_v2  ;;  %v1851_v9 = vpop.f32.mrf.mxu2 }
 0x13f   : > { %v2020_v10 = vpop.f32.mrf.mxu3  ;;  %v1852_v13 = vadd.f32 %v4700_v14, %v1851_v9 }
 0x140   : > { %v1773_v20 = vpop.f32.mrf.mxu0 }
 0x141   : > { %v4922_v16 = vadd.f32 %v2020_v10, %v1852_v13  ;;  %v1774_v23 = vadd.f32 %v4700_v14, %v1773_v20 }
 0x143   : > { %5392 = vst [vmem:[#allocation11_spill] sm:$0xff] %v4922_v16  ;;  %v1942_v25 = vpop.f32.mrf.mxu1 }
 0x144   : > { %v4926_v30 = vadd.f32 %v1942_v25, %v1774_v23 }
 0x146   : > { %v1853_v45 = vpop.f32.mrf.mxu2 }
 0x147   : > { %v2022_v48 = vpop.f32.mrf.mxu3  ;;  %v1854_v53 = vadd.f32 %v4700_v14, %v1853_v45  ;;  %v4097_v45 = vld [vmem:[%s4557_s20 + $0x9c] sm:$0xf] }
 0x148   : > { %v1776_v2 = vpop.f32.mrf.mxu0 }
 0x149   : > { %v4936_v0 = vadd.f32 %v2022_v48, %v1854_v53  ;;  %v1777_v6 = vadd.f32 %v4700_v14, %v1776_v2  ;;  %v3200_v48 = vld [vmem:[%s4557_s20 + $0xb0] sm:$0xf0] }
 0x14b   : > { %5393 = vst [vmem:[#allocation12_spill] sm:$0xff] %v4936_v0  ;;  %v1945_v9 = vpop.f32.mrf.mxu1  ;;  %2073 = vmatmul.bf16.gmra.mxu2 %v3175_v55  ;;  %2411 = vmatmul.bf16.gmra.mxu0 %v3183_v62  ;;  %v3208_v62 = vld [vmem:[%s4557_s20 + $0xb8] sm:$0xf0] }
 0x14c   : > { %2242 = vmatmul.bf16.gmra.mxu3 %v3179_v57  ;;  %v4939_v10 = vadd.f32 %v1945_v9, %v1777_v6  ;;  %v4098_v57 = vld [vmem:[%s4557_s20 + $0xa4] sm:$0xf]  ;;  %v3203_v6 = vor.u32 %v4097_v45, %v3200_v48  ;;  %v3207_v9 = vor.u32 %v4101_v51, %v3206_v49 }
 0x14e   : > { %2580 = vmatmul.bf16.gmra.mxu1 %v3187_v3  ;;  %v1856_v13 = vpop.f32.mrf.mxu2  ;;  %v3199_v3 = vor.u32 %v4100_v43, %v3198_v39 }
 0x14f   : > { %v2025_v20 = vpop.f32.mrf.mxu3  ;;  %v1857_v23 = vadd.f32 %v4700_v14, %v1856_v13 }
 0x150   : > { %v1778_v29 = vpop.f32.mrf.mxu0 }
 0x151   : > { %v4942_v25 = vadd.f32 %v2025_v20, %v1857_v23  ;;  %v1779_v36 = vadd.f32 %v4700_v14, %v1778_v29  ;;  %v3211_v23 = vor.u32 %v4098_v57, %v3208_v62  ;;  %v4106_v62 = vld [vmem:[%s4557_s20 + $0xdc] sm:$0xf0] }
 0x153   : > { %5394 = vst [vmem:[#allocation13_spill] sm:$0xff] %v4942_v25  ;;  %v1947_v37 = vpop.f32.mrf.mxu1 }
 0x154   : > { %v4946_v41 = vadd.f32 %v1947_v37, %v1779_v36 }
 0x156   : > { %v1858_v53 = vpop.f32.mrf.mxu2 }
 0x157   : > { %v2027_v55 = vpop.f32.mrf.mxu3  ;;  %v1859_v2 = vadd.f32 %v4700_v14, %v1858_v53 }
 0x158   : > { %v1781_v20 = vpop.f32.mrf.mxu0 }
 0x159   : > { %v4956_v13 = vadd.f32 %v2027_v55, %v1859_v2  ;;  %v1782_v29 = vadd.f32 %v4700_v14, %v1781_v20  ;;  %v3222_v55 = vld [vmem:[%s4557_s20 + $0xc8] sm:$0xf]  ;;  %v4103_v2 = vld [vmem:[%s4557_s20 + $0xcc] sm:$0xf] }
 0x15b   : > { %5395 = vst [vmem:[#allocation14_spill] sm:$0xff] %v4956_v13  ;;  %v1950_v36 = vpop.f32.mrf.mxu1  ;;  %2078 = vmatmul.bf16.gmra.mxu2 %v3199_v3  ;;  %2416 = vmatmul.bf16.gmra.mxu0 %v3207_v9  ;;  %v3224_v3 = vld [vmem:[%s4557_s20 + $0xe0] sm:$0xf0]  ;;  %v4107_v9 = vld [vmem:[%s4557_s20 + $0xe4] sm:$0xf0] }
 0x15c   : > { %2247 = vmatmul.bf16.gmra.mxu3 %v3203_v6  ;;  %v4959_v37 = vadd.f32 %v1950_v36, %v1782_v29  ;;  %v3230_v6 = vld [vmem:[%s4557_s20 + $0xd0] sm:$0xf]  ;;  %v4104_v29 = vld [vmem:[%s4557_s20 + $0xd4] sm:$0xf]  ;;  %v3232_v36 = vld [vmem:[%s4557_s20 + $0xe8] sm:$0xf0] }
 0x15e   : > { %2585 = vmatmul.bf16.gmra.mxu1 %v3211_v23  ;;  %v1861_v39 = vpop.f32.mrf.mxu2 }
 0x15f   : > { %v2030_v43 = vpop.f32.mrf.mxu3  ;;  %v1862_v45 = vadd.f32 %v4700_v14, %v1861_v39 }
 0x160   : > { %v1783_v49 = vpop.f32.mrf.mxu0 }
 0x161   : > { %v4962_v48 = vadd.f32 %v2030_v43, %v1862_v45  ;;  %v1784_v51 = vadd.f32 %v4700_v14, %v1783_v49  ;;  %v3223_v43 = vor.u32 %v4106_v62, %v3222_v55  ;;  %v3227_v45 = vor.u32 %v4103_v2, %v3224_v3 }
 0x163   : > { %5396 = vst [vmem:[#allocation15_spill] sm:$0xff] %v4962_v48  ;;  %v1952_v53 = vpop.f32.mrf.mxu1  ;;  %v3231_v48 = vor.u32 %v4107_v9, %v3230_v6 }
 0x164   : > { %v4966_v57 = vadd.f32 %v1952_v53, %v1784_v51  ;;  %v3235_v51 = vor.u32 %v4104_v29, %v3232_v36  ;;  %v4109_v36 = vld [vmem:[%s4557_s20 + $0xfc] sm:$0xf] }
 0x166   : > { %v1863_v20 = vpop.f32.mrf.mxu2 }
 0x167   : > { %v2032_v23 = vpop.f32.mrf.mxu3  ;;  %v1864_v39 = vadd.f32 %v4700_v14, %v1863_v20 }
 0x168   : > { %v1786_v49 = vpop.f32.mrf.mxu0 }
 0x169   : > { %v4976_v13 = vadd.f32 %v2032_v23, %v1864_v39  ;;  %v1787_v53 = vadd.f32 %v4700_v14, %v1786_v49  ;;  %v3246_v23 = vld [vmem:[%s4557_s20 + $0xf8] sm:$0xf]  ;;  %v3248_v39 = vld [vmem:[%s4557_s20 + $0x110] sm:$0xf0] }
 0x16b   : > { %5397 = vst [vmem:[#allocation16_spill] sm:$0xff] %v4976_v13  ;;  %v1955_v25 = vpop.f32.mrf.mxu1  ;;  %2083 = vmatmul.bf16.gmra.mxu2 %v3223_v43  ;;  %2421 = vmatmul.bf16.gmra.mxu0 %v3231_v48  ;;  %v3254_v48 = vld [vmem:[%s4557_s20 + $0x100] sm:$0xf]  ;;  %v4113_v43 = vld [vmem:[%s4557_s20 + $0x114] sm:$0xf0] }
 0x16c   : > { %2252 = vmatmul.bf16.gmra.mxu3 %v3227_v45  ;;  %v4979_v0 = vadd.f32 %v1955_v25, %v1787_v53  ;;  %v4112_v25 = vld [vmem:[%s4557_s20 + $0x10c] sm:$0xf0]  ;;  %v3256_v53 = vld [vmem:[%s4557_s20 + $0x118] sm:$0xf0] }
 0x16e   : > { %2590 = vmatmul.bf16.gmra.mxu1 %v3235_v51  ;;  %v1866_v55 = vpop.f32.mrf.mxu2  ;;  %v4110_v51 = vld [vmem:[%s4557_s20 + $0x104] sm:$0xf] }
 0x16f   : > { %v2035_v62 = vpop.f32.mrf.mxu3  ;;  %v1867_v2 = vadd.f32 %v4700_v14, %v1866_v55 }
 0x170   : > { %v1788_v6 = vpop.f32.mrf.mxu0 }
 0x171   : > { %v4982_v3 = vadd.f32 %v2035_v62, %v1867_v2  ;;  %v1789_v9 = vadd.f32 %v4700_v14, %v1788_v6  ;;  %v3247_v62 = vor.u32 %v4112_v25, %v3246_v23  ;;  %v3251_v2 = vor.u32 %v4109_v36, %v3248_v39 }
 0x173   : > { %5398 = vst [vmem:[#allocation17_spill] sm:$0xff] %v4982_v3  ;;  %v1957_v20 = vpop.f32.mrf.mxu1  ;;  %v3255_v3 = vor.u32 %v4113_v43, %v3254_v48 }
 0x174   : > { %v4986_v29 = vadd.f32 %v1957_v20, %v1789_v9  ;;  %v3259_v9 = vor.u32 %v4110_v51, %v3256_v53  ;;  %v4115_v53 = vld [vmem:[%s4557_s20 + $0x12c] sm:$0xf] }
 0x176   : > { %v1868_v45 = vpop.f32.mrf.mxu2 }
 0x177   : > { %v2037_v49 = vpop.f32.mrf.mxu3  ;;  %v1869_v55 = vadd.f32 %v4700_v14, %v1868_v45 }
 0x178   : > { %v1791_v6 = vpop.f32.mrf.mxu0 }
 0x179   : > { %v4996_v13 = vadd.f32 %v2037_v49, %v1869_v55  ;;  %v1792_v20 = vadd.f32 %v4700_v14, %v1791_v6  ;;  %v3270_v49 = vld [vmem:[%s4557_s20 + $0x128] sm:$0xf]  ;;  %v3272_v55 = vld [vmem:[%s4557_s20 + $0x140] sm:$0xf0] }
 0x17b   : > { %5399 = vst [vmem:[#allocation18_spill] sm:$0xff] %v4996_v13  ;;  %v1960_v16 = vpop.f32.mrf.mxu1  ;;  %2088 = vmatmul.bf16.gmra.mxu2 %v3247_v62  ;;  %2426 = vmatmul.bf16.gmra.mxu0 %v3255_v3  ;;  %v3278_v3 = vld [vmem:[%s4557_s20 + $0x130] sm:$0xf]  ;;  %v4119_v62 = vld [vmem:[%s4557_s20 + $0x144] sm:$0xf0] }
 0x17c   : > { %2257 = vmatmul.bf16.gmra.mxu3 %v3251_v2  ;;  %v4999_v63 = vadd.f32 %v1960_v16, %v1792_v20  ;;  %v4118_v16 = vld [vmem:[%s4557_s20 + $0x13c] sm:$0xf0]  ;;  %v3280_v20 = vld [vmem:[%s4557_s20 + $0x148] sm:$0xf0] }
 0x17e   : > { %2595 = vmatmul.bf16.gmra.mxu1 %v3259_v9  ;;  %v1871_v23 = vpop.f32.mrf.mxu2  ;;  %v4116_v9 = vld [vmem:[%s4557_s20 + $0x134] sm:$0xf] }
 0x17f   : > { %v2040_v25 = vpop.f32.mrf.mxu3  ;;  %v1872_v36 = vadd.f32 %v4700_v14, %v1871_v23 }
 0x180   : > { %v1793_v48 = vpop.f32.mrf.mxu0 }
 0x181   : > { %v5002_v39 = vadd.f32 %v2040_v25, %v1872_v36  ;;  %v1794_v43 = vadd.f32 %v4700_v14, %v1793_v48  ;;  %v3271_v25 = vor.u32 %v4118_v16, %v3270_v49  ;;  %v3275_v36 = vor.u32 %v4115_v53, %v3272_v55 }
 0x183   : > { %5400 = vst [vmem:[#allocation19_spill] sm:$0xff] %v5002_v39  ;;  %v1962_v45 = vpop.f32.mrf.mxu1  ;;  %v3279_v39 = vor.u32 %v4119_v62, %v3278_v3 }
 0x184   : > { %v5006_v51 = vadd.f32 %v1962_v45, %v1794_v43  ;;  %v3283_v43 = vor.u32 %v4116_v9, %v3280_v20  ;;  %v4121_v20 = vld [vmem:[%s4557_s20 + $0x15c] sm:$0xf] }
 0x186   : > { %v1873_v2 = vpop.f32.mrf.mxu2 }
 0x187   : > { %v2042_v6 = vpop.f32.mrf.mxu3  ;;  %v1874_v23 = vadd.f32 %v4700_v14, %v1873_v2 }
 0x188   : > { %v1796_v48 = vpop.f32.mrf.mxu0 }
 0x189   : > { %v5016_v13 = vadd.f32 %v2042_v6, %v1874_v23  ;;  %v1797_v45 = vadd.f32 %v4700_v14, %v1796_v48  ;;  %v3294_v6 = vld [vmem:[%s4557_s20 + $0x158] sm:$0xf]  ;;  %v3296_v23 = vld [vmem:[%s4557_s20 + $0x170] sm:$0xf0] }
 0x18b   : > { %5401 = vst [vmem:[#allocation20_spill] sm:$0xff] %v5016_v13  ;;  %v1965_v22 = vpop.f32.mrf.mxu1  ;;  %2093 = vmatmul.bf16.gmra.mxu2 %v3271_v25  ;;  %2431 = vmatmul.bf16.gmra.mxu0 %v3279_v39  ;;  %v3302_v39 = vld [vmem:[%s4557_s20 + $0x160] sm:$0xf]  ;;  %v4125_v25 = vld [vmem:[%s4557_s20 + $0x174] sm:$0xf0] }
 0x18c   : > { %2262 = vmatmul.bf16.gmra.mxu3 %v3275_v36  ;;  %v5019_v5 = vadd.f32 %v1965_v22, %v1797_v45  ;;  %v4124_v22 = vld [vmem:[%s4557_s20 + $0x16c] sm:$0xf0]  ;;  %v3304_v45 = vld [vmem:[%s4557_s20 + $0x178] sm:$0xf0] }
 0x18e   : > { %2600 = vmatmul.bf16.gmra.mxu1 %v3283_v43  ;;  %v1876_v49 = vpop.f32.mrf.mxu2  ;;  %v4122_v43 = vld [vmem:[%s4557_s20 + $0x164] sm:$0xf] }
 0x18f   : > { %v2045_v16 = vpop.f32.mrf.mxu3  ;;  %v1877_v53 = vadd.f32 %v4700_v14, %v1876_v49  ;;  %v3307_v35 = vor.u32 %v4122_v43, %v3304_v45  ;;  %v4127_v45 = vld [vmem:[%s4557_s20 + $0x18c] sm:$0xf] }
 0x190   : > { %v1798_v3 = vpop.f32.mrf.mxu0 }
 0x191   : > { %v5022_v55 = vadd.f32 %v2045_v16, %v1877_v53  ;;  %v1799_v62 = vadd.f32 %v4700_v14, %v1798_v3  ;;  %v3295_v16 = vor.u32 %v4124_v22, %v3294_v6  ;;  %v3299_v53 = vor.u32 %v4121_v20, %v3296_v23  ;;  %v4472_v20 = vld [vmem:[%s5381_s2] ss:$0 sm:$0xff] }
 0x193   : > { %5402 = vst [vmem:[#allocation21_spill] sm:$0xff] %v5022_v55  ;;  %v1967_v2 = vpop.f32.mrf.mxu1  ;;  %v3303_v55 = vor.u32 %v4125_v25, %v3302_v39 }
 0x194   : > { %v5026_v9 = vadd.f32 %v1967_v2, %v1799_v62 }
 0x196   : > { %v1878_v36 = vpop.f32.mrf.mxu2 }
 0x197   : > { %v2047_v48 = vpop.f32.mrf.mxu3  ;;  %v1879_v49 = vadd.f32 %v4700_v14, %v1878_v36 }
 0x198   : > { %v1801_v3 = vpop.f32.mrf.mxu0 }
 0x199   : > { %v5036_v13 = vadd.f32 %v2047_v48, %v1879_v49  ;;  %v1802_v62 = vadd.f32 %v4700_v14, %v1801_v3  ;;  %v3318_v48 = vld [vmem:[%s4557_s20 + $0x188] sm:$0xf]  ;;  %v3326_v49 = vld [vmem:[%s4557_s20 + $0x190] sm:$0xf] }
 0x19b   : > { %5403 = vst [vmem:[#allocation22_spill] sm:$0xff] %v5036_v13  ;;  %v1970_v2 = vpop.f32.mrf.mxu1  ;;  %2098 = vmatmul.bf16.gmra.mxu2 %v3295_v16  ;;  %2436 = vmatmul.bf16.gmra.mxu0 %v3303_v55  ;;  %v4130_v55 = vld [vmem:[%s4557_s20 + $0x19c] sm:$0xf0]  ;;  %v4131_v16 = vld [vmem:[%s4557_s20 + $0x1a4] sm:$0xf0] }
 0x19c   : > { %2267 = vmatmul.bf16.gmra.mxu3 %v3299_v53  ;;  %v5039_v19 = vadd.f32 %v1970_v2, %v1802_v62  ;;  %v4128_v62 = vld [vmem:[%s4557_s20 + $0x194] sm:$0xf]  ;;  %v3328_v2 = vld [vmem:[%s4557_s20 + $0x1a8] sm:$0xf0]  ;;  %v3319_v50 = vor.u32 %v4130_v55, %v3318_v48 }
 0x19e   : > { %2605 = vmatmul.bf16.gmra.mxu1 %v3307_v35  ;;  %v1881_v6 = vpop.f32.mrf.mxu2  ;;  %v3320_v35 = vld [vmem:[%s4557_s20 + $0x1a0] sm:$0xf0] }
 0x19f   : > { %v2050_v22 = vpop.f32.mrf.mxu3  ;;  %v1882_v14 = vadd.f32 %v4472_v20, %v1881_v6  ;;  %v3323_v6 = vor.u32 %v4127_v45, %v3320_v35 }
 0x1a0   : > { %v1803_v39 = vpop.f32.mrf.mxu0 }
 0x1a1   : > { %v5044_v23 = vadd.f32 %v2050_v22, %v1882_v14  ;;  %v1804_v25 = vadd.f32 %v4472_v20, %v1803_v39  ;;  %v3327_v22 = vor.u32 %v4131_v16, %v3326_v49  ;;  %v3342_v49 = vld [vmem:[%s4557_s20 + $0x1b8] sm:$0xf]  ;;  %v4136_v16 = vld [vmem:[%s4557_s20 + $0x1cc] sm:$0xf0] }
 0x1a3   : > { %5404 = vst [vmem:[#allocation23_spill] sm:$0xff] %v5044_v23  ;;  %v1972_v36 = vpop.f32.mrf.mxu1 }
 0x1a4   : > { %v5047_v43 = vadd.f32 %v1972_v36, %v1804_v25  ;;  %v3331_v25 = vor.u32 %v4128_v62, %v3328_v2  ;;  %v3350_v62 = vld [vmem:[%s4557_s20 + $0x1c0] sm:$0xf]  ;;  %v4137_v2 = vld [vmem:[%s4557_s20 + $0x1d4] sm:$0xf0] }
 0x1a6   : > { %v1883_v53 = vpop.f32.mrf.mxu2 }
 0x1a7   : > { %v2052_v3 = vpop.f32.mrf.mxu3  ;;  %v1884_v13 = vadd.f32 %v4472_v20, %v1883_v53  ;;  %v4133_v53 = vld [vmem:[%s4557_s20 + $0x1bc] sm:$0xf] }
 0x1a8   : > { %v2402_v39 = vpop.f32.mrf.mxu0 }
 0x1a9   : > { %v5056_v14 = vadd.f32 %v2052_v3, %v1884_v13  ;;  %v3344_v3 = vld [vmem:[%s4557_s20 + $0x1d0] sm:$0xf0] }
 0x1ab   : > { %5405 = vst [vmem:[#allocation24_spill] sm:$0xff] %v5056_v14  ;;  %v2571_v36 = vpop.f32.mrf.mxu1  ;;  %2103 = vmatmul.bf16.gmra.mxu2 %v3319_v50  ;;  %2441 = vmatmul.bf16.gmra.mxu0 %v3327_v22  ;;  %v4134_v14 = vld [vmem:[%s4557_s20 + $0x1c4] sm:$0xf] }
 0x1ac   : > { %2272 = vmatmul.bf16.gmra.mxu3 %v3323_v6  ;;  %v3355_v60 = vor.u32 %v4134_v14, %v3352_v38 }
 0x1ae   : > { %2610 = vmatmul.bf16.gmra.mxu1 %v3331_v25  ;;  %v2064_v23 = vpop.f32.mrf.mxu2  ;;  %v3343_v25 = vor.u32 %v4136_v16, %v3342_v49 }
 0x1af   : > { %v2233_v20 = vpop.f32.mrf.mxu3  ;;  %v2065_v48 = vadd.f32 %v2064_v23, %v4706_v21 }
 0x1b0   : > { %v2404_v55 = vpop.f32.mrf.mxu0 }
 0x1b1   : > { %v2234_v13 = vadd.f32 %v2233_v20, %v2065_v48  ;;  %v3347_v20 = vor.u32 %v4133_v53, %v3344_v3  ;;  %v3351_v48 = vor.u32 %v4137_v2, %v3350_v62  ;;  %v3366_v62 = vld [vmem:[%s4557_s20 + $0x1e8] sm:$0xf]  ;;  %v4142_v2 = vld [vmem:[%s4557_s20 + $0x1fc] sm:$0xf0] }
 0x1b3   : > { %v2573_v45 = vpop.f32.mrf.mxu1  ;;  %v2403_v35 = vadd.f32 %v2402_v39, %v2234_v13 }
 0x1b5   : > { %v2572_v50 = vadd.f32 %v2571_v36, %v2403_v35 }
 0x1b6   : > { %v2066_v6 = vpop.f32.mrf.mxu2 }
 0x1b7   : > { %v2235_v22 = vpop.f32.mrf.mxu3  ;;  %vm2731_vm0 = vcmp.ge.f32.partialorder %v2572_v50, 0.0  ;;  %v2795_v21 = vmul.f32 0.25, %v2572_v50  ;;  %v2067_v23 = vadd.f32 %v2066_v6, %v4717_v32  ;;  %v4139_v6 = vld [vmem:[%s4557_s20 + $0x1ec] sm:$0xf] }
 0x1b8   : > { %v2407_v8 = vpop.f32.mrf.mxu0 }
 0x1b9   : > { %v2859_v39 = vsel %vm2731_vm0, %v2572_v50, %v2795_v21  ;;  %v2236_v13 = vadd.f32 %v2235_v22, %v2067_v23  ;;  %v3368_v22 = vld [vmem:[%s4557_s20 + $0x200] sm:$0xf0]  ;;  %v3374_v21 = vld [vmem:[%s4557_s20 + $0x1f0] sm:$0xf]  ;;  %v4143_v23 = vld [vmem:[%s4557_s20 + $0x204] sm:$0xf0] }
 0x1ba   : > { %4344 = vtanh.f32 %v2859_v39  ;;  %v4140_v39 = vld [vmem:[%s4557_s20 + $0x1f4] sm:$0xf] }
 0x1bb   : > { %v2576_v36 = vpop.f32.mrf.mxu1  ;;  %v2405_v35 = vadd.f32 %v2404_v55, %v2236_v13  ;;  %2108 = vmatmul.bf16.gmra.mxu2 %v3343_v25  ;;  %2446 = vmatmul.bf16.gmra.mxu0 %v3351_v48  ;;  %v3367_v48 = vor.u32 %v4142_v2, %v3366_v62  ;;  %v3376_v13 = vld [vmem:[%s4557_s20 + $0x208] sm:$0xf0] }
 0x1bc   : > { %2277 = vmatmul.bf16.gmra.mxu3 %v3347_v20 }
 0x1bd   : > { %v2574_v49 = vadd.f32 %v2573_v45, %v2405_v35 }
 0x1be   : > { %2615 = vmatmul.bf16.gmra.mxu1 %v3355_v60  ;;  %v2069_v32 = vpop.f32.mrf.mxu2 }
 0x1bf   : > { %v2238_v38 = vpop.f32.mrf.mxu3  ;;  %vm2732_vm1 = vcmp.ge.f32.partialorder %v2574_v49, 0.0  ;;  %v2796_v14 = vmul.f32 0.25, %v2574_v49  ;;  %v2070_v55 = vadd.f32 %v2069_v32, %v4735_v52  ;;  %v3371_v32 = vor.u32 %v4139_v6, %v3368_v22 }
 0x1c0   : > { %v4345_v45 = vpop.eup %4344  ;;  %v2409_v53 = vpop.f32.mrf.mxu0 }
 0x1c1   : > { %2987 = vst [vmem:[%s5072_s24] sm:$0xff] %v4345_v45  ;;  %v2860_v60 = vsel %vm2732_vm1, %v2574_v49, %v2796_v14  ;;  %v2239_v16 = vadd.f32 %v2238_v38, %v2070_v55 }
 0x1c2   : > { %4346 = vtanh.f32 %v2860_v60 }
 0x1c3   : > { %v2578_v3 = vpop.f32.mrf.mxu1  ;;  %v2408_v50 = vadd.f32 %v2407_v8, %v2239_v16  ;;  %v3375_v8 = vor.u32 %v4143_v23, %v3374_v21 }
 0x1c5   : > { %v2577_v25 = vadd.f32 %v2576_v36, %v2408_v50  ;;  %v3379_v36 = vor.u32 %v4140_v39, %v3376_v13  ;;  %v3392_v39 = vld [vmem:[%s4557_s20 + $0x230] sm:$0xf0] }
 0x1c6   : > { %v2071_v20 = vpop.f32.mrf.mxu2 }
 0x1c7   : > { %v2240_v52 = vpop.f32.mrf.mxu3  ;;  %vm2733_vm2 = vcmp.ge.f32.partialorder %v2577_v25, 0.0  ;;  %v2797_v35 = vmul.f32 0.25, %v2577_v25  ;;  %v2072_v49 = vadd.f32 %v2071_v20, %v4742_v61  ;;  %v3390_v20 = vld [vmem:[%s4557_s20 + $0x218] sm:$0xf] }
 0x1c8   : > { %v4347_v38 = vpop.eup %4346  ;;  %v2412_v45 = vpop.f32.mrf.mxu0 }
 0x1c9   : > { %2988 = vst [vmem:[%s5072_s24 + $0x8] sm:$0xff] %v4347_v38  ;;  %v2861_v14 = vsel %vm2733_vm2, %v2577_v25, %v2797_v35  ;;  %v2241_v55 = vadd.f32 %v2240_v52, %v2072_v49  ;;  %v4148_v52 = vld [vmem:[%s4557_s20 + $0x22c] sm:$0xf0]  ;;  %v3398_v35 = vld [vmem:[%s4557_s20 + $0x220] sm:$0xf] }
 0x1ca   : > { %4348 = vtanh.f32 %v2861_v14  ;;  %v4149_v49 = vld [vmem:[%s4557_s20 + $0x234] sm:$0xf0]  ;;  %v3391_v38 = vor.u32 %v4148_v52, %v3390_v20  ;;  %v3400_v14 = vld [vmem:[%s4557_s20 + $0x238] sm:$0xf0] }
 0x1cb   : > { %v2581_v60 = vpop.f32.mrf.mxu1  ;;  %v2410_v16 = vadd.f32 %v2409_v53, %v2241_v55  ;;  %2113 = vmatmul.bf16.gmra.mxu2 %v3367_v48  ;;  %2451 = vmatmul.bf16.gmra.mxu0 %v3375_v8  ;;  %v4145_v48 = vld [vmem:[%s4557_s20 + $0x21c] sm:$0xf]  ;;  %v4146_v8 = vld [vmem:[%s4557_s20 + $0x224] sm:$0xf] }
 0x1cc   : > { %2282 = vmatmul.bf16.gmra.mxu3 %v3371_v32 }
 0x1cd   : > { %v2579_v50 = vadd.f32 %v2578_v3, %v2410_v16  ;;  %v3395_v16 = vor.u32 %v4145_v48, %v3392_v39 }
 0x1ce   : > { %2620 = vmatmul.bf16.gmra.mxu1 %v3379_v36  ;;  %v2074_v61 = vpop.f32.mrf.mxu2 }
 0x1cf   : > { %v2243_v62 = vpop.f32.mrf.mxu3  ;;  %vm2734_vm3 = vcmp.ge.f32.partialorder %v2579_v50, 0.0  ;;  %v2798_v2 = vmul.f32 0.25, %v2579_v50  ;;  %v2075_v6 = vadd.f32 %v2074_v61, %v4758_v18 }
 0x1d0   : > { %v4349_v22 = vpop.eup %4348  ;;  %v2414_v21 = vpop.f32.mrf.mxu0 }
 0x1d1   : > { %2989 = vst [vmem:[%s5072_s24 + $0x10] sm:$0xff] %v4349_v22  ;;  %v2862_v53 = vsel %vm2734_vm3, %v2579_v50, %v2798_v2  ;;  %v2244_v25 = vadd.f32 %v2243_v62, %v2075_v6 }
 0x1d2   : > { %4350 = vtanh.f32 %v2862_v53 }
 0x1d3   : > { %v2583_v3 = vpop.f32.mrf.mxu1  ;;  %v2413_v23 = vadd.f32 %v2412_v45, %v2244_v25  ;;  %v3399_v45 = vor.u32 %v4149_v49, %v3398_v35  ;;  %v3414_v35 = vld [vmem:[%s4557_s20 + $0x248] sm:$0xf]  ;;  %v4154_v49 = vld [vmem:[%s4557_s20 + $0x25c] sm:$0xf0] }
 0x1d5   : > { %v2582_v13 = vadd.f32 %v2581_v60, %v2413_v23  ;;  %v3403_v60 = vor.u32 %v4146_v8, %v3400_v14  ;;  %v3422_v8 = vld [vmem:[%s4557_s20 + $0x250] sm:$0xf]  ;;  %v4155_v14 = vld [vmem:[%s4557_s20 + $0x264] sm:$0xf0] }
 0x1d6   : > { %v2076_v32 = vpop.f32.mrf.mxu2 }
 0x1d7   : > { %v2245_v18 = vpop.f32.mrf.mxu3  ;;  %vm2735_vm4 = vcmp.ge.f32.partialorder %v2582_v13, 0.0  ;;  %v2799_v55 = vmul.f32 0.25, %v2582_v13  ;;  %v2077_v36 = vadd.f32 %v2076_v32, %v4769_v31  ;;  %v4151_v32 = vld [vmem:[%s4557_s20 + $0x24c] sm:$0xf] }
 0x1d8   : > { %v4351_v50 = vpop.eup %4350  ;;  %v2417_v2 = vpop.f32.mrf.mxu0 }
 0x1d9   : > { %2990 = vst [vmem:[%s5072_s24 + $0x18] sm:$0xff] %v4351_v50  ;;  %v2863_v61 = vsel %vm2735_vm4, %v2582_v13, %v2799_v55  ;;  %v2246_v62 = vadd.f32 %v2245_v18, %v2077_v36  ;;  %v3416_v18 = vld [vmem:[%s4557_s20 + $0x260] sm:$0xf0]  ;;  %v3415_v36 = vor.u32 %v4154_v49, %v3414_v35  ;;  %v3424_v50 = vld [vmem:[%s4557_s20 + $0x268] sm:$0xf0] }
 0x1da   : > { %4352 = vtanh.f32 %v2863_v61 }
 0x1db   : > { %v2586_v6 = vpop.f32.mrf.mxu1  ;;  %v2415_v22 = vadd.f32 %v2414_v21, %v2246_v62  ;;  %2118 = vmatmul.bf16.gmra.mxu2 %v3391_v38  ;;  %2456 = vmatmul.bf16.gmra.mxu0 %v3399_v45  ;;  %v3419_v62 = vor.u32 %v4151_v32, %v3416_v18  ;;  %v3438_v18 = vld [vmem:[%s4557_s20 + $0x278] sm:$0xf] }
 0x1dc   : > { %2287 = vmatmul.bf16.gmra.mxu3 %v3395_v16  ;;  %v4152_v16 = vld [vmem:[%s4557_s20 + $0x254] sm:$0xf] }
 0x1dd   : > { %v2584_v53 = vadd.f32 %v2583_v3, %v2415_v22 }
 0x1de   : > { %2625 = vmatmul.bf16.gmra.mxu1 %v3403_v60  ;;  %v2079_v31 = vpop.f32.mrf.mxu2 }
 0x1df   : > { %v2248_v25 = vpop.f32.mrf.mxu3  ;;  %vm2736_vm5 = vcmp.ge.f32.partialorder %v2584_v53, 0.0  ;;  %v2800_v23 = vmul.f32 0.25, %v2584_v53  ;;  %v2080_v20 = vadd.f32 %v2079_v31, %v4787_v54 }
 0x1e0   : > { %v4353_v52 = vpop.eup %4352  ;;  %v2419_v39 = vpop.f32.mrf.mxu0 }
 0x1e1   : > { %2991 = vst [vmem:[%s5072_s24 + $0x20] sm:$0xff] %v4353_v52  ;;  %v2864_v21 = vsel %vm2736_vm5, %v2584_v53, %v2800_v23  ;;  %v2249_v48 = vadd.f32 %v2248_v25, %v2080_v20 }
 0x1e2   : > { %4354 = vtanh.f32 %v2864_v21 }
 0x1e3   : > { %v2588_v3 = vpop.f32.mrf.mxu1  ;;  %v2418_v13 = vadd.f32 %v2417_v2, %v2249_v48  ;;  %v3423_v2 = vor.u32 %v4155_v14, %v3422_v8  ;;  %v4157_v8 = vld [vmem:[%s4557_s20 + $0x27c] sm:$0xf]  ;;  %v3440_v14 = vld [vmem:[%s4557_s20 + $0x290] sm:$0xf0] }
 0x1e5   : > { %v2587_v38 = vadd.f32 %v2586_v6, %v2418_v13  ;;  %v3427_v6 = vor.u32 %v4152_v16, %v3424_v50 }
 0x1e6   : > { %v2081_v55 = vpop.f32.mrf.mxu2 }
 0x1e7   : > { %v2250_v54 = vpop.f32.mrf.mxu3  ;;  %vm2737_vm6 = vcmp.ge.f32.partialorder %v2587_v38, 0.0  ;;  %v2801_v45 = vmul.f32 0.25, %v2587_v38  ;;  %v2082_v61 = vadd.f32 %v2081_v55, %v4794_v1 }
 0x1e8   : > { %v4355_v60 = vpop.eup %4354  ;;  %v2422_v31 = vpop.f32.mrf.mxu0 }
 0x1e9   : > { %2992 = vst [vmem:[%s5072_s24 + $0x28] sm:$0xff] %v4355_v60  ;;  %v2865_v22 = vsel %vm2737_vm6, %v2587_v38, %v2801_v45  ;;  %v2251_v53 = vadd.f32 %v2250_v54, %v2082_v61  ;;  %v4160_v38 = vld [vmem:[%s4557_s20 + $0x28c] sm:$0xf0]  ;;  %v3446_v54 = vld [vmem:[%s4557_s20 + $0x280] sm:$0xf] }
 0x1ea   : > { %4356 = vtanh.f32 %v2865_v22  ;;  %v3439_v50 = vor.u32 %v4160_v38, %v3438_v18  ;;  %v4158_v45 = vld [vmem:[%s4557_s20 + $0x284] sm:$0xf]  ;;  %v3448_v61 = vld [vmem:[%s4557_s20 + $0x298] sm:$0xf0]  ;;  %v3462_v38 = vld [vmem:[%s4557_s20 + $0x2a8] sm:$0xf] }
 0x1eb   : > { %v2591_v25 = vpop.f32.mrf.mxu1  ;;  %v2420_v23 = vadd.f32 %v2419_v39, %v2251_v53  ;;  %2123 = vmatmul.bf16.gmra.mxu2 %v3415_v36  ;;  %2461 = vmatmul.bf16.gmra.mxu0 %v3423_v2  ;;  %v4161_v36 = vld [vmem:[%s4557_s20 + $0x294] sm:$0xf0]  ;;  %v3443_v2 = vor.u32 %v4157_v8, %v3440_v14  ;;  %v4166_v8 = vld [vmem:[%s4557_s20 + $0x2bc] sm:$0xf0]  ;;  %v4163_v14 = vld [vmem:[%s4557_s20 + $0x2ac] sm:$0xf] }
 0x1ec   : > { %2292 = vmatmul.bf16.gmra.mxu3 %v3419_v62  ;;  %v3447_v53 = vor.u32 %v4161_v36, %v3446_v54  ;;  %v3470_v36 = vld [vmem:[%s4557_s20 + $0x2b0] sm:$0xf] }
 0x1ed   : > { %v2589_v20 = vadd.f32 %v2588_v3, %v2420_v23 }
 0x1ee   : > { %2630 = vmatmul.bf16.gmra.mxu1 %v3427_v6  ;;  %v2084_v1 = vpop.f32.mrf.mxu2 }
 0x1ef   : > { %v2253_v52 = vpop.f32.mrf.mxu3  ;;  %vm2738_vm7 = vcmp.ge.f32.partialorder %v2589_v20, 0.0  ;;  %v2802_v21 = vmul.f32 0.25, %v2589_v20  ;;  %v2085_v48 = vadd.f32 %v2084_v1, %v4810_v27 }
 0x1f0   : > { %v4357_v13 = vpop.eup %4356  ;;  %v2424_v49 = vpop.f32.mrf.mxu0 }
 0x1f1   : > { %2993 = vst [vmem:[%s5072_s24 + $0x30] sm:$0xff] %v4357_v13  ;;  %v2866_v39 = vsel %vm2738_vm7, %v2589_v20, %v2802_v21  ;;  %v2254_v35 = vadd.f32 %v2253_v52, %v2085_v48 }
 0x1f2   : > { %4358 = vtanh.f32 %v2866_v39 }
 0x1f3   : > { %v2593_v3 = vpop.f32.mrf.mxu1  ;;  %v2423_v32 = vadd.f32 %v2422_v31, %v2254_v35 }
 0x1f5   : > { %v2592_v55 = vadd.f32 %v2591_v25, %v2423_v32  ;;  %v3451_v25 = vor.u32 %v4158_v45, %v3448_v61  ;;  %v4164_v45 = vld [vmem:[%s4557_s20 + $0x2b4] sm:$0xf]  ;;  %v3472_v61 = vld [vmem:[%s4557_s20 + $0x2c8] sm:$0xf0] }
 0x1f6   : > { %v2086_v16 = vpop.f32.mrf.mxu2 }
 0x1f7   : > { %v2255_v27 = vpop.f32.mrf.mxu3  ;;  %vm2739_vm8 = vcmp.ge.f32.partialorder %v2592_v55, 0.0  ;;  %v2803_v62 = vmul.f32 0.25, %v2592_v55  ;;  %v2087_v60 = vadd.f32 %v2086_v16, %v4821_v40  ;;  %v4167_v16 = vld [vmem:[%s4557_s20 + $0x2c4] sm:$0xf0] }
 0x1f8   : > { %v4359_v22 = vpop.eup %4358  ;;  %v2427_v23 = vpop.f32.mrf.mxu0 }
 0x1f9   : > { %2994 = vst [vmem:[%s5072_s24 + $0x38] sm:$0xff] %v4359_v22  ;;  %v2867_v31 = vsel %vm2739_vm8, %v2592_v55, %v2803_v62  ;;  %v2256_v6 = vadd.f32 %v2255_v27, %v2087_v60  ;;  %v3464_v55 = vld [vmem:[%s4557_s20 + $0x2c0] sm:$0xf0] }
 0x1fa   : > { %4360 = vtanh.f32 %v2867_v31 }
 0x1fb   : > { %v2596_v20 = vpop.f32.mrf.mxu1  ;;  %v2425_v1 = vadd.f32 %v2424_v49, %v2256_v6  ;;  %2128 = vmatmul.bf16.gmra.mxu2 %v3439_v50  ;;  %2466 = vmatmul.bf16.gmra.mxu0 %v3447_v53  ;;  %v3463_v50 = vor.u32 %v4166_v8, %v3462_v38  ;;  %v3471_v53 = vor.u32 %v4167_v16, %v3470_v36  ;;  %v4172_v38 = vld [vmem:[%s4557_s20 + $0x2ec] sm:$0xf0]  ;;  %v4169_v8 = vld [vmem:[%s4557_s20 + $0x2dc] sm:$0xf]  ;;  %v4173_v36 = vld [vmem:[%s4557_s20 + $0x2f4] sm:$0xf0] }
 0x1fc   : > { %2297 = vmatmul.bf16.gmra.mxu3 %v3443_v2  ;;  %v3467_v2 = vor.u32 %v4163_v14, %v3464_v55  ;;  %v3488_v14 = vld [vmem:[%s4557_s20 + $0x2f0] sm:$0xf0] }
 0x1fd   : > { %v2594_v52 = vadd.f32 %v2593_v3, %v2425_v1 }
 0x1fe   : > { %2635 = vmatmul.bf16.gmra.mxu1 %v3451_v25  ;;  %v2089_v40 = vpop.f32.mrf.mxu2  ;;  %v3475_v25 = vor.u32 %v4164_v45, %v3472_v61 }
 0x1ff   : > { %v2258_v21 = vpop.f32.mrf.mxu3  ;;  %vm2740_vm9 = vcmp.ge.f32.partialorder %v2594_v52, 0.0  ;;  %v2804_v48 = vmul.f32 0.25, %v2594_v52  ;;  %v2090_v13 = vadd.f32 %v2089_v40, %v4839_v4 }
 0x200   : > { %v4361_v39 = vpop.eup %4360  ;;  %v2429_v32 = vpop.f32.mrf.mxu0 }
 0x201   : > { %2995 = vst [vmem:[%s5072_s24 + $0x40] sm:$0xff] %v4361_v39  ;;  %v2868_v35 = vsel %vm2740_vm9, %v2594_v52, %v2804_v48  ;;  %v2259_v49 = vadd.f32 %v2258_v21, %v2090_v13 }
 0x202   : > { %4362 = vtanh.f32 %v2868_v35 }
 0x203   : > { %v2598_v3 = vpop.f32.mrf.mxu1  ;;  %v2428_v18 = vadd.f32 %v2427_v23, %v2259_v49 }
 0x205   : > { %v2597_v54 = vadd.f32 %v2596_v20, %v2428_v18  ;;  %v3486_v18 = vld [vmem:[%s4557_s20 + $0x2d8] sm:$0xf] }
 0x206   : > { %v2091_v27 = vpop.f32.mrf.mxu2 }
 0x207   : > { %v2260_v4 = vpop.f32.mrf.mxu3  ;;  %vm2741_vm10 = vcmp.ge.f32.partialorder %v2597_v54, 0.0  ;;  %v2805_v62 = vmul.f32 0.25, %v2597_v54  ;;  %v2092_v60 = vadd.f32 %v2091_v27, %v4846_v15  ;;  %v3487_v27 = vor.u32 %v4172_v38, %v3486_v18  ;;  %v3512_v18 = vld [vmem:[%s4557_s20 + $0x320] sm:$0xf0] }
 0x208   : > { %v4363_v22 = vpop.eup %4362  ;;  %v2432_v23 = vpop.f32.mrf.mxu0 }
 0x209   : > { %2996 = vst [vmem:[%s5072_s24 + $0x48] sm:$0xff] %v4363_v22  ;;  %v2869_v31 = vsel %vm2741_vm10, %v2597_v54, %v2805_v62  ;;  %v2261_v6 = vadd.f32 %v2260_v4, %v2092_v60  ;;  %v3494_v54 = vld [vmem:[%s4557_s20 + $0x2e0] sm:$0xf]  ;;  %v4170_v4 = vld [vmem:[%s4557_s20 + $0x2e4] sm:$0xf]  ;;  %v3491_v62 = vor.u32 %v4169_v8, %v3488_v14 }
 0x20a   : > { %4364 = vtanh.f32 %v2869_v31  ;;  %v3518_v8 = vld [vmem:[%s4557_s20 + $0x310] sm:$0xf]  ;;  %v4179_v14 = vld [vmem:[%s4557_s20 + $0x324] sm:$0xf0] }
 0x20b   : > { %v2601_v20 = vpop.f32.mrf.mxu1  ;;  %v2430_v1 = vadd.f32 %v2429_v32, %v2261_v6  ;;  %2133 = vmatmul.bf16.gmra.mxu2 %v3463_v50  ;;  %2471 = vmatmul.bf16.gmra.mxu0 %v3471_v53  ;;  %v3496_v50 = vld [vmem:[%s4557_s20 + $0x2f8] sm:$0xf0] }
 0x20c   : > { %2302 = vmatmul.bf16.gmra.mxu3 %v3467_v2  ;;  %v3495_v2 = vor.u32 %v4173_v36, %v3494_v54  ;;  %v3499_v6 = vor.u32 %v4170_v4, %v3496_v50  ;;  %v4176_v36 = vld [vmem:[%s4557_s20 + $0x314] sm:$0xf] }
 0x20d   : > { %v2599_v52 = vadd.f32 %v2598_v3, %v2430_v1 }
 0x20e   : > { %2640 = vmatmul.bf16.gmra.mxu1 %v3475_v25  ;;  %v2094_v15 = vpop.f32.mrf.mxu2 }
 0x20f   : > { %v2263_v40 = vpop.f32.mrf.mxu3  ;;  %vm2742_vm11 = vcmp.ge.f32.partialorder %v2599_v52, 0.0  ;;  %v2806_v21 = vmul.f32 0.25, %v2599_v52  ;;  %v2095_v48 = vadd.f32 %v2094_v15, %v4859_v44 }
 0x210   : > { %v4365_v13 = vpop.eup %4364  ;;  %v2434_v49 = vpop.f32.mrf.mxu0 }
 0x211   : > { %2997 = vst [vmem:[%s5072_s24 + $0x50] sm:$0xff] %v4365_v13  ;;  %v2870_v39 = vsel %vm2742_vm11, %v2599_v52, %v2806_v21  ;;  %v2264_v35 = vadd.f32 %v2263_v40, %v2095_v48 }
 0x212   : > { %4366 = vtanh.f32 %v2870_v39 }
 0x213   : > { %v2603_v32 = vpop.f32.mrf.mxu1  ;;  %v2433_v3 = vadd.f32 %v2432_v23, %v2264_v35 }
 0x215   : > { %v2602_v55 = vadd.f32 %v2601_v20, %v2433_v3  ;;  %v4175_v3 = vld [vmem:[%s4557_s20 + $0x30c] sm:$0xf] }
 0x216   : > { %v2096_v16 = vpop.f32.mrf.mxu2  ;;  %v3515_v4 = vor.u32 %v4175_v3, %v3512_v18 }
 0x217   : > { %v2265_v44 = vpop.f32.mrf.mxu3  ;;  %vm2743_vm12 = vcmp.ge.f32.partialorder %v2602_v55, 0.0  ;;  %v2807_v45 = vmul.f32 0.25, %v2602_v55  ;;  %v2097_v61 = vadd.f32 %v2096_v16, %v4866_v58  ;;  %v3520_v16 = vld [vmem:[%s4557_s20 + $0x328] sm:$0xf0] }
 0x218   : > { %v4367_v60 = vpop.eup %4366  ;;  %v2437_v31 = vpop.f32.mrf.mxu0 }
 0x219   : > { %2998 = vst [vmem:[%s5072_s24 + $0x58] sm:$0xff] %v4367_v60  ;;  %v2871_v22 = vsel %vm2743_vm12, %v2602_v55, %v2807_v45  ;;  %v2266_v53 = vadd.f32 %v2265_v44, %v2097_v61  ;;  %v3519_v45 = vor.u32 %v4179_v14, %v3518_v8  ;;  %v3544_v8 = vld [vmem:[%s4557_s20 + $0x358] sm:$0xf0] }
 0x21a   : > { %4368 = vtanh.f32 %v2871_v22 }
 0x21b   : > { %v2606_v23 = vpop.f32.mrf.mxu1  ;;  %v2435_v25 = vadd.f32 %v2434_v49, %v2266_v53  ;;  %2138 = vmatmul.bf16.gmra.mxu2 %v3487_v27  ;;  %2476 = vmatmul.bf16.gmra.mxu0 %v3495_v2  ;;  %v3510_v49 = vld [vmem:[%s4557_s20 + $0x308] sm:$0xf]  ;;  %v3523_v2 = vor.u32 %v4176_v36, %v3520_v16 }
 0x21c   : > { %2307 = vmatmul.bf16.gmra.mxu3 %v3491_v62 }
 0x21d   : > { %v2604_v20 = vadd.f32 %v2603_v32, %v2435_v25  ;;  %v4178_v32 = vld [vmem:[%s4557_s20 + $0x31c] sm:$0xf0] }
 0x21e   : > { %2645 = vmatmul.bf16.gmra.mxu1 %v3499_v6  ;;  %v2099_v58 = vpop.f32.mrf.mxu2  ;;  %v3511_v54 = vor.u32 %v4178_v32, %v3510_v49  ;;  %v3542_v49 = vld [vmem:[%s4557_s20 + $0x340] sm:$0xf]  ;;  %v4185_v32 = vld [vmem:[%s4557_s20 + $0x354] sm:$0xf0] }
 0x21f   : > { %v2268_v1 = vpop.f32.mrf.mxu3  ;;  %vm2744_vm13 = vcmp.ge.f32.partialorder %v2604_v20, 0.0  ;;  %v2808_v52 = vmul.f32 0.25, %v2604_v20  ;;  %v2100_v15 = vadd.f32 %v2099_v58, %v4879_v28  ;;  %v3543_v36 = vor.u32 %v4185_v32, %v3542_v49 }
 0x220   : > { %v4369_v40 = vpop.eup %4368  ;;  %v2439_v13 = vpop.f32.mrf.mxu0 }
 0x221   : > { %2999 = vst [vmem:[%s5072_s24 + $0x60] sm:$0xff] %v4369_v40  ;;  %v2872_v21 = vsel %vm2744_vm13, %v2604_v20, %v2808_v52  ;;  %v2269_v48 = vadd.f32 %v2268_v1, %v2100_v15 }
 0x222   : > { %4370 = vtanh.f32 %v2872_v21  ;;  %v3534_v21 = vld [vmem:[%s4557_s20 + $0x338] sm:$0xf] }
 0x223   : > { %v2608_v39 = vpop.f32.mrf.mxu1  ;;  %v2438_v35 = vadd.f32 %v2437_v31, %v2269_v48  ;;  %v4184_v48 = vld [vmem:[%s4557_s20 + $0x34c] sm:$0xf0] }
 0x224   : > { %v3535_v18 = vor.u32 %v4184_v48, %v3534_v21 }
 0x225   : > { %v2607_v38 = vadd.f32 %v2606_v23, %v2438_v35 }
 0x226   : > { %v2101_v55 = vpop.f32.mrf.mxu2 }
 0x227   : > { %v2270_v28 = vpop.f32.mrf.mxu3  ;;  %vm2745_vm14 = vcmp.ge.f32.partialorder %v2607_v38, 0.0  ;;  %v2809_v44 = vmul.f32 0.25, %v2607_v38  ;;  %v2102_v27 = vadd.f32 %v2101_v55, %v4886_v42 }
 0x228   : > { %v4371_v50 = vpop.eup %4370  ;;  %v2442_v60 = vpop.f32.mrf.mxu0 }
 0x229   : > { %3000 = vst [vmem:[%s5072_s24 + $0x68] sm:$0xff] %v4371_v50  ;;  %v2873_v61 = vsel %vm2745_vm14, %v2607_v38, %v2809_v44  ;;  %v2271_v62 = vadd.f32 %v2270_v28, %v2102_v27  ;;  %v4182_v38 = vld [vmem:[%s4557_s20 + $0x344] sm:$0xf] }
 0x22a   : > { %4372 = vtanh.f32 %v2873_v61 }
 0x22b   : > { %v2611_v22 = vpop.f32.mrf.mxu1  ;;  %v2440_v53 = vadd.f32 %v2439_v13, %v2271_v62  ;;  %2143 = vmatmul.bf16.gmra.mxu2 %v3511_v54  ;;  %2481 = vmatmul.bf16.gmra.mxu0 %v3519_v45  ;;  %v4181_v13 = vld [vmem:[%s4557_s20 + $0x33c] sm:$0xf] }
 0x22c   : > { %2312 = vmatmul.bf16.gmra.mxu3 %v3515_v4  ;;  %v3547_v4 = vor.u32 %v4182_v38, %v3544_v8 }
 0x22d   : > { %v2609_v31 = vadd.f32 %v2608_v39, %v2440_v53  ;;  %v3536_v39 = vld [vmem:[%s4557_s20 + $0x350] sm:$0xf0] }
 0x22e   : > { %2650 = vmatmul.bf16.gmra.mxu1 %v3523_v2  ;;  %v2104_v42 = vpop.f32.mrf.mxu2  ;;  %v3539_v28 = vor.u32 %v4181_v13, %v3536_v39  ;;  %v4188_v13 = vld [vmem:[%s4557_s20 + $0x374] sm:$0xf]  ;;  %v3568_v39 = vld [vmem:[%s4557_s20 + $0x388] sm:$0xf0] }
 0x22f   : > { %v2273_v6 = vpop.f32.mrf.mxu3  ;;  %vm2746_vm15 = vcmp.ge.f32.partialorder %v2609_v31, 0.0  ;;  %v2810_v23 = vmul.f32 0.25, %v2609_v31  ;;  %v2105_v25 = vadd.f32 %v2104_v42, %v4899_v12 }
 0x230   : > { %v4373_v20 = vpop.eup %4372  ;;  %v2444_v52 = vpop.f32.mrf.mxu0 }
 0x231   : > { %3001 = vst [vmem:[%s5072_s24 + $0x70] sm:$0xff] %v4373_v20  ;;  %v2874_v58 = vsel %vm2746_vm15, %v2609_v31, %v2810_v23  ;;  %v2274_v1 = vadd.f32 %v2273_v6, %v2105_v25  ;;  %v3558_v25 = vld [vmem:[%s4557_s20 + $0x368] sm:$0xf]  ;;  %v4190_v20 = vld [vmem:[%s4557_s20 + $0x37c] sm:$0xf0] }
 0x232   : > { %4374 = vtanh.f32 %v2874_v58  ;;  %v4187_v58 = vld [vmem:[%s4557_s20 + $0x36c] sm:$0xf]  ;;  %v3559_v48 = vor.u32 %v4190_v20, %v3558_v25  ;;  %v4194_v25 = vld [vmem:[%s4557_s20 + $0x3a4] sm:$0xf]  ;;  %v3592_v20 = vld [vmem:[%s4557_s20 + $0x3b8] sm:$0xf0] }
 0x233   : > { %v2613_v15 = vpop.f32.mrf.mxu1  ;;  %v2443_v40 = vadd.f32 %v2442_v60, %v2274_v1  ;;  %v3560_v1 = vld [vmem:[%s4557_s20 + $0x380] sm:$0xf0] }
 0x234   : > { %v3563_v32 = vor.u32 %v4187_v58, %v3560_v1 }
 0x235   : > { %v2612_v35 = vadd.f32 %v2611_v22, %v2443_v40  ;;  %v4191_v40 = vld [vmem:[%s4557_s20 + $0x384] sm:$0xf0] }
 0x236   : > { %v2106_v3 = vpop.f32.mrf.mxu2 }
 0x237   : > { %v2275_v12 = vpop.f32.mrf.mxu3  ;;  %vm2747_vm0 = vcmp.ge.f32.partialorder %v2612_v35, 0.0  ;;  %v2811_v14 = vmul.f32 0.25, %v2612_v35  ;;  %v2107_v55 = vadd.f32 %v2106_v3, %v4906_v33 }
 0x238   : > { %v4375_v54 = vpop.eup %4374  ;;  %v2447_v27 = vpop.f32.mrf.mxu0 }
 0x239   : > { %3002 = vst [vmem:[%s5072_s24 + $0x78] sm:$0xff] %v4375_v54  ;;  %v2875_v16 = vsel %vm2747_vm0, %v2612_v35, %v2811_v14  ;;  %v2276_v44 = vadd.f32 %v2275_v12, %v2107_v55  ;;  %v3571_v14 = vor.u32 %v4188_v13, %v3568_v39  ;;  %v3595_v13 = vor.u32 %v4194_v25, %v3592_v20 }
 0x23a   : > { %4376 = vtanh.f32 %v2875_v16 }
 0x23b   : > { %v2616_v50 = vpop.f32.mrf.mxu1  ;;  %v2445_v45 = vadd.f32 %v2444_v52, %v2276_v44  ;;  %2148 = vmatmul.bf16.gmra.mxu2 %v3535_v18  ;;  %2486 = vmatmul.bf16.gmra.mxu0 %v3543_v36 }
 0x23c   : > { %2317 = vmatmul.bf16.gmra.mxu3 %v3539_v28 }
 0x23d   : > { %v2614_v61 = vadd.f32 %v2613_v15, %v2445_v45  ;;  %v3566_v15 = vld [vmem:[%s4557_s20 + $0x370] sm:$0xf] }
 0x23e   : > { %2655 = vmatmul.bf16.gmra.mxu1 %v3547_v4  ;;  %v2109_v33 = vpop.f32.mrf.mxu2  ;;  %v3567_v12 = vor.u32 %v4191_v40, %v3566_v15 }
 0x23f   : > { %v2278_v62 = vpop.f32.mrf.mxu3  ;;  %vm2748_vm1 = vcmp.ge.f32.partialorder %v2614_v61, 0.0  ;;  %v2812_v60 = vmul.f32 0.25, %v2614_v61  ;;  %v2110_v2 = vadd.f32 %v2109_v33, %v4919_v7 }
 0x240   : > { %v4377_v22 = vpop.eup %4376  ;;  %v2449_v42 = vpop.f32.mrf.mxu0 }
 0x241   : > { %3003 = vst [vmem:[%s5072_s24 + $0x80] sm:$0xff] %v4377_v22  ;;  %v2876_v53 = vsel %vm2748_vm1, %v2614_v61, %v2812_v60  ;;  %v2279_v31 = vadd.f32 %v2278_v62, %v2110_v2  ;;  %v3582_v62 = vld [vmem:[%s4557_s20 + $0x398] sm:$0xf]  ;;  %v4196_v60 = vld [vmem:[%s4557_s20 + $0x3ac] sm:$0xf0] }
 0x242   : > { %4378 = vtanh.f32 %v2876_v53  ;;  %v4193_v2 = vld [vmem:[%s4557_s20 + $0x39c] sm:$0xf]  ;;  %v3584_v22 = vld [vmem:[%s4557_s20 + $0x3b0] sm:$0xf0] }
 0x243   : > { %v2618_v6 = vpop.f32.mrf.mxu1  ;;  %v2448_v23 = vadd.f32 %v2447_v27, %v2279_v31  ;;  %v3590_v31 = vld [vmem:[%s4557_s20 + $0x3a0] sm:$0xf] }
 0x245   : > { %v2617_v52 = vadd.f32 %v2616_v50, %v2448_v23  ;;  %v3583_v23 = vor.u32 %v4196_v60, %v3582_v62 }
 0x246   : > { %v2111_v21 = vpop.f32.mrf.mxu2 }
 0x247   : > { %v2280_v7 = vpop.f32.mrf.mxu3  ;;  %vm2749_vm2 = vcmp.ge.f32.partialorder %v2617_v52, 0.0  ;;  %v2813_v35 = vmul.f32 0.25, %v2617_v52  ;;  %v2112_v49 = vadd.f32 %v2111_v21, %v4926_v30 }
 0x248   : > { %v4379_v3 = vpop.eup %4378  ;;  %v2452_v8 = vpop.f32.mrf.mxu0 }
 0x249   : > { %3004 = vst [vmem:[%s5072_s24 + $0x88] sm:$0xff] %v4379_v3  ;;  %v2877_v18 = vsel %vm2749_vm2, %v2617_v52, %v2813_v35  ;;  %v2281_v38 = vadd.f32 %v2280_v7, %v2112_v49  ;;  %v3587_v52 = vor.u32 %v4193_v2, %v3584_v22 }
 0x24a   : > { %4380 = vtanh.f32 %v2877_v18 }
 0x24b   : > { %v2621_v55 = vpop.f32.mrf.mxu1  ;;  %v2450_v28 = vadd.f32 %v2449_v42, %v2281_v38  ;;  %2153 = vmatmul.bf16.gmra.mxu2 %v3559_v48  ;;  %2491 = vmatmul.bf16.gmra.mxu0 %v3567_v12  ;;  %v4197_v42 = vld [vmem:[%s4557_s20 + $0x3b4] sm:$0xf0] }
 0x24c   : > { %2322 = vmatmul.bf16.gmra.mxu3 %v3563_v32  ;;  %v3591_v40 = vor.u32 %v4197_v42, %v3590_v31 }
 0x24d   : > { %v2619_v54 = vadd.f32 %v2618_v6, %v2450_v28 }
 0x24e   : > { %2660 = vmatmul.bf16.gmra.mxu1 %v3571_v14  ;;  %v2114_v30 = vpop.f32.mrf.mxu2 }
 0x24f   : > { %v2283_v36 = vpop.f32.mrf.mxu3  ;;  %vm2750_vm3 = vcmp.ge.f32.partialorder %v2619_v54, 0.0  ;;  %v2814_v16 = vmul.f32 0.25, %v2619_v54  ;;  %v2115_v44 = vadd.f32 %v2114_v30, %v4939_v10  ;;  %v4202_v30 = vld [vmem:[%s4557_s20 + $0x3dc] sm:$0xf0] }
 0x250   : > { %v4381_v27 = vpop.eup %4380  ;;  %v2454_v45 = vpop.f32.mrf.mxu0 }
 0x251   : > { %3005 = vst [vmem:[%s5072_s24 + $0x90] sm:$0xff] %v4381_v27  ;;  %v2878_v4 = vsel %vm2750_vm3, %v2619_v54, %v2814_v16  ;;  %v2284_v50 = vadd.f32 %v2283_v36, %v2115_v44  ;;  %v3606_v54 = vld [vmem:[%s4557_s20 + $0x3c8] sm:$0xf]  ;;  %v4199_v36 = vld [vmem:[%s4557_s20 + $0x3cc] sm:$0xf] }
 0x252   : > { %4382 = vtanh.f32 %v2878_v4  ;;  %v3608_v16 = vld [vmem:[%s4557_s20 + $0x3e0] sm:$0xf0]  ;;  %v3614_v27 = vld [vmem:[%s4557_s20 + $0x3d0] sm:$0xf]  ;;  %v4203_v4 = vld [vmem:[%s4557_s20 + $0x3e4] sm:$0xf0] }
 0x253   : > { %v2623_v61 = vpop.f32.mrf.mxu1  ;;  %v2453_v33 = vadd.f32 %v2452_v8, %v2284_v50  ;;  %v3611_v2 = vor.u32 %v4199_v36, %v3608_v16 }
 0x255   : > { %v2622_v53 = vadd.f32 %v2621_v55, %v2453_v33  ;;  %v3616_v33 = vld [vmem:[%s4557_s20 + $0x3e8] sm:$0xf0] }
 0x256   : > { %v2116_v6 = vpop.f32.mrf.mxu2 }
 0x257   : > { %v2285_v10 = vpop.f32.mrf.mxu3  ;;  %vm2751_vm4 = vcmp.ge.f32.partialorder %v2622_v53, 0.0  ;;  %v2815_v58 = vmul.f32 0.25, %v2622_v53  ;;  %v2117_v1 = vadd.f32 %v2116_v6, %v4946_v41 }
 0x258   : > { %v4383_v15 = vpop.eup %4382  ;;  %v2457_v48 = vpop.f32.mrf.mxu0 }
 0x259   : > { %3006 = vst [vmem:[%s5072_s24 + $0x98] sm:$0xff] %v4383_v15  ;;  %v2879_v21 = vsel %vm2751_vm4, %v2622_v53, %v2815_v58  ;;  %v2286_v7 = vadd.f32 %v2285_v10, %v2117_v1  ;;  %v3615_v53 = vor.u32 %v4203_v4, %v3614_v27 }
 0x25a   : > { %4384 = vtanh.f32 %v2879_v21 }
 0x25b   : > { %v2626_v39 = vpop.f32.mrf.mxu1  ;;  %v2455_v35 = vadd.f32 %v2454_v45, %v2286_v7  ;;  %2158 = vmatmul.bf16.gmra.mxu2 %v3583_v23  ;;  %2496 = vmatmul.bf16.gmra.mxu0 %v3591_v40  ;;  %v3607_v45 = vor.u32 %v4202_v30, %v3606_v54 }
 0x25c   : > { %2327 = vmatmul.bf16.gmra.mxu3 %v3587_v52 }
 0x25d   : > { %v2624_v49 = vadd.f32 %v2623_v61, %v2455_v35  ;;  %v4200_v61 = vld [vmem:[%s4557_s20 + $0x3d4] sm:$0xf]  ;;  %v4208_v35 = vld [vmem:[%s4557_s20 + $0x40c] sm:$0xf0] }
 0x25e   : > { %2665 = vmatmul.bf16.gmra.mxu1 %v3595_v13  ;;  %v2119_v41 = vpop.f32.mrf.mxu2  ;;  %v3619_v10 = vor.u32 %v4200_v61, %v3616_v33 }
 0x25f   : > { %v2288_v32 = vpop.f32.mrf.mxu3  ;;  %vm2752_vm5 = vcmp.ge.f32.partialorder %v2624_v49, 0.0  ;;  %v2816_v3 = vmul.f32 0.25, %v2624_v49  ;;  %v2120_v12 = vadd.f32 %v2119_v41, %v4959_v37  ;;  %v3632_v41 = vld [vmem:[%s4557_s20 + $0x410] sm:$0xf0] }
 0x260   : > { %v4385_v18 = vpop.eup %4384  ;;  %v2459_v14 = vpop.f32.mrf.mxu0 }
 0x261   : > { %3007 = vst [vmem:[%s5072_s24 + $0xa0] sm:$0xff] %v4385_v18  ;;  %v2880_v38 = vsel %vm2752_vm5, %v2624_v49, %v2816_v3  ;;  %v2289_v8 = vadd.f32 %v2288_v32, %v2120_v12  ;;  %v4205_v49 = vld [vmem:[%s4557_s20 + $0x3fc] sm:$0xf]  ;;  %v3638_v3 = vld [vmem:[%s4557_s20 + $0x400] sm:$0xf] }
 0x262   : > { %4386 = vtanh.f32 %v2880_v38  ;;  %v4209_v12 = vld [vmem:[%s4557_s20 + $0x414] sm:$0xf0]  ;;  %v3635_v54 = vor.u32 %v4205_v49, %v3632_v41 }
 0x263   : > { %v2628_v55 = vpop.f32.mrf.mxu1  ;;  %v2458_v28 = vadd.f32 %v2457_v48, %v2289_v8  ;;  %v4206_v8 = vld [vmem:[%s4557_s20 + $0x404] sm:$0xf]  ;;  %v3639_v36 = vor.u32 %v4209_v12, %v3638_v3 }
 0x265   : > { %v2627_v44 = vadd.f32 %v2626_v39, %v2458_v28  ;;  %v3630_v39 = vld [vmem:[%s4557_s20 + $0x3f8] sm:$0xf] }
 0x266   : > { %v2121_v50 = vpop.f32.mrf.mxu2  ;;  %v3631_v38 = vor.u32 %v4208_v35, %v3630_v39 }
 0x267   : > { %v2290_v37 = vpop.f32.mrf.mxu3  ;;  %vm2753_vm6 = vcmp.ge.f32.partialorder %v2627_v44, 0.0  ;;  %v2817_v62 = vmul.f32 0.25, %v2627_v44  ;;  %v2122_v60 = vadd.f32 %v2121_v50, %v4966_v57 }
 0x268   : > { %v4387_v22 = vpop.eup %4386  ;;  %v2462_v6 = vpop.f32.mrf.mxu0 }
 0x269   : > { %3008 = vst [vmem:[%s5072_s24 + $0xa8] sm:$0xff] %v4387_v22  ;;  %v2881_v31 = vsel %vm2753_vm6, %v2627_v44, %v2817_v62  ;;  %v2291_v42 = vadd.f32 %v2290_v37, %v2122_v60 }
 0x26a   : > { %4388 = vtanh.f32 %v2881_v31 }
 0x26b   : > { %v2631_v23 = vpop.f32.mrf.mxu1  ;;  %v2460_v25 = vadd.f32 %v2459_v14, %v2291_v42  ;;  %2163 = vmatmul.bf16.gmra.mxu2 %v3607_v45  ;;  %2501 = vmatmul.bf16.gmra.mxu0 %v3615_v53  ;;  %v3640_v14 = vld [vmem:[%s4557_s20 + $0x418] sm:$0xf0] }
 0x26c   : > { %2332 = vmatmul.bf16.gmra.mxu3 %v3611_v2  ;;  %v3643_v4 = vor.u32 %v4206_v8, %v3640_v14 }
 0x26d   : > { %v2629_v20 = vadd.f32 %v2628_v55, %v2460_v25  ;;  %v3656_v25 = vld [vmem:[%s4557_s20 + $0x440] sm:$0xf0] }
 0x26e   : > { %2670 = vmatmul.bf16.gmra.mxu1 %v3619_v10  ;;  %v2124_v57 = vpop.f32.mrf.mxu2  ;;  %v4214_v10 = vld [vmem:[%s4557_s20 + $0x43c] sm:$0xf0] }
 0x26f   : > { %v2293_v58 = vpop.f32.mrf.mxu3  ;;  %vm2754_vm7 = vcmp.ge.f32.partialorder %v2629_v20, 0.0  ;;  %v2818_v1 = vmul.f32 0.25, %v2629_v20  ;;  %v2125_v52 = vadd.f32 %v2124_v57, %v4979_v0  ;;  %v3662_v57 = vld [vmem:[%s4557_s20 + $0x430] sm:$0xf] }
 0x270   : > { %v4389_v15 = vpop.eup %4388  ;;  %v2464_v7 = vpop.f32.mrf.mxu0 }
 0x271   : > { %3009 = vst [vmem:[%s5072_s24 + $0xb0] sm:$0xff] %v4389_v15  ;;  %v2882_v40 = vsel %vm2754_vm7, %v2629_v20, %v2818_v1  ;;  %v2294_v21 = vadd.f32 %v2293_v58, %v2125_v52  ;;  %v4215_v58 = vld [vmem:[%s4557_s20 + $0x444] sm:$0xf0]  ;;  %v4212_v15 = vld [vmem:[%s4557_s20 + $0x434] sm:$0xf] }
 0x272   : > { %4390 = vtanh.f32 %v2882_v40  ;;  %v3664_v40 = vld [vmem:[%s4557_s20 + $0x448] sm:$0xf0]  ;;  %v3663_v39 = vor.u32 %v4215_v58, %v3662_v57 }
 0x273   : > { %v2633_v48 = vpop.f32.mrf.mxu1  ;;  %v2463_v13 = vadd.f32 %v2462_v6, %v2294_v21  ;;  %v3654_v6 = vld [vmem:[%s4557_s20 + $0x428] sm:$0xf] }
 0x274   : > { %v3655_v52 = vor.u32 %v4214_v10, %v3654_v6 }
 0x275   : > { %v2632_v32 = vadd.f32 %v2631_v23, %v2463_v13  ;;  %v4211_v23 = vld [vmem:[%s4557_s20 + $0x42c] sm:$0xf] }
 0x276   : > { %v2126_v18 = vpop.f32.mrf.mxu2 }
 0x277   : > { %v2295_v0 = vpop.f32.mrf.mxu3  ;;  %vm2755_vm8 = vcmp.ge.f32.partialorder %v2632_v32, 0.0  ;;  %v2819_v55 = vmul.f32 0.25, %v2632_v32  ;;  %v2127_v28 = vadd.f32 %v2126_v18, %v4986_v29 }
 0x278   : > { %v4391_v30 = vpop.eup %4390  ;;  %v2467_v27 = vpop.f32.mrf.mxu0 }
 0x279   : > { %3010 = vst [vmem:[%s5072_s24 + $0xb8] sm:$0xff] %v4391_v30  ;;  %v2883_v16 = vsel %vm2755_vm8, %v2632_v32, %v2819_v55  ;;  %v2296_v44 = vadd.f32 %v2295_v0, %v2127_v28  ;;  %v3667_v32 = vor.u32 %v4212_v15, %v3664_v40 }
 0x27a   : > { %4392 = vtanh.f32 %v2883_v16  ;;  %v3678_v16 = vld [vmem:[%s4557_s20 + $0x458] sm:$0xf] }
 0x27b   : > { %v2636_v50 = vpop.f32.mrf.mxu1  ;;  %v2465_v37 = vadd.f32 %v2464_v7, %v2296_v44  ;;  %2168 = vmatmul.bf16.gmra.mxu2 %v3631_v38  ;;  %2506 = vmatmul.bf16.gmra.mxu0 %v3639_v36  ;;  %v4220_v44 = vld [vmem:[%s4557_s20 + $0x46c] sm:$0xf0] }
 0x27c   : > { %2337 = vmatmul.bf16.gmra.mxu3 %v3635_v54 }
 0x27d   : > { %v2634_v45 = vadd.f32 %v2633_v48, %v2465_v37  ;;  %v3659_v48 = vor.u32 %v4211_v23, %v3656_v25  ;;  %v3686_v37 = vld [vmem:[%s4557_s20 + $0x460] sm:$0xf] }
 0x27e   : > { %2675 = vmatmul.bf16.gmra.mxu1 %v3643_v4  ;;  %v2129_v29 = vpop.f32.mrf.mxu2  ;;  %v3680_v4 = vld [vmem:[%s4557_s20 + $0x470] sm:$0xf0] }
 0x27f   : > { %v2298_v61 = vpop.f32.mrf.mxu3  ;;  %vm2756_vm9 = vcmp.ge.f32.partialorder %v2634_v45, 0.0  ;;  %v2820_v33 = vmul.f32 0.25, %v2634_v45  ;;  %v2130_v62 = vadd.f32 %v2129_v29, %v4999_v63 }
 0x280   : > { %v4393_v60 = vpop.eup %4392  ;;  %v2469_v53 = vpop.f32.mrf.mxu0 }
 0x281   : > { %3011 = vst [vmem:[%s5072_s24 + $0xc0] sm:$0xff] %v4393_v60  ;;  %v2884_v2 = vsel %vm2756_vm9, %v2634_v45, %v2820_v33  ;;  %v2299_v22 = vadd.f32 %v2298_v61, %v2130_v62  ;;  %v4221_v45 = vld [vmem:[%s4557_s20 + $0x474] sm:$0xf0]  ;;  %v3679_v61 = vor.u32 %v4220_v44, %v3678_v16  ;;  %v4218_v33 = vld [vmem:[%s4557_s20 + $0x464] sm:$0xf] }
 0x282   : > { %4394 = vtanh.f32 %v2884_v2  ;;  %v3688_v62 = vld [vmem:[%s4557_s20 + $0x478] sm:$0xf0] }
 0x283   : > { %v2638_v31 = vpop.f32.mrf.mxu1  ;;  %v2468_v42 = vadd.f32 %v2467_v27, %v2299_v22  ;;  %v4217_v27 = vld [vmem:[%s4557_s20 + $0x45c] sm:$0xf]  ;;  %v3691_v23 = vor.u32 %v4218_v33, %v3688_v62 }
 0x284   : > { %v3683_v22 = vor.u32 %v4217_v27, %v3680_v4 }
 0x285   : > { %v2637_v20 = vadd.f32 %v2636_v50, %v2468_v42 }
 0x286   : > { %v2131_v1 = vpop.f32.mrf.mxu2 }
 0x287   : > { %v2300_v63 = vpop.f32.mrf.mxu3  ;;  %vm2757_vm10 = vcmp.ge.f32.partialorder %v2637_v20, 0.0  ;;  %v2821_v21 = vmul.f32 0.25, %v2637_v20  ;;  %v2132_v7 = vadd.f32 %v2131_v1, %v5006_v51 }
 0x288   : > { %v4395_v13 = vpop.eup %4394  ;;  %v2472_v41 = vpop.f32.mrf.mxu0 }
 0x289   : > { %3012 = vst [vmem:[%s5072_s24 + $0xc8] sm:$0xff] %v4395_v13  ;;  %v2885_v35 = vsel %vm2757_vm10, %v2637_v20, %v2821_v21  ;;  %v2301_v49 = vadd.f32 %v2300_v63, %v2132_v7  ;;  %v3702_v13 = vld [vmem:[%s4557_s20 + $0x488] sm:$0xf] }
 0x28a   : > { %4396 = vtanh.f32 %v2885_v35  ;;  %v4223_v35 = vld [vmem:[%s4557_s20 + $0x48c] sm:$0xf] }
 0x28b   : > { %v2641_v3 = vpop.f32.mrf.mxu1  ;;  %v2470_v12 = vadd.f32 %v2469_v53, %v2301_v49  ;;  %2173 = vmatmul.bf16.gmra.mxu2 %v3655_v52  ;;  %2511 = vmatmul.bf16.gmra.mxu0 %v3663_v39  ;;  %v4226_v39 = vld [vmem:[%s4557_s20 + $0x49c] sm:$0xf0]  ;;  %v3704_v49 = vld [vmem:[%s4557_s20 + $0x4a0] sm:$0xf0] }
 0x28c   : > { %2342 = vmatmul.bf16.gmra.mxu3 %v3659_v48 }
 0x28d   : > { %v2639_v18 = vadd.f32 %v2638_v31, %v2470_v12  ;;  %v3687_v31 = vor.u32 %v4221_v45, %v3686_v37 }
 0x28e   : > { %2680 = vmatmul.bf16.gmra.mxu1 %v3667_v32  ;;  %v2134_v51 = vpop.f32.mrf.mxu2  ;;  %v3710_v32 = vld [vmem:[%s4557_s20 + $0x490] sm:$0xf] }
 0x28f   : > { %v2303_v0 = vpop.f32.mrf.mxu3  ;;  %vm2758_vm11 = vcmp.ge.f32.partialorder %v2639_v18, 0.0  ;;  %v2822_v38 = vmul.f32 0.25, %v2639_v18  ;;  %v2135_v8 = vadd.f32 %v2134_v51, %v5019_v5  ;;  %v4224_v51 = vld [vmem:[%s4557_s20 + $0x494] sm:$0xf] }
 0x290   : > { %v4397_v14 = vpop.eup %4396  ;;  %v2474_v54 = vpop.f32.mrf.mxu0 }
 0x291   : > { %3013 = vst [vmem:[%s5072_s24 + $0xd0] sm:$0xff] %v4397_v14  ;;  %v2886_v55 = vsel %vm2758_vm11, %v2639_v18, %v2822_v38  ;;  %v2304_v28 = vadd.f32 %v2303_v0, %v2135_v8  ;;  %v3703_v18 = vor.u32 %v4226_v39, %v3702_v13  ;;  %v3712_v0 = vld [vmem:[%s4557_s20 + $0x4a8] sm:$0xf0]  ;;  %v3707_v14 = vor.u32 %v4223_v35, %v3704_v49 }
 0x292   : > { %4398 = vtanh.f32 %v2886_v55  ;;  %v3715_v16 = vor.u32 %v4224_v51, %v3712_v0  ;;  %v3750_v0 = vld [vmem:[%s4557_s20 + $0x4e8] sm:$0xf] }
 0x293   : > { %v2643_v30 = vpop.f32.mrf.mxu1  ;;  %v2473_v36 = vadd.f32 %v2472_v41, %v2304_v28 }
 0x295   : > { %v2642_v50 = vadd.f32 %v2641_v3, %v2473_v36  ;;  %v4227_v3 = vld [vmem:[%s4557_s20 + $0x4a4] sm:$0xf0] }
 0x296   : > { %v2136_v29 = vpop.f32.mrf.mxu2  ;;  %v3711_v28 = vor.u32 %v4227_v3, %v3710_v32 }
 0x297   : > { %v2305_v5 = vpop.f32.mrf.mxu3  ;;  %vm2759_vm12 = vcmp.ge.f32.partialorder %v2642_v50, 0.0  ;;  %v2823_v60 = vmul.f32 0.25, %v2642_v50  ;;  %v2137_v2 = vadd.f32 %v2136_v29, %v5026_v9 }
 0x298   : > { %v4399_v53 = vpop.eup %4398  ;;  %v2477_v10 = vpop.f32.mrf.mxu0 }
 0x299   : > { %3014 = vst [vmem:[%s5072_s24 + $0xd8] sm:$0xff] %v4399_v53  ;;  %v2887_v42 = vsel %vm2759_vm12, %v2642_v50, %v2823_v60  ;;  %v2306_v6 = vadd.f32 %v2305_v5, %v2137_v2  ;;  %v3726_v2 = vld [vmem:[%s4557_s20 + $0x4b8] sm:$0xf]  ;;  %v4229_v53 = vld [vmem:[%s4557_s20 + $0x4bc] sm:$0xf] }
 0x29a   : > { %4400 = vtanh.f32 %v2887_v42 }
 0x29b   : > { %v2646_v25 = vpop.f32.mrf.mxu1  ;;  %v2475_v20 = vadd.f32 %v2474_v54, %v2306_v6  ;;  %2178 = vmatmul.bf16.gmra.mxu2 %v3679_v61  ;;  %2516 = vmatmul.bf16.gmra.mxu0 %v3687_v31  ;;  %v3728_v31 = vld [vmem:[%s4557_s20 + $0x4d0] sm:$0xf0]  ;;  %v3734_v6 = vld [vmem:[%s4557_s20 + $0x4c0] sm:$0xf] }
 0x29c   : > { %2347 = vmatmul.bf16.gmra.mxu3 %v3683_v22  ;;  %v4232_v22 = vld [vmem:[%s4557_s20 + $0x4cc] sm:$0xf0] }
 0x29d   : > { %v2644_v57 = vadd.f32 %v2643_v30, %v2475_v20  ;;  %v4230_v20 = vld [vmem:[%s4557_s20 + $0x4c4] sm:$0xf] }
 0x29e   : > { %2685 = vmatmul.bf16.gmra.mxu1 %v3691_v23  ;;  %v2139_v9 = vpop.f32.mrf.mxu2 }
 0x29f   : > { %v2308_v58 = vpop.f32.mrf.mxu3  ;;  %vm2760_vm13 = vcmp.ge.f32.partialorder %v2644_v57, 0.0  ;;  %v2824_v1 = vmul.f32 0.25, %v2644_v57  ;;  %v2140_v63 = vadd.f32 %v2139_v9, %v5039_v19 }
 0x2a0   : > { %v4401_v52 = vpop.eup %4400  ;;  %v2479_v21 = vpop.f32.mrf.mxu0 }
 0x2a1   : > { %3015 = vst [vmem:[%s5072_s24 + $0xe0] sm:$0xff] %v4401_v52  ;;  %v2888_v15 = vsel %vm2760_vm13, %v2644_v57, %v2824_v1  ;;  %v2309_v40 = vadd.f32 %v2308_v58, %v2140_v63  ;;  %v3736_v57 = vld [vmem:[%s4557_s20 + $0x4d8] sm:$0xf0]  ;;  %v3731_v1 = vor.u32 %v4229_v53, %v3728_v31 }
 0x2a2   : > { %4402 = vtanh.f32 %v2888_v15 }
 0x2a3   : > { %v2648_v7 = vpop.f32.mrf.mxu1  ;;  %v2478_v48 = vadd.f32 %v2477_v10, %v2309_v40  ;;  %v4233_v10 = vld [vmem:[%s4557_s20 + $0x4d4] sm:$0xf0] }
 0x2a4   : > { %v3735_v52 = vor.u32 %v4233_v10, %v3734_v6 }
 0x2a5   : > { %v2647_v41 = vadd.f32 %v2646_v25, %v2478_v48  ;;  %v3727_v25 = vor.u32 %v4232_v22, %v3726_v2 }
 0x2a6   : > { %v2141_v12 = vpop.f32.mrf.mxu2 }
 0x2a7   : > { %v2310_v19 = vpop.f32.mrf.mxu3  ;;  %vm2761_vm14 = vcmp.ge.f32.partialorder %v2647_v41, 0.0  ;;  %v2825_v38 = vmul.f32 0.25, %v2647_v41  ;;  %v2142_v8 = vadd.f32 %v2141_v12, %v5047_v43 }
 0x2a8   : > { %v4403_v55 = vpop.eup %4402  ;;  %v2482_v36 = vpop.f32.mrf.mxu0 }
 0x2a9   : > { %3016 = vst [vmem:[%s5072_s24 + $0xe8] sm:$0xff] %v4403_v55  ;;  %v2889_v54 = vsel %vm2761_vm14, %v2647_v41, %v2825_v38  ;;  %v2311_v30 = vadd.f32 %v2310_v19, %v2142_v8  ;;  %v4238_v38 = vld [vmem:[%s4557_s20 + $0x4fc] sm:$0xf0]  ;;  %v4235_v8 = vld [vmem:[%s4557_s20 + $0x4ec] sm:$0xf] }
 0x2aa   : > { %4404 = vtanh.f32 %v2889_v54  ;;  %v4239_v54 = vld [vmem:[%s4557_s20 + $0x504] sm:$0xf0] }
 0x2ab   : > { %v2651_v44 = vpop.f32.mrf.mxu1  ;;  %v2480_v27 = vadd.f32 %v2479_v21, %v2311_v30  ;;  %2183 = vmatmul.bf16.gmra.mxu2 %v3703_v18  ;;  %2521 = vmatmul.bf16.gmra.mxu0 %v3711_v28  ;;  %v3758_v28 = vld [vmem:[%s4557_s20 + $0x4f0] sm:$0xf] }
 0x2ac   : > { %2352 = vmatmul.bf16.gmra.mxu3 %v3707_v14  ;;  %v3752_v14 = vld [vmem:[%s4557_s20 + $0x500] sm:$0xf0] }
 0x2ad   : > { %v2649_v4 = vadd.f32 %v2648_v7, %v2480_v27  ;;  %v3739_v7 = vor.u32 %v4230_v20, %v3736_v57  ;;  %v4244_v20 = vld [vmem:[%s4557_s20 + $0x52c] sm:$0xf0]  ;;  %v4241_v57 = vld [vmem:[%s4557_s20 + $0x51c] sm:$0xf] }
 0x2ae   : > { %2690 = vmatmul.bf16.gmra.mxu1 %v3715_v16  ;;  %v2144_v43 = vpop.f32.mrf.mxu2  ;;  %v4236_v16 = vld [vmem:[%s4557_s20 + $0x4f4] sm:$0xf] }
 0x2af   : > { %v2313_v50 = vpop.f32.mrf.mxu3  ;;  %vm2762_vm15 = vcmp.ge.f32.partialorder %v2649_v4, 0.0  ;;  %v2826_v37 = vmul.f32 0.25, %v2649_v4  ;;  %v2145_v45 = vadd.f32 %v2144_v43, %v4712_v26  ;;  %v3755_v43 = vor.u32 %v4235_v8, %v3752_v14 }
 0x2b0   : > { %v4405_v29 = vpop.eup %4404  ;;  %v2484_v33 = vpop.f32.mrf.mxu0 }
 0x2b1   : > { %3017 = vst [vmem:[%s5072_s24 + $0xf0] sm:$0xff] %v4405_v29  ;;  %v2890_v5 = vsel %vm2762_vm15, %v2649_v4, %v2826_v37  ;;  %v2314_v61 = vadd.f32 %v2313_v50, %v2145_v45  ;;  %v3759_v37 = vor.u32 %v4239_v54, %v3758_v28 }
 0x2b2   : > { %4406 = vtanh.f32 %v2890_v5 }
 0x2b3   : > { %v2653_v62 = vpop.f32.mrf.mxu1  ;;  %v2483_v60 = vadd.f32 %v2482_v36, %v2314_v61  ;;  %v3751_v36 = vor.u32 %v4238_v38, %v3750_v0 }
 0x2b5   : > { %v2652_v42 = vadd.f32 %v2651_v44, %v2483_v60  ;;  %v3760_v44 = vld [vmem:[%s4557_s20 + $0x508] sm:$0xf0] }
 0x2b6   : > { %v2146_v23 = vpop.f32.mrf.mxu2  ;;  %v3763_v61 = vor.u32 %v4236_v16, %v3760_v44  ;;  %v3800_v16 = vld [vmem:[%s4557_s20 + $0x560] sm:$0xf0] }
 0x2b7   : > { %v2315_v26 = vpop.f32.mrf.mxu3  ;;  %vm2763_vm0 = vcmp.ge.f32.partialorder %v2652_v42, 0.0  ;;  %v2827_v9 = vmul.f32 0.25, %v2652_v42  ;;  %v2147_v58 = vadd.f32 %v2146_v23, %v4729_v46 }
 0x2b8   : > { %v4407_v63 = vpop.eup %4406  ;;  %v2487_v21 = vpop.f32.mrf.mxu0 }
 0x2b9   : > { %3018 = vst [vmem:[%s5072_s24 + $0xf8] sm:$0xff] %v4407_v63  ;;  %v2891_v15 = vsel %vm2763_vm0, %v2652_v42, %v2827_v9  ;;  %v2316_v40 = vadd.f32 %v2315_v26, %v2147_v58  ;;  %v3776_v9 = vld [vmem:[%s4557_s20 + $0x530] sm:$0xf0]  ;;  %v4245_v63 = vld [vmem:[%s4557_s20 + $0x534] sm:$0xf0] }
 0x2ba   : > { %4408 = vtanh.f32 %v2891_v15 }
 0x2bb   : > { %v2656_v48 = vpop.f32.mrf.mxu1  ;;  %v2485_v13 = vadd.f32 %v2484_v33, %v2316_v40  ;;  %2188 = vmatmul.bf16.gmra.mxu2 %v3727_v25  ;;  %2526 = vmatmul.bf16.gmra.mxu0 %v3735_v52  ;;  %v3774_v25 = vld [vmem:[%s4557_s20 + $0x518] sm:$0xf]  ;;  %v4242_v40 = vld [vmem:[%s4557_s20 + $0x524] sm:$0xf] }
 0x2bc   : > { %2357 = vmatmul.bf16.gmra.mxu3 %v3731_v1  ;;  %v3782_v1 = vld [vmem:[%s4557_s20 + $0x520] sm:$0xf]  ;;  %v3775_v15 = vor.u32 %v4244_v20, %v3774_v25 }
 0x2bd   : > { %v2654_v39 = vadd.f32 %v2653_v62, %v2485_v13  ;;  %v3779_v13 = vor.u32 %v4241_v57, %v3776_v9 }
 0x2be   : > { %2695 = vmatmul.bf16.gmra.mxu1 %v3739_v7  ;;  %v2149_v46 = vpop.f32.mrf.mxu2 }
 0x2bf   : > { %v2318_v35 = vpop.f32.mrf.mxu3  ;;  %vm2764_vm1 = vcmp.ge.f32.partialorder %v2654_v39, 0.0  ;;  %v2828_v49 = vmul.f32 0.25, %v2654_v39  ;;  %v2150_v41 = vadd.f32 %v2149_v46, %v4738_v56  ;;  %v3783_v46 = vor.u32 %v4245_v63, %v3782_v1  ;;  %v3822_v1 = vld [vmem:[%s4557_s20 + $0x578] sm:$0xf]  ;;  %v4256_v63 = vld [vmem:[%s4557_s20 + $0x58c] sm:$0xf0] }
 0x2c0   : > { %v4409_v32 = vpop.eup %4408  ;;  %v2489_v19 = vpop.f32.mrf.mxu0 }
 0x2c1   : > { %3019 = vst [vmem:[%s5072_s24 + $0x100] sm:$0xff] %v4409_v32  ;;  %v2892_v3 = vsel %vm2764_vm1, %v2654_v39, %v2828_v49  ;;  %v2319_v12 = vadd.f32 %v2318_v35, %v2150_v41 }
 0x2c2   : > { %4410 = vtanh.f32 %v2892_v3 }
 0x2c3   : > { %v2658_v18 = vpop.f32.mrf.mxu1  ;;  %v2488_v51 = vadd.f32 %v2487_v21, %v2319_v12  ;;  %v3784_v21 = vld [vmem:[%s4557_s20 + $0x538] sm:$0xf0] }
 0x2c4   : > { %v3787_v32 = vor.u32 %v4242_v40, %v3784_v21  ;;  %v3830_v40 = vld [vmem:[%s4557_s20 + $0x580] sm:$0xf]  ;;  %v4257_v21 = vld [vmem:[%s4557_s20 + $0x594] sm:$0xf0] }
 0x2c5   : > { %v2657_v55 = vadd.f32 %v2656_v48, %v2488_v51 }
 0x2c6   : > { %v2151_v30 = vpop.f32.mrf.mxu2 }
 0x2c7   : > { %v2320_v56 = vpop.f32.mrf.mxu3  ;;  %vm2765_vm2 = vcmp.ge.f32.partialorder %v2657_v55, 0.0  ;;  %v2829_v27 = vmul.f32 0.25, %v2657_v55  ;;  %v2152_v4 = vadd.f32 %v2151_v30, %v4752_v11  ;;  %v3798_v30 = vld [vmem:[%s4557_s20 + $0x548] sm:$0xf] }
 0x2c8   : > { %v4411_v50 = vpop.eup %4410  ;;  %v2492_v5 = vpop.f32.mrf.mxu0 }
 0x2c9   : > { %3020 = vst [vmem:[%s5072_s24 + $0x108] sm:$0xff] %v4411_v50  ;;  %v2893_v45 = vsel %vm2765_vm2, %v2657_v55, %v2829_v27  ;;  %v2321_v29 = vadd.f32 %v2320_v56, %v2152_v4  ;;  %v4250_v56 = vld [vmem:[%s4557_s20 + $0x55c] sm:$0xf0]  ;;  %v3806_v27 = vld [vmem:[%s4557_s20 + $0x550] sm:$0xf] }
 0x2ca   : > { %4412 = vtanh.f32 %v2893_v45  ;;  %v4251_v4 = vld [vmem:[%s4557_s20 + $0x564] sm:$0xf0]  ;;  %v3799_v50 = vor.u32 %v4250_v56, %v3798_v30  ;;  %v3808_v45 = vld [vmem:[%s4557_s20 + $0x568] sm:$0xf0] }
 0x2cb   : > { %v2661_v33 = vpop.f32.mrf.mxu1  ;;  %v2490_v62 = vadd.f32 %v2489_v19, %v2321_v29  ;;  %2193 = vmatmul.bf16.gmra.mxu2 %v3751_v36  ;;  %2531 = vmatmul.bf16.gmra.mxu0 %v3759_v37  ;;  %v4247_v36 = vld [vmem:[%s4557_s20 + $0x54c] sm:$0xf]  ;;  %v4248_v37 = vld [vmem:[%s4557_s20 + $0x554] sm:$0xf] }
 0x2cc   : > { %2362 = vmatmul.bf16.gmra.mxu3 %v3755_v43 }
 0x2cd   : > { %v2659_v60 = vadd.f32 %v2658_v18, %v2490_v62  ;;  %v3807_v62 = vor.u32 %v4251_v4, %v3806_v27  ;;  %v3846_v4 = vld [vmem:[%s4557_s20 + $0x5a8] sm:$0xf] }
 0x2ce   : > { %2700 = vmatmul.bf16.gmra.mxu1 %v3763_v61  ;;  %v2154_v11 = vpop.f32.mrf.mxu2  ;;  %v3803_v61 = vor.u32 %v4247_v36, %v3800_v16 }
 0x2cf   : > { %v2323_v2 = vpop.f32.mrf.mxu3  ;;  %vm2766_vm3 = vcmp.ge.f32.partialorder %v2659_v60, 0.0  ;;  %v2830_v22 = vmul.f32 0.25, %v2659_v60  ;;  %v2155_v53 = vadd.f32 %v2154_v11, %v4764_v24 }
 0x2d0   : > { %v4413_v31 = vpop.eup %4412  ;;  %v2494_v10 = vpop.f32.mrf.mxu0 }
 0x2d1   : > { %3021 = vst [vmem:[%s5072_s24 + $0x110] sm:$0xff] %v4413_v31  ;;  %v2894_v42 = vsel %vm2766_vm3, %v2659_v60, %v2830_v22  ;;  %v2324_v6 = vadd.f32 %v2323_v2, %v2155_v53  ;;  %v3811_v22 = vor.u32 %v4248_v37, %v3808_v45  ;;  %v3854_v45 = vld [vmem:[%s4557_s20 + $0x5b0] sm:$0xf] }
 0x2d2   : > { %4414 = vtanh.f32 %v2894_v42 }
 0x2d3   : > { %v2663_v23 = vpop.f32.mrf.mxu1  ;;  %v2493_v26 = vadd.f32 %v2492_v5, %v2324_v6 }
 0x2d5   : > { %v2662_v58 = vadd.f32 %v2661_v33, %v2493_v26 }
 0x2d6   : > { %v2156_v52 = vpop.f32.mrf.mxu2 }
 0x2d7   : > { %v2325_v24 = vpop.f32.mrf.mxu3  ;;  %vm2767_vm4 = vcmp.ge.f32.partialorder %v2662_v58, 0.0  ;;  %v2831_v7 = vmul.f32 0.25, %v2662_v58  ;;  %v2157_v48 = vadd.f32 %v2156_v52, %v4781_v47  ;;  %v4253_v52 = vld [vmem:[%s4557_s20 + $0x57c] sm:$0xf] }
 0x2d8   : > { %v4415_v39 = vpop.eup %4414  ;;  %v2497_v41 = vpop.f32.mrf.mxu0 }
 0x2d9   : > { %3022 = vst [vmem:[%s5072_s24 + $0x118] sm:$0xff] %v4415_v39  ;;  %v2895_v35 = vsel %vm2767_vm4, %v2662_v58, %v2831_v7  ;;  %v2326_v49 = vadd.f32 %v2325_v24, %v2157_v48  ;;  %v3824_v24 = vld [vmem:[%s4557_s20 + $0x590] sm:$0xf0]  ;;  %v3823_v48 = vor.u32 %v4256_v63, %v3822_v1  ;;  %v3832_v39 = vld [vmem:[%s4557_s20 + $0x598] sm:$0xf0] }
 0x2da   : > { %4416 = vtanh.f32 %v2895_v35  ;;  %v5406_v35 = vld [vmem:[#allocation2_spill] sm:$0xff]  ;;  %v5409_v1 = vld [vmem:[#allocation5_spill] sm:$0xff] }
 0x2db   : > { %v2666_v3 = vpop.f32.mrf.mxu1  ;;  %v2495_v12 = vadd.f32 %v2494_v10, %v2326_v49  ;;  %2198 = vmatmul.bf16.gmra.mxu2 %v3775_v15  ;;  %2536 = vmatmul.bf16.gmra.mxu0 %v3783_v46 }
 0x2dc   : > { %2367 = vmatmul.bf16.gmra.mxu3 %v3779_v13  ;;  %v4254_v13 = vld [vmem:[%s4557_s20 + $0x584] sm:$0xf] }
 0x2dd   : > { %v2664_v19 = vadd.f32 %v2663_v23, %v2495_v12 }
 0x2de   : > { %2705 = vmatmul.bf16.gmra.mxu1 %v3787_v32  ;;  %v2159_v47 = vpop.f32.mrf.mxu2 }
 0x2df   : > { %v2328_v18 = vpop.f32.mrf.mxu3  ;;  %vm2768_vm5 = vcmp.ge.f32.partialorder %v2664_v19, 0.0  ;;  %v2832_v51 = vmul.f32 0.25, %v2664_v19  ;;  %v2160_v0 = vadd.f32 %v2159_v47, %v4790_v59 }
 0x2e0   : > { %v4417_v38 = vpop.eup %4416  ;;  %v2499_v55 = vpop.f32.mrf.mxu0 }
 0x2e1   : > { %3023 = vst [vmem:[%s5072_s24 + $0x120] sm:$0xff] %v4417_v38  ;;  %v2896_v8 = vsel %vm2768_vm5, %v2664_v19, %v2832_v51  ;;  %v2329_v14 = vadd.f32 %v2328_v18, %v2160_v0  ;;  %v3835_v18 = vor.u32 %v4254_v13, %v3832_v39  ;;  %v4265_v13 = vld [vmem:[%s4557_s20 + $0x5dc] sm:$0xf]  ;;  %v3872_v39 = vld [vmem:[%s4557_s20 + $0x5f0] sm:$0xf0] }
 0x2e2   : > { %4418 = vtanh.f32 %v2896_v8 }
 0x2e3   : > { %v2668_v28 = vpop.f32.mrf.mxu1  ;;  %v2498_v54 = vadd.f32 %v2497_v41, %v2329_v14  ;;  %v3827_v41 = vor.u32 %v4253_v52, %v3824_v24 }
 0x2e5   : > { %v2667_v44 = vadd.f32 %v2666_v3, %v2498_v54  ;;  %v3831_v3 = vor.u32 %v4257_v21, %v3830_v40 }
 0x2e6   : > { %v2161_v43 = vpop.f32.mrf.mxu2 }
 0x2e7   : > { %v2330_v59 = vpop.f32.mrf.mxu3  ;;  %vm2769_vm6 = vcmp.ge.f32.partialorder %v2667_v44, 0.0  ;;  %v2833_v29 = vmul.f32 0.25, %v2667_v44  ;;  %v2162_v5 = vadd.f32 %v2161_v43, %v4804_v17  ;;  %v4262_v43 = vld [vmem:[%s4557_s20 + $0x5bc] sm:$0xf0] }
 0x2e8   : > { %v4419_v33 = vpop.eup %4418  ;;  %v2502_v2 = vpop.f32.mrf.mxu0 }
 0x2e9   : > { %3024 = vst [vmem:[%s5072_s24 + $0x128] sm:$0xff] %v4419_v33  ;;  %v2897_v60 = vsel %vm2769_vm6, %v2667_v44, %v2833_v29  ;;  %v2331_v11 = vadd.f32 %v2330_v59, %v2162_v5  ;;  %v4259_v59 = vld [vmem:[%s4557_s20 + $0x5ac] sm:$0xf]  ;;  %v4263_v29 = vld [vmem:[%s4557_s20 + $0x5c4] sm:$0xf0]  ;;  %v3847_v33 = vor.u32 %v4262_v43, %v3846_v4 }
 0x2ea   : > { %4420 = vtanh.f32 %v2897_v60  ;;  %v3856_v60 = vld [vmem:[%s4557_s20 + $0x5c8] sm:$0xf0] }
 0x2eb   : > { %v2671_v53 = vpop.f32.mrf.mxu1  ;;  %v2500_v31 = vadd.f32 %v2499_v55, %v2331_v11  ;;  %2203 = vmatmul.bf16.gmra.mxu2 %v3799_v50  ;;  %2541 = vmatmul.bf16.gmra.mxu0 %v3807_v62  ;;  %v3848_v50 = vld [vmem:[%s4557_s20 + $0x5c0] sm:$0xf0]  ;;  %v4260_v62 = vld [vmem:[%s4557_s20 + $0x5b4] sm:$0xf]  ;;  %v5411_v4 = vld [vmem:[#allocation7_spill] sm:$0xff] }
 0x2ec   : > { %2372 = vmatmul.bf16.gmra.mxu3 %v3803_v61 }
 0x2ed   : > { %v2669_v42 = vadd.f32 %v2668_v28, %v2500_v31  ;;  %v5407_v28 = vld [vmem:[#allocation3_spill] sm:$0xff] }
 0x2ee   : > { %2710 = vmatmul.bf16.gmra.mxu1 %v3811_v22  ;;  %v2164_v17 = vpop.f32.mrf.mxu2 }
 0x2ef   : > { %v2333_v6 = vpop.f32.mrf.mxu3  ;;  %vm2770_vm7 = vcmp.ge.f32.partialorder %v2669_v42, 0.0  ;;  %v2834_v10 = vmul.f32 0.25, %v2669_v42  ;;  %v2165_v23 = vadd.f32 %v2164_v17, %v4816_v34 }
 0x2f0   : > { %v4421_v26 = vpop.eup %4420  ;;  %v2504_v57 = vpop.f32.mrf.mxu0 }
 0x2f1   : > { %3025 = vst [vmem:[%s5072_s24 + $0x130] sm:$0xff] %v4421_v26  ;;  %v2898_v25 = vsel %vm2770_vm7, %v2669_v42, %v2834_v10  ;;  %v2334_v20 = vadd.f32 %v2333_v6, %v2165_v23  ;;  %v3855_v42 = vor.u32 %v4263_v29, %v3854_v45  ;;  %v3859_v23 = vor.u32 %v4260_v62, %v3856_v60 }
 0x2f2   : > { %4422 = vtanh.f32 %v2898_v25 }
 0x2f3   : > { %v2673_v9 = vpop.f32.mrf.mxu1  ;;  %v2503_v58 = vadd.f32 %v2502_v2, %v2334_v20  ;;  %v5408_v2 = vld [vmem:[#allocation4_spill] sm:$0xff] }
 0x2f5   : > { %v2672_v15 = vadd.f32 %v2671_v53, %v2503_v58  ;;  %v3851_v53 = vor.u32 %v4259_v59, %v3848_v50 }
 0x2f6   : > { %v2166_v7 = vpop.f32.mrf.mxu2 }
 0x2f7   : > { %v2335_v34 = vpop.f32.mrf.mxu3  ;;  %vm2771_vm8 = vcmp.ge.f32.partialorder %v2672_v15, 0.0  ;;  %v2835_v46 = vmul.f32 0.25, %v2672_v15  ;;  %v2167_v49 = vadd.f32 %v2166_v7, %v5406_v35  ;;  %v3878_v35 = vld [vmem:[%s4557_s20 + $0x5e0] sm:$0xf] }
 0x2f8   : > { %v4423_v32 = vpop.eup %4422  ;;  %v2507_v47 = vpop.f32.mrf.mxu0 }
 0x2f9   : > { %3026 = vst [vmem:[%s5072_s24 + $0x138] sm:$0xff] %v4423_v32  ;;  %v2899_v12 = vsel %vm2771_vm8, %v2672_v15, %v2835_v46  ;;  %v2336_v19 = vadd.f32 %v2335_v34, %v2167_v49  ;;  %v3870_v34 = vld [vmem:[%s4557_s20 + $0x5d8] sm:$0xf] }
 0x2fa   : > { %4424 = vtanh.f32 %v2899_v12  ;;  %v4269_v49 = vld [vmem:[%s4557_s20 + $0x5f4] sm:$0xf0]  ;;  %v4266_v12 = vld [vmem:[%s4557_s20 + $0x5e4] sm:$0xf] }
 0x2fb   : > { %v2676_v51 = vpop.f32.mrf.mxu1  ;;  %v2505_v0 = vadd.f32 %v2504_v57, %v2336_v19  ;;  %2208 = vmatmul.bf16.gmra.mxu2 %v3823_v48  ;;  %2546 = vmatmul.bf16.gmra.mxu0 %v3831_v3  ;;  %v4268_v48 = vld [vmem:[%s4557_s20 + $0x5ec] sm:$0xf0]  ;;  %v3880_v19 = vld [vmem:[%s4557_s20 + $0x5f8] sm:$0xf0] }
 0x2fc   : > { %2377 = vmatmul.bf16.gmra.mxu3 %v3827_v41  ;;  %v3871_v3 = vor.u32 %v4268_v48, %v3870_v34  ;;  %v5414_v34 = vld [vmem:[#allocation10_spill] sm:$0xff] }
 0x2fd   : > { %v2674_v38 = vadd.f32 %v2673_v9, %v2505_v0  ;;  %v3875_v0 = vor.u32 %v4265_v13, %v3872_v39 }
 0x2fe   : > { %2715 = vmatmul.bf16.gmra.mxu1 %v3835_v18  ;;  %v2169_v8 = vpop.f32.mrf.mxu2  ;;  %v5410_v18 = vld [vmem:[#allocation6_spill] sm:$0xff] }
 0x2ff   : > { %v2338_v14 = vpop.f32.mrf.mxu3  ;;  %vm2772_vm9 = vcmp.ge.f32.partialorder %v2674_v38, 0.0  ;;  %v2836_v55 = vmul.f32 0.25, %v2674_v38  ;;  %v2170_v54 = vadd.f32 %v2169_v8, %v5407_v28  ;;  %v3879_v8 = vor.u32 %v4269_v49, %v3878_v35 }
 0x300   : > { %v4425_v30 = vpop.eup %4424  ;;  %v2509_v16 = vpop.f32.mrf.mxu0 }
 0x301   : > { %3027 = vst [vmem:[%s5072_s24 + $0x140] sm:$0xff] %v4425_v30  ;;  %v2900_v56 = vsel %vm2772_vm9, %v2674_v38, %v2836_v55  ;;  %v2339_v36 = vadd.f32 %v2338_v14, %v2170_v54  ;;  %v3883_v54 = vor.u32 %v4266_v12, %v3880_v19 }
 0x302   : > { %4426 = vtanh.f32 %v2900_v56 }
 0x303   : > { %v2678_v44 = vpop.f32.mrf.mxu1  ;;  %v2508_v27 = vadd.f32 %v2507_v47, %v2339_v36 }
 0x305   : > { %v2677_v37 = vadd.f32 %v2676_v51, %v2508_v27 }
 0x306   : > { %v2171_v5 = vpop.f32.mrf.mxu2 }
 0x307   : > { %v2340_v61 = vpop.f32.mrf.mxu3  ;;  %vm2773_vm10 = vcmp.ge.f32.partialorder %v2677_v37, 0.0  ;;  %v2837_v11 = vmul.f32 0.25, %v2677_v37  ;;  %v2172_v22 = vadd.f32 %v2171_v5, %v5408_v2 }
 0x308   : > { %v4427_v31 = vpop.eup %4426  ;;  %v2512_v10 = vpop.f32.mrf.mxu0 }
 0x309   : > { %3028 = vst [vmem:[%s5072_s24 + $0x148] sm:$0xff] %v4427_v31  ;;  %v2901_v17 = vsel %vm2773_vm10, %v2677_v37, %v2837_v11  ;;  %v2341_v6 = vadd.f32 %v2340_v61, %v2172_v22  ;;  %v5412_v11 = vld [vmem:[#allocation8_spill] sm:$0xff] }
 0x30a   : > { %4428 = vtanh.f32 %v2901_v17 }
 0x30b   : > { %v2681_v26 = vpop.f32.mrf.mxu1  ;;  %v2510_v25 = vadd.f32 %v2509_v16, %v2341_v6  ;;  %2213 = vmatmul.bf16.gmra.mxu2 %v3847_v33  ;;  %2551 = vmatmul.bf16.gmra.mxu0 %v3855_v42 }
 0x30c   : > { %2382 = vmatmul.bf16.gmra.mxu3 %v3851_v53 }
 0x30d   : > { %v2679_v20 = vadd.f32 %v2678_v44, %v2510_v25 }
 0x30e   : > { %2720 = vmatmul.bf16.gmra.mxu1 %v3859_v23  ;;  %v2174_v57 = vpop.f32.mrf.mxu2 }
 0x30f   : > { %v2343_v9 = vpop.f32.mrf.mxu3  ;;  %vm2774_vm11 = vcmp.ge.f32.partialorder %v2679_v20, 0.0  ;;  %v2838_v58 = vmul.f32 0.25, %v2679_v20  ;;  %v2175_v63 = vadd.f32 %v2174_v57, %v5409_v1 }
 0x310   : > { %v4429_v52 = vpop.eup %4428  ;;  %v2514_v40 = vpop.f32.mrf.mxu0 }
 0x311   : > { %3029 = vst [vmem:[%s5072_s24 + $0x150] sm:$0xff] %v4429_v52  ;;  %v2902_v24 = vsel %vm2774_vm11, %v2679_v20, %v2838_v58  ;;  %v2344_v15 = vadd.f32 %v2343_v9, %v2175_v63  ;;  %v5413_v20 = vld [vmem:[#allocation9_spill] sm:$0xff] }
 0x312   : > { %4430 = vtanh.f32 %v2902_v24 }
 0x313   : > { %v2683_v21 = vpop.f32.mrf.mxu1  ;;  %v2513_v7 = vadd.f32 %v2512_v10, %v2344_v15 }
 0x315   : > { %v2682_v46 = vadd.f32 %v2681_v26, %v2513_v7 }
 0x316   : > { %v2176_v41 = vpop.f32.mrf.mxu2 }
 0x317   : > { %v2345_v32 = vpop.f32.mrf.mxu3  ;;  %vm2775_vm12 = vcmp.ge.f32.partialorder %v2682_v46, 0.0  ;;  %v2839_v47 = vmul.f32 0.25, %v2682_v46  ;;  %v2177_v51 = vadd.f32 %v2176_v41, %v5410_v18 }
 0x318   : > { %v4431_v38 = vpop.eup %4430  ;;  %v2517_v28 = vpop.f32.mrf.mxu0 }
 0x319   : > { %3030 = vst [vmem:[%s5072_s24 + $0x158] sm:$0xff] %v4431_v38  ;;  %v2903_v14 = vsel %vm2775_vm12, %v2682_v46, %v2839_v47  ;;  %v2346_v55 = vadd.f32 %v2345_v32, %v2177_v51  ;;  %v5415_v47 = vld [vmem:[#allocation11_spill] sm:$0xff] }
 0x31a   : > { %4432 = vtanh.f32 %v2903_v14 }
 0x31b   : > { %v2686_v30 = vpop.f32.mrf.mxu1  ;;  %v2515_v56 = vadd.f32 %v2514_v40, %v2346_v55  ;;  %2218 = vmatmul.bf16.gmra.mxu2 %v3871_v3  ;;  %2556 = vmatmul.bf16.gmra.mxu0 %v3879_v8 }
 0x31c   : > { %2387 = vmatmul.bf16.gmra.mxu3 %v3875_v0 }
 0x31d   : > { %v2684_v36 = vadd.f32 %v2683_v21, %v2515_v56 }
 0x31e   : > { %2725 = vmatmul.bf16.gmra.mxu1 %v3883_v54  ;;  %v2179_v16 = vpop.f32.mrf.mxu2 }
 0x31f   : > { %v2348_v44 = vpop.f32.mrf.mxu3  ;;  %vm2776_vm13 = vcmp.ge.f32.partialorder %v2684_v36, 0.0  ;;  %v2840_v27 = vmul.f32 0.25, %v2684_v36  ;;  %v2180_v43 = vadd.f32 %v2179_v16, %v5411_v4 }
 0x320   : > { %v4433_v59 = vpop.eup %4432  ;;  %v2519_v45 = vpop.f32.mrf.mxu0 }
 0x321   : > { %3031 = vst [vmem:[%s5072_s24 + $0x160] sm:$0xff] %v4433_v59  ;;  %v2904_v50 = vsel %vm2776_vm13, %v2684_v36, %v2840_v27  ;;  %v2349_v37 = vadd.f32 %v2348_v44, %v2180_v43  ;;  %v5416_v36 = vld [vmem:[#allocation12_spill] sm:$0xff] }
 0x322   : > { %4434 = vtanh.f32 %v2904_v50 }
 0x323   : > { %v2688_v29 = vpop.f32.mrf.mxu1  ;;  %v2518_v5 = vadd.f32 %v2517_v28, %v2349_v37 }
 0x325   : > { %v2687_v61 = vadd.f32 %v2686_v30, %v2518_v5 }
 0x326   : > { %v2181_v33 = vpop.f32.mrf.mxu2 }
 0x327   : > { %v2350_v62 = vpop.f32.mrf.mxu3  ;;  %vm2777_vm14 = vcmp.ge.f32.partialorder %v2687_v61, 0.0  ;;  %v2841_v60 = vmul.f32 0.25, %v2687_v61  ;;  %v2182_v2 = vadd.f32 %v2181_v33, %v5412_v11 }
 0x328   : > { %v4435_v22 = vpop.eup %4434  ;;  %v2522_v42 = vpop.f32.mrf.mxu0 }
 0x329   : > { %3032 = vst [vmem:[%s5072_s24 + $0x168] sm:$0xff] %v4435_v22  ;;  %v2905_v53 = vsel %vm2777_vm14, %v2687_v61, %v2841_v60  ;;  %v2351_v31 = vadd.f32 %v2350_v62, %v2182_v2  ;;  %v5417_v61 = vld [vmem:[#allocation13_spill] sm:$0xff] }
 0x32a   : > { %4436 = vtanh.f32 %v2905_v53 }
 0x32b   : > { %v2691_v17 = vpop.f32.mrf.mxu1  ;;  %v2520_v6 = vadd.f32 %v2519_v45, %v2351_v31 }
 0x32d   : > { %v2689_v10 = vadd.f32 %v2688_v29, %v2520_v6 }
 0x32e   : > { %v2184_v23 = vpop.f32.mrf.mxu2 }
 0x32f   : > { %v2353_v26 = vpop.f32.mrf.mxu3  ;;  %vm2778_vm15 = vcmp.ge.f32.partialorder %v2689_v10, 0.0  ;;  %v2842_v25 = vmul.f32 0.25, %v2689_v10  ;;  %v2185_v57 = vadd.f32 %v2184_v23, %v5413_v20 }
 0x330   : > { %v4437_v9 = vpop.eup %4436  ;;  %v2524_v63 = vpop.f32.mrf.mxu0 }
 0x331   : > { %3033 = vst [vmem:[%s5072_s24 + $0x170] sm:$0xff] %v4437_v9  ;;  %v2906_v58 = vsel %vm2778_vm15, %v2689_v10, %v2842_v25  ;;  %v2354_v1 = vadd.f32 %v2353_v26, %v2185_v57  ;;  %v5418_v10 = vld [vmem:[#allocation14_spill] sm:$0xff] }
 0x332   : > { %4438 = vtanh.f32 %v2906_v58 }
 0x333   : > { %v2693_v52 = vpop.f32.mrf.mxu1  ;;  %v2523_v24 = vadd.f32 %v2522_v42, %v2354_v1 }
 0x335   : > { %v2692_v15 = vadd.f32 %v2691_v17, %v2523_v24 }
 0x336   : > { %v2186_v40 = vpop.f32.mrf.mxu2 }
 0x337   : > { %v2355_v21 = vpop.f32.mrf.mxu3  ;;  %vm2779_vm0 = vcmp.ge.f32.partialorder %v2692_v15, 0.0  ;;  %v2843_v7 = vmul.f32 0.25, %v2692_v15  ;;  %v2187_v48 = vadd.f32 %v2186_v40, %v5414_v34 }
 0x338   : > { %v4439_v13 = vpop.eup %4438  ;;  %v2527_v35 = vpop.f32.mrf.mxu0 }
 0x339   : > { %3034 = vst [vmem:[%s5072_s24 + $0x178] sm:$0xff] %v4439_v13  ;;  %v2907_v39 = vsel %vm2779_vm0, %v2692_v15, %v2843_v7  ;;  %v2356_v46 = vadd.f32 %v2355_v21, %v2187_v48  ;;  %v5419_v15 = vld [vmem:[#allocation15_spill] sm:$0xff] }
 0x33a   : > { %4440 = vtanh.f32 %v2907_v39 }
 0x33b   : > { %v2696_v49 = vpop.f32.mrf.mxu1  ;;  %v2525_v41 = vadd.f32 %v2524_v63, %v2356_v46 }
 0x33d   : > { %v2694_v32 = vadd.f32 %v2693_v52, %v2525_v41 }
 0x33e   : > { %v2189_v3 = vpop.f32.mrf.mxu2 }
 0x33f   : > { %v2358_v12 = vpop.f32.mrf.mxu3  ;;  %vm2780_vm1 = vcmp.ge.f32.partialorder %v2694_v32, 0.0  ;;  %v2844_v19 = vmul.f32 0.25, %v2694_v32  ;;  %v2190_v18 = vadd.f32 %v2189_v3, %v5415_v47 }
 0x340   : > { %v4441_v51 = vpop.eup %4440  ;;  %v2529_v8 = vpop.f32.mrf.mxu0 }
 0x341   : > { %3035 = vst [vmem:[%s5072_s24 + $0x180] sm:$0xff] %v4441_v51  ;;  %v2908_v0 = vsel %vm2780_vm1, %v2694_v32, %v2844_v19  ;;  %v2359_v38 = vadd.f32 %v2358_v12, %v2190_v18  ;;  %v5420_v32 = vld [vmem:[#allocation16_spill] sm:$0xff] }
 0x342   : > { %4442 = vtanh.f32 %v2908_v0 }
 0x343   : > { %v2698_v14 = vpop.f32.mrf.mxu1  ;;  %v2528_v55 = vadd.f32 %v2527_v35, %v2359_v38 }
 0x345   : > { %v2697_v28 = vadd.f32 %v2696_v49, %v2528_v55 }
 0x346   : > { %v2191_v54 = vpop.f32.mrf.mxu2 }
 0x347   : > { %v2360_v30 = vpop.f32.mrf.mxu3  ;;  %vm2781_vm2 = vcmp.ge.f32.partialorder %v2697_v28, 0.0  ;;  %v2845_v56 = vmul.f32 0.25, %v2697_v28  ;;  %v2192_v16 = vadd.f32 %v2191_v54, %v5416_v36 }
 0x348   : > { %v4443_v44 = vpop.eup %4442  ;;  %v2532_v43 = vpop.f32.mrf.mxu0 }
 0x349   : > { %3036 = vst [vmem:[%s5072_s24 + $0x188] sm:$0xff] %v4443_v44  ;;  %v2909_v27 = vsel %vm2781_vm2, %v2697_v28, %v2845_v56  ;;  %v2361_v4 = vadd.f32 %v2360_v30, %v2192_v16  ;;  %v5421_v28 = vld [vmem:[#allocation17_spill] sm:$0xff] }
 0x34a   : > { %4444 = vtanh.f32 %v2909_v27 }
 0x34b   : > { %v2701_v59 = vpop.f32.mrf.mxu1  ;;  %v2530_v50 = vadd.f32 %v2529_v8, %v2361_v4 }
 0x34d   : > { %v2699_v37 = vadd.f32 %v2698_v14, %v2530_v50 }
 0x34e   : > { %v2194_v45 = vpop.f32.mrf.mxu2 }
 0x34f   : > { %v2363_v29 = vpop.f32.mrf.mxu3  ;;  %vm2782_vm3 = vcmp.ge.f32.partialorder %v2699_v37, 0.0  ;;  %v2846_v5 = vmul.f32 0.25, %v2699_v37  ;;  %v2195_v33 = vadd.f32 %v2194_v45, %v5417_v61 }
 0x350   : > { %v4445_v62 = vpop.eup %4444  ;;  %v2534_v2 = vpop.f32.mrf.mxu0 }
 0x351   : > { %3037 = vst [vmem:[%s5072_s24 + $0x190] sm:$0xff] %v4445_v62  ;;  %v2910_v60 = vsel %vm2782_vm3, %v2699_v37, %v2846_v5  ;;  %v2364_v11 = vadd.f32 %v2363_v29, %v2195_v33  ;;  %v5422_v37 = vld [vmem:[#allocation18_spill] sm:$0xff] }
 0x352   : > { %4446 = vtanh.f32 %v2910_v60 }
 0x353   : > { %v2703_v22 = vpop.f32.mrf.mxu1  ;;  %v2533_v53 = vadd.f32 %v2532_v43, %v2364_v11 }
 0x355   : > { %v2702_v31 = vadd.f32 %v2701_v59, %v2533_v53 }
 0x356   : > { %v2196_v42 = vpop.f32.mrf.mxu2 }
 0x357   : > { %v2365_v17 = vpop.f32.mrf.mxu3  ;;  %vm2783_vm4 = vcmp.ge.f32.partialorder %v2702_v31, 0.0  ;;  %v2847_v6 = vmul.f32 0.25, %v2702_v31  ;;  %v2197_v23 = vadd.f32 %v2196_v42, %v5418_v10 }
 0x358   : > { %v4447_v26 = vpop.eup %4446  ;;  %v2537_v57 = vpop.f32.mrf.mxu0 }
 0x359   : > { %3038 = vst [vmem:[%s5072_s24 + $0x198] sm:$0xff] %v4447_v26  ;;  %v2911_v25 = vsel %vm2783_vm4, %v2702_v31, %v2847_v6  ;;  %v2366_v20 = vadd.f32 %v2365_v17, %v2197_v23  ;;  %v5423_v31 = vld [vmem:[#allocation19_spill] sm:$0xff] }
 0x35a   : > { %4448 = vtanh.f32 %v2911_v25 }
 0x35b   : > { %v2706_v9 = vpop.f32.mrf.mxu1  ;;  %v2535_v58 = vadd.f32 %v2534_v2, %v2366_v20 }
 0x35d   : > { %v2704_v1 = vadd.f32 %v2703_v22, %v2535_v58 }
 0x35e   : > { %v2199_v63 = vpop.f32.mrf.mxu2 }
 0x35f   : > { %v2368_v52 = vpop.f32.mrf.mxu3  ;;  %vm2784_vm5 = vcmp.ge.f32.partialorder %v2704_v1, 0.0  ;;  %v2848_v24 = vmul.f32 0.25, %v2704_v1  ;;  %v2200_v40 = vadd.f32 %v2199_v63, %v5419_v15 }
 0x360   : > { %v4449_v21 = vpop.eup %4448  ;;  %v2539_v48 = vpop.f32.mrf.mxu0 }
 0x361   : > { %3039 = vst [vmem:[%s5072_s24 + $0x1a0] sm:$0xff] %v4449_v21  ;;  %v2912_v7 = vsel %vm2784_vm5, %v2704_v1, %v2848_v24  ;;  %v2369_v34 = vadd.f32 %v2368_v52, %v2200_v40  ;;  %v5424_v1 = vld [vmem:[#allocation20_spill] sm:$0xff] }
 0x362   : > { %4450 = vtanh.f32 %v2912_v7 }
 0x363   : > { %v2708_v13 = vpop.f32.mrf.mxu1  ;;  %v2538_v39 = vadd.f32 %v2537_v57, %v2369_v34 }
 0x365   : > { %v2707_v46 = vadd.f32 %v2706_v9, %v2538_v39 }
 0x366   : > { %v2201_v35 = vpop.f32.mrf.mxu2 }
 0x367   : > { %v2370_v49 = vpop.f32.mrf.mxu3  ;;  %vm2785_vm6 = vcmp.ge.f32.partialorder %v2707_v46, 0.0  ;;  %v2849_v41 = vmul.f32 0.25, %v2707_v46  ;;  %v2202_v3 = vadd.f32 %v2201_v35, %v5420_v32 }
 0x368   : > { %v4451_v12 = vpop.eup %4450  ;;  %v2542_v18 = vpop.f32.mrf.mxu0 }
 0x369   : > { %3040 = vst [vmem:[%s5072_s24 + $0x1a8] sm:$0xff] %v4451_v12  ;;  %v2913_v19 = vsel %vm2785_vm6, %v2707_v46, %v2849_v41  ;;  %v2371_v47 = vadd.f32 %v2370_v49, %v2202_v3  ;;  %v5425_v46 = vld [vmem:[#allocation21_spill] sm:$0xff] }
 0x36a   : > { %4452 = vtanh.f32 %v2913_v19 }
 0x36b   : > { %v2711_v51 = vpop.f32.mrf.mxu1  ;;  %v2540_v0 = vadd.f32 %v2539_v48, %v2371_v47 }
 0x36d   : > { %v2709_v38 = vadd.f32 %v2708_v13, %v2540_v0  ;;  %v5426_v0 = vld [vmem:[#allocation22_spill] sm:$0xff] }
 0x36e   : > { %v2204_v8 = vpop.f32.mrf.mxu2 }
 0x36f   : > { %v2373_v14 = vpop.f32.mrf.mxu3  ;;  %vm2786_vm7 = vcmp.ge.f32.partialorder %v2709_v38, 0.0  ;;  %v2850_v55 = vmul.f32 0.25, %v2709_v38  ;;  %v2205_v54 = vadd.f32 %v2204_v8, %v5421_v28 }
 0x370   : > { %v4453_v30 = vpop.eup %4452  ;;  %v2544_v16 = vpop.f32.mrf.mxu0 }
 0x371   : > { %3041 = vst [vmem:[%s5072_s24 + $0x1b0] sm:$0xff] %v4453_v30  ;;  %v2914_v56 = vsel %vm2786_vm7, %v2709_v38, %v2850_v55  ;;  %v2374_v36 = vadd.f32 %v2373_v14, %v2205_v54 }
 0x372   : > { %4454 = vtanh.f32 %v2914_v56 }
 0x373   : > { %v2713_v44 = vpop.f32.mrf.mxu1  ;;  %v2543_v27 = vadd.f32 %v2542_v18, %v2374_v36 }
 0x375   : > { %v2712_v4 = vadd.f32 %v2711_v51, %v2543_v27 }
 0x376   : > { %v2206_v43 = vpop.f32.mrf.mxu2 }
 0x377   : > { %v2375_v59 = vpop.f32.mrf.mxu3  ;;  %vm2787_vm8 = vcmp.ge.f32.partialorder %v2712_v4, 0.0  ;;  %v2851_v50 = vmul.f32 0.25, %v2712_v4  ;;  %v2207_v45 = vadd.f32 %v2206_v43, %v5422_v37 }
 0x378   : > { %v4455_v29 = vpop.eup %4454  ;;  %v2547_v33 = vpop.f32.mrf.mxu0 }
 0x379   : > { %3042 = vst [vmem:[%s5072_s24 + $0x1b8] sm:$0xff] %v4455_v29  ;;  %v2915_v5 = vsel %vm2787_vm8, %v2712_v4, %v2851_v50  ;;  %v2376_v61 = vadd.f32 %v2375_v59, %v2207_v45 }
 0x37a   : > { %4456 = vtanh.f32 %v2915_v5 }
 0x37b   : > { %v2716_v62 = vpop.f32.mrf.mxu1  ;;  %v2545_v60 = vadd.f32 %v2544_v16, %v2376_v61 }
 0x37d   : > { %v2714_v11 = vadd.f32 %v2713_v44, %v2545_v60  ;;  %v5427_v44 = vld [vmem:[#allocation23_spill] sm:$0xff] }
 0x37e   : > { %v2209_v2 = vpop.f32.mrf.mxu2 }
 0x37f   : > { %v2378_v22 = vpop.f32.mrf.mxu3  ;;  %vm2788_vm9 = vcmp.ge.f32.partialorder %v2714_v11, 0.0  ;;  %v2852_v53 = vmul.f32 0.25, %v2714_v11  ;;  %v2210_v42 = vadd.f32 %v2209_v2, %v5423_v31 }
 0x380   : > { %v4457_v17 = vpop.eup %4456  ;;  %v2549_v23 = vpop.f32.mrf.mxu0 }
 0x381   : > { %3043 = vst [vmem:[%s5072_s24 + $0x1c0] sm:$0xff] %v4457_v17  ;;  %v2916_v6 = vsel %vm2788_vm9, %v2714_v11, %v2852_v53  ;;  %v2379_v10 = vadd.f32 %v2378_v22, %v2210_v42 }
 0x382   : > { %4458 = vtanh.f32 %v2916_v6 }
 0x383   : > { %v2548_v26 = vadd.f32 %v2547_v33, %v2379_v10  ;;  %v2718_v25 = vpop.f32.mrf.mxu1  ;;  %v5428_v33 = vld [vmem:[#allocation24_spill] sm:$0xff] }
 0x385   : > { %v2717_v20 = vadd.f32 %v2716_v62, %v2548_v26 }
 0x386   : > { %v2211_v57 = vpop.f32.mrf.mxu2 }
 0x387   : > { %v2380_v9 = vpop.f32.mrf.mxu3  ;;  %vm2789_vm10 = vcmp.ge.f32.partialorder %v2717_v20, 0.0  ;;  %v2853_v58 = vmul.f32 0.25, %v2717_v20  ;;  %v2212_v63 = vadd.f32 %v2211_v57, %v5424_v1 }
 0x388   : > { %v4459_v52 = vpop.eup %4458  ;;  %v2552_v21 = vpop.f32.mrf.mxu0 }
 0x389   : > { %3044 = vst [vmem:[%s5072_s24 + $0x1c8] sm:$0xff] %v4459_v52  ;;  %v2917_v24 = vsel %vm2789_vm10, %v2717_v20, %v2853_v58  ;;  %v2381_v15 = vadd.f32 %v2380_v9, %v2212_v63 }
 0x38a   : > { %4460 = vtanh.f32 %v2917_v24 }
 0x38b   : > { %v2550_v40 = vadd.f32 %v2549_v23, %v2381_v15  ;;  %v2721_v34 = vpop.f32.mrf.mxu1 }
 0x38d   : > { %v2719_v7 = vadd.f32 %v2718_v25, %v2550_v40 }
 0x38e   : > { %v2214_v48 = vpop.f32.mrf.mxu2 }
 0x38f   : > { %v2383_v13 = vpop.f32.mrf.mxu3  ;;  %vm2790_vm11 = vcmp.ge.f32.partialorder %v2719_v7, 0.0  ;;  %v2854_v39 = vmul.f32 0.25, %v2719_v7  ;;  %v2215_v35 = vadd.f32 %v2214_v48, %v5425_v46 }
 0x390   : > { %v4461_v49 = vpop.eup %4460  ;;  %v2554_v19 = vpop.f32.mrf.mxu0 }
 0x391   : > { %3045 = vst [vmem:[%s5072_s24 + $0x1d0] sm:$0xff] %v4461_v49  ;;  %v2918_v41 = vsel %vm2790_vm11, %v2719_v7, %v2854_v39  ;;  %v2384_v32 = vadd.f32 %v2383_v13, %v2215_v35 }
 0x392   : > { %4462 = vtanh.f32 %v2918_v41 }
 0x393   : > { %v2553_v3 = vadd.f32 %v2552_v21, %v2384_v32  ;;  %v2723_v14 = vpop.f32.mrf.mxu1 }
 0x395   : > { %v2722_v12 = vadd.f32 %v2721_v34, %v2553_v3 }
 0x396   : > { %v2216_v47 = vpop.f32.mrf.mxu2 }
 0x397   : > { %v2385_v18 = vpop.f32.mrf.mxu3  ;;  %vm2791_vm12 = vcmp.ge.f32.partialorder %v2722_v12, 0.0  ;;  %v2855_v51 = vmul.f32 0.25, %v2722_v12  ;;  %v2217_v38 = vadd.f32 %v2216_v47, %v5426_v0 }
 0x398   : > { %v4463_v8 = vpop.eup %4462  ;;  %v2557_v43 = vpop.f32.mrf.mxu0 }
 0x399   : > { %3046 = vst [vmem:[%s5072_s24 + $0x1d8] sm:$0xff] %v4463_v8  ;;  %v2919_v55 = vsel %vm2791_vm12, %v2722_v12, %v2855_v51  ;;  %v2386_v28 = vadd.f32 %v2385_v18, %v2217_v38 }
 0x39a   : > { %4464 = vtanh.f32 %v2919_v55 }
 0x39b   : > { %v2555_v54 = vadd.f32 %v2554_v19, %v2386_v28  ;;  %v2726_v37 = vpop.f32.mrf.mxu1 }
 0x39d   : > { %v2724_v30 = vadd.f32 %v2723_v14, %v2555_v54 }
 0x39e   : > { %v2219_v56 = vpop.f32.mrf.mxu2 }
 0x39f   : > { %v2388_v36 = vpop.f32.mrf.mxu3  ;;  %vm2792_vm13 = vcmp.ge.f32.partialorder %v2724_v30, 0.0  ;;  %v2856_v16 = vmul.f32 0.25, %v2724_v30  ;;  %v2220_v27 = vadd.f32 %v2219_v56, %v5427_v44 }
 0x3a0   : > { %v4465_v4 = vpop.eup %4464  ;;  %v2559_v53 = vpop.f32.mrf.mxu0 }
 0x3a1   : > { %3047 = vst [vmem:[%s5072_s24 + $0x1e0] sm:$0xff] %v4465_v4  ;;  %v2920_v59 = vsel %vm2792_vm13, %v2724_v30, %v2856_v16  ;;  %v2389_v50 = vadd.f32 %v2388_v36, %v2220_v27 }
 0x3a2   : > { %4466 = vtanh.f32 %v2920_v59 }
 0x3a3   : > { %v2558_v45 = vadd.f32 %v2557_v43, %v2389_v50  ;;  %v2728_v42 = vpop.f32.mrf.mxu1 }
 0x3a5   : > { %v2727_v29 = vadd.f32 %v2726_v37, %v2558_v45 }
 0x3a6   : > { %v2221_v5 = vpop.f32.mrf.mxu2 }
 0x3a7   : > { %vm2793_vm14 = vcmp.ge.f32.partialorder %v2727_v29, 0.0  ;;  %v2857_v61 = vmul.f32 0.25, %v2727_v29  ;;  %v2222_v62 = vadd.f32 %v2221_v5, %v5428_v33  ;;  %v2390_v11 = vpop.f32.mrf.mxu3 }
 0x3a8   : > { %v4467_v60 = vpop.eup %4466 }
 0x3a9   : > { %3048 = vst [vmem:[%s5072_s24 + $0x1e8] sm:$0xff] %v4467_v60  ;;  %v2921_v2 = vsel %vm2793_vm14, %v2727_v29, %v2857_v61  ;;  %v2391_v22 = vadd.f32 %v2390_v11, %v2222_v62 }
 0x3aa   : > { %4468 = vtanh.f32 %v2921_v2 }
 0x3ab   : > { %v2560_v31 = vadd.f32 %v2559_v53, %v2391_v22 }
 0x3ad   : > { %v2729_v17 = vadd.f32 %v2728_v42, %v2560_v31 }
 0x3af   : > { %vm2794_vm15 = vcmp.ge.f32.partialorder %v2729_v17, 0.0  ;;  %v2858_v6 = vmul.f32 0.25, %v2729_v17 }
 0x3b0   : > { %v4469_v10 = vpop.eup %4468 }
 0x3b1   : > { %3049 = vst [vmem:[%s5072_s24 + $0x1f0] sm:$0xff] %v4469_v10  ;;  %v2922_v23 = vsel %vm2794_vm15, %v2729_v17, %v2858_v6 }
 0x3b2   : > { %4470 = vtanh.f32 %v2922_v23 }
 0x3b8   : > { %v4471_v26 = vpop.eup %4470 }
 0x3b9   : > { %3050 = vst [vmem:[%s5072_s24 + $0x1f8] sm:$0xff] %v4471_v26 }
 0x3ba PF: > { %s13_s12 = sadd.s32 1, %s4479_s12  }
 0x3bb   : > { %p10_p4 = scmp.ge.s32.totalorder %s13_s12, 6  }
 0x3bd   :  { %12 = sbr.rel (!%p10_p4) target bundleno = 1 (0x1), region = 62 }

</bundles_post_ra>
